<compile_context>
chip_gen: v6e
topology: v6e:2x2x1
jax: 0.10.0
libtpu: 0.0.40
codegen_flags: <defaults>
</compile_context>

<pallas_src>
import functools

import jax
import jax.numpy as jnp
from jax.experimental import pallas as pl
from jax.experimental.pallas import tpu as pltpu

BN_EPS = 1e-5


# --------------------------------------------------------------------------
# Kernel A: streamed per-example sequence sum (HBM-bandwidth bound phase).
# --------------------------------------------------------------------------
def _seq_sum_kernel(h_ref, part_ref, *, seq_len, seq_tile, blocks_per_chunk,
                    needs_mask):
    """Streams [tB, tS, H] bf16 blocks and accumulates the per-example sequence
    sum into the resident f32 output block [1, tB, H] (partial sum per chunk)."""
    s = pl.program_id(2)

    @pl.when(s == 0)
    def _init():
        part_ref[...] = jnp.zeros_like(part_ref)

    if needs_mask:
        # Ragged coverage: the last block of the last chunk may be partial and
        # over-provisioned chunks may contain fully out-of-range blocks (their
        # DMA index is clamped in the index_map; contribution masked to zero).
        p = pl.program_id(1)
        start = (p * blocks_per_chunk + s) * seq_tile
        valid = seq_len - start          # rows of this block that exist (<=0 ok)

        @pl.when(valid >= seq_tile)
        def _full():
            part_ref[0] += jnp.sum(h_ref[...], axis=1, dtype=jnp.float32)

        @pl.when(valid < seq_tile)
        def _partial():
            row = jax.lax.broadcasted_iota(jnp.int32, (seq_tile, h_ref.shape[-1]), 0)
            keep = row < valid                         # [tS, H]
            hb = jnp.where(keep[None, :, :], h_ref[...], 0)
            part_ref[0] += jnp.sum(hb, axis=1, dtype=jnp.float32)
    else:
        part_ref[0] += jnp.sum(h_ref[...], axis=1, dtype=jnp.float32)


# --------------------------------------------------------------------------
# Kernel B: tiny finalize — shared train-mode BatchNorm statistics (both heads
# normalise the identical pooled input) + one fused [H, 2R] MXU matmul.
# --------------------------------------------------------------------------
def _heads_finalize_kernel(part_ref, w_ref, b_ref, out_ref, *, inv_seq_len):
    x = jnp.sum(part_ref[...], axis=0) * inv_seq_len              # [B, H] seq mean
    mu = jnp.mean(x, axis=0, keepdims=True)                       # [1, H]
    var = jnp.mean(jnp.square(x - mu), axis=0, keepdims=True)     # biased (train BN)
    xn = (x - mu) * jax.lax.rsqrt(var + BN_EPS)                   # [B, H]
    # gamma/beta already folded into w_ref/b_ref in the wrapper; one lane-dense
    # [B, 2R] store yields both heads.
    y = jnp.dot(xn.astype(jnp.bfloat16), w_ref[...],
                preferred_element_type=jnp.float32) + b_ref[...]
    out_ref[...] = y.astype(out_ref.dtype)


def _vmem_capacity_bytes():
    try:
        return int(pltpu.get_tpu_info().vmem_capacity_bytes)
    except Exception:
        return 64 * 1024 * 1024   # conservative fallback (v7x per-TC VMEM)


def vader_heads(hidden_state, params, *, doc_r, seq_tile=None, batch_tile=8):
    """hidden_state: [B, S, H] -> (doc_mean [B, doc_r], doc_var [B, doc_r])."""
    B, S, H = hidden_state.shape
    R2 = 2 * doc_r

    # --- fold each head's BatchNorm affine into its Linear; fuse both heads. ---
    wm = params["gm"].reshape(H, 1) * params["wm"]            # diag(gamma_m) @ Wm
    wv = params["gv"].reshape(H, 1) * params["wv"]            # diag(gamma_v) @ Wv
    bm = params["bm"] @ params["wm"] + params["bwm"]          # beta_m @ Wm + bm
    bv = params["bv"] @ params["wv"] + params["bwv"]          # beta_v @ Wv + bv
    w_cat = jnp.concatenate([wm, wv], axis=1).astype(jnp.bfloat16)   # [H, 2R]
    b_cat = jnp.concatenate([bm, bv], axis=1).astype(jnp.float32)    # [1, 2R]

    # bf16 stream; inside the single jit of vader_forward this cast fuses into
    # the encoder producer (no standalone HBM round-trip).
    h = hidden_state.astype(jnp.bfloat16)

    # --- generation-aware tiling: budget the double-buffered streamed block
    #     against the scoped VMEM limit (~75% of physical capacity). ---
    vmem_limit = int(_vmem_capacity_bytes() * 0.75)
    tB = max(1, min(B, batch_tile))
    if seq_tile is None:
        stream_budget = vmem_limit // 2                 # bytes for the 2 input buffers
        tS = stream_budget // (2 * tB * H * 2)          # bf16 = 2 bytes / elem
    else:
        tS = seq_tile
    s_ceil8 = ((S + 7) // 8) * 8
    tS = max(8, min((tS // 8) * 8, s_ceil8))

    n_batch = pl.cdiv(B, tB)
    n_blocks = pl.cdiv(S, tS)
    # Megacore: if batch tiling alone gives no parallel work, split the sequence
    # reduction into two independent partial-sum chunks.
    n_par = 1 if n_batch >= 2 else min(2, n_blocks)
    blocks_per_chunk = pl.cdiv(n_blocks, n_par)
    needs_mask = (n_par * blocks_per_chunk * tS) != S

    def h_index(b, p, s):
        # Clamp so over-provisioned chunks never DMA a fully out-of-range block
        # (their contribution is masked to zero inside the kernel).
        return (b, jnp.minimum(p * blocks_per_chunk + s, n_blocks - 1), 0)

    stream_kernel = functools.partial(
        _seq_sum_kernel, seq_len=S, seq_tile=tS,
        blocks_per_chunk=blocks_per_chunk, needs_mask=needs_mask)

    # Phase 1: partial sequence sums [n_par, B, H] (f32).
    partial_sums = pl.pallas_call(
        stream_kernel,
        out_shape=jax.ShapeDtypeStruct((n_par, B, H), jnp.float32),
        grid=(n_batch, n_par, blocks_per_chunk),
        in_specs=[pl.BlockSpec((tB, tS, H), h_index)],
        out_specs=pl.BlockSpec((1, tB, H), lambda b, p, s: (p, b, 0)),
        compiler_params=pltpu.CompilerParams(
            dimension_semantics=("parallel", "parallel", "arbitrary"),
            vmem_limit_bytes=vmem_limit),
    )(h)

    # Phase 2: tiny finalize (needs full-batch BN statistics).
    finalize_kernel = functools.partial(_heads_finalize_kernel, inv_seq_len=1.0 / S)
    out = pl.pallas_call(
        finalize_kernel,
        out_shape=jax.ShapeDtypeStruct((B, R2), jnp.float32),
        grid=(1,),
        in_specs=[
            pl.BlockSpec((n_par, B, H), lambda i: (0, 0, 0)),
            pl.BlockSpec((H, R2), lambda i: (0, 0)),
            pl.BlockSpec((1, R2), lambda i: (0, 0)),
        ],
        out_specs=pl.BlockSpec((B, R2), lambda i: (0, 0)),
        compiler_params=pltpu.CompilerParams(
            dimension_semantics=("arbitrary",)),
    )(partial_sums, w_cat, b_cat)

    return out[:, :doc_r], out[:, doc_r:]


def _encode(ids, mask, params):
    # TODO(synk): pretrained DistilBERT replaced by deterministic embedding lookup.
    return params["embed"][ids] * mask[..., None].astype(jnp.float32)   # [B, S, H]


@functools.partial(jax.jit, static_argnames=("doc_r", "seq_tile"))
def vader_forward(ids, mask, params, *, doc_r, seq_tile=None):
    """Mirrors VADER.forward(ids, mask) -> (doc_mean, doc_var)."""
    hidden_state = _encode(ids, mask, params)
    # Single jit boundary: the bf16 down-cast inside vader_heads fuses into the
    # encoder fusion, so the [B,S,H] slab is written/read once as bf16.
    return vader_heads(hidden_state, params, doc_r=doc_r, seq_tile=seq_tile)


def init_vader_params(key, hidden=768, doc_r=128, na=16, vocab=100):
    """Deterministic synthetic parameter init mirroring VADER.__init__ shapes."""
    ks = jax.random.split(key, 10)
    scale = 1.0 / jnp.sqrt(hidden)
    params = {
        # doc_mean MLP: BatchNorm1d(hidden) + Linear(hidden, doc_r)
        "gm": jnp.ones((1, hidden), jnp.float32),
        "bm": jnp.zeros((1, hidden), jnp.float32),
        "wm": jax.random.uniform(ks[0], (hidden, doc_r), jnp.float32, -scale, scale),
        "bwm": jax.random.uniform(ks[1], (1, doc_r), jnp.float32, -scale, scale),
        # doc_var MLP
        "gv": jnp.ones((1, hidden), jnp.float32),
        "bv": jnp.zeros((1, hidden), jnp.float32),
        "wv": jax.random.uniform(ks[2], (hidden, doc_r), jnp.float32, -scale, scale),
        "bwv": jax.random.uniform(ks[3], (1, doc_r), jnp.float32, -scale, scale),
        # Remaining VADER params (declared for shape fidelity; unused in forward)
        "a_authors": jax.random.uniform(ks[4], (1,), jnp.float32),
        "b_authors": jax.random.uniform(ks[5], (1,), jnp.float32),
        "a_features": jax.random.uniform(ks[6], (1,), jnp.float32),
        "b_features": jax.random.uniform(ks[7], (1,), jnp.float32),
        "mean_author": jax.random.normal(ks[8], (na, doc_r), jnp.float32),
        "logvar_author": jax.random.uniform(ks[9], (na, doc_r), jnp.float32, -0.5, 0.5),
        # Synthetic embedding table standing in for DistilBERT
        "embed": jax.random.normal(ks[8], (vocab, hidden), jnp.float32) * 0.02,
    }
    return params


if __name__ == "__main__":
    key = jax.random.PRNGKey(0)
    B, S, H, DOC_R, NA, VOCAB = 4, 136, 768, 128, 16, 100

    kp, kid = jax.random.split(key)
    params = init_vader_params(kp, hidden=H, doc_r=DOC_R, na=NA, vocab=VOCAB)

    ids = jax.random.randint(kid, (B, S), 0, VOCAB, dtype=jnp.int32)
    mask = jnp.ones((B, S), dtype=jnp.int32)

    # seq_tile=64 with S=136 forces: multiple sequence blocks, the 2-way
    # megacore split, the in-kernel ragged mask, and the clamped (fully
    # out-of-range) block path.
    doc_mean, doc_var = vader_forward(ids, mask, params, doc_r=DOC_R, seq_tile=64)
    jax.block_until_ready((doc_mean, doc_var))

    # --- pure-JAX reference (same bf16-streamed hidden state, f32 math). ---
    hs = _encode(ids, mask, params).astype(jnp.bfloat16).astype(jnp.float32)
    x = hs.mean(axis=1)
    mu = x.mean(axis=0, keepdims=True)
    var = jnp.mean(jnp.square(x - mu), axis=0, keepdims=True)

    def _head(g, be, w, bw):
        return ((x - mu) / jnp.sqrt(var + BN_EPS) * g + be) @ w + bw

    ref_mean = _head(params["gm"], params["bm"], params["wm"], params["bwm"])
    ref_var = _head(params["gv"], params["bv"], params["wv"], params["bwv"])

    assert doc_mean.shape == (B, DOC_R) and doc_var.shape == (B, DOC_R)
    assert jnp.all(jnp.isfinite(doc_mean)) and jnp.all(jnp.isfinite(doc_var))
    assert jnp.allclose(doc_mean, ref_mean, atol=3e-2, rtol=3e-2)
    assert jnp.allclose(doc_var, ref_var, atol=3e-2, rtol=3e-2)
    print("KERNEL_OK")
</pallas_src>

<mosaic_0001>
module attributes {stable_mosaic.version = 11 : i64} {
  func.func @_seq_sum_kernel(%arg0: i32, %arg1: i32, %arg2: i32, %arg3: memref<4x64x768xbf16, #tpu.memory_space<vmem>>, %arg4: memref<1x4x768xf32, #tpu.memory_space<vmem>>) attributes {dimension_semantics = [#tpu.dimension_semantics<parallel>, #tpu.dimension_semantics<parallel>, #tpu.dimension_semantics<arbitrary>], iteration_bounds = array<i64: 1, 2, 2>, scalar_prefetch = 0 : i64, scratch_operands = 0 : i64, tpu.core_type = #tpu.core_type<tc>, window_params = [{transform_indices = @transform_0, window_bounds = array<i64: 4, 64, 768>}, {transform_indices = @transform_1, window_bounds = array<i64: 1, 4, 768>}]} {
    %c0_i32 = arith.constant 0 : i32
    %0 = arith.cmpi eq, %arg2, %c0_i32 : i32
    %1 = arith.extui %0 : i1 to i32
    %c0_i32_0 = arith.constant 0 : i32
    %2 = arith.cmpi ne, %1, %c0_i32_0 : i32
    scf.if %2 {
      %cst = arith.constant 0.000000e+00 : f32
      %13 = vector.broadcast %cst : f32 to vector<1x4x768xf32>
      %c0 = arith.constant 0 : index
      %c0_5 = arith.constant 0 : index
      %c0_6 = arith.constant 0 : index
      %14 = vector.load %arg4[%c0, %c0_5, %c0_6] : memref<1x4x768xf32, #tpu.memory_space<vmem>>, vector<1x4x768xf32>
      tpu.vector_store %arg4[%c0, %c0_5, %c0_6], %13 {strides = array<i32>} : memref<1x4x768xf32, #tpu.memory_space<vmem>>, vector<1x4x768xf32>,
    } else {
    }
    %c2_i32 = arith.constant 2 : i32
    %3 = arith.muli %arg1, %c2_i32 : i32
    %4 = arith.addi %3, %arg2 : i32
    %c64_i32 = arith.constant 64 : i32
    %5 = arith.muli %4, %c64_i32 : i32
    %c136_i32 = arith.constant 136 : i32
    %6 = arith.subi %c136_i32, %5 : i32
    %c64_i32_1 = arith.constant 64 : i32
    %7 = arith.cmpi sge, %6, %c64_i32_1 : i32
    %8 = arith.extui %7 : i1 to i32
    %c0_i32_2 = arith.constant 0 : i32
    %9 = arith.cmpi ne, %8, %c0_i32_2 : i32
    scf.if %9 {
      %c0 = arith.constant 0 : index
      %c0_5 = arith.constant 0 : index
      %c0_6 = arith.constant 0 : index
      %13 = vector.load %arg4[%c0, %c0_5, %c0_6] : memref<1x4x768xf32, #tpu.memory_space<vmem>>, vector<1x4x768xf32>
      %14 = vector.shape_cast %13 : vector<1x4x768xf32> to vector<4x768xf32>
      %c0_7 = arith.constant 0 : index
      %c0_8 = arith.constant 0 : index
      %c0_9 = arith.constant 0 : index
      %15 = vector.load %arg3[%c0_7, %c0_8, %c0_9] : memref<4x64x768xbf16, #tpu.memory_space<vmem>>, vector<4x64x768xbf16>
      %16 = arith.extf %15 : vector<4x64x768xbf16> to vector<4x64x768xf32>
      %cst = arith.constant dense<0.000000e+00> : vector<4x768xf32>
      %17 = vector.multi_reduction <add>, %16, %cst [1] : vector<4x64x768xf32> to vector<4x768xf32>
      %18 = arith.addf %14, %17 : vector<4x768xf32>
      %c0_10 = arith.constant 0 : index
      %c0_11 = arith.constant 0 : index
      %c0_12 = arith.constant 0 : index
      %19 = vector.load %arg4[%c0_10, %c0_11, %c0_12] : memref<1x4x768xf32, #tpu.memory_space<vmem>>, vector<1x4x768xf32>
      %20 = vector.shape_cast %19 : vector<1x4x768xf32> to vector<4x768xf32>
      %21 = vector.shape_cast %18 : vector<4x768xf32> to vector<1x4x768xf32>
      tpu.vector_store %arg4[%c0_10, %c0_11, %c0_12], %21 {strides = array<i32>} : memref<1x4x768xf32, #tpu.memory_space<vmem>>, vector<1x4x768xf32>,
    } else {
    }
    %c64_i32_3 = arith.constant 64 : i32
    %10 = arith.cmpi slt, %6, %c64_i32_3 : i32
    %11 = arith.extui %10 : i1 to i32
    %c0_i32_4 = arith.constant 0 : i32
    %12 = arith.cmpi ne, %11, %c0_i32_4 : i32
    scf.if %12 {
      %13 = tpu.iota {dimensions = array<i32: 0>} : vector<64x768xi32>
      %14 = vector.broadcast %6 : i32 to vector<64x768xi32>
      %15 = arith.cmpi slt, %13, %14 : vector<64x768xi32>
      %16 = vector.shape_cast %15 : vector<64x768xi1> to vector<1x64x768xi1>
      %c0 = arith.constant 0 : index
      %c0_5 = arith.constant 0 : index
      %c0_6 = arith.constant 0 : index
      %17 = vector.load %arg3[%c0, %c0_5, %c0_6] : memref<4x64x768xbf16, #tpu.memory_space<vmem>>, vector<4x64x768xbf16>
      %c0_i32_7 = arith.constant 0 : i32
      %18 = arith.sitofp %c0_i32_7 : i32 to bf16
      %19 = vector.shape_cast %16 : vector<1x64x768xi1> to vector<1x64x768xi1>
      %20 = vector.broadcast %19 : vector<1x64x768xi1> to vector<4x64x768xi1>
      %21 = vector.broadcast %18 : bf16 to vector<4x64x768xbf16>
      %22 = arith.select %20, %17, %21 : vector<4x64x768xi1>, vector<4x64x768xbf16>
      %c0_8 = arith.constant 0 : index
      %c0_9 = arith.constant 0 : index
      %c0_10 = arith.constant 0 : index
      %23 = vector.load %arg4[%c0_8, %c0_9, %c0_10] : memref<1x4x768xf32, #tpu.memory_space<vmem>>, vector<1x4x768xf32>
      %24 = vector.shape_cast %23 : vector<1x4x768xf32> to vector<4x768xf32>
      %25 = arith.extf %22 : vector<4x64x768xbf16> to vector<4x64x768xf32>
      %cst = arith.constant dense<0.000000e+00> : vector<4x768xf32>
      %26 = vector.multi_reduction <add>, %25, %cst [1] : vector<4x64x768xf32> to vector<4x768xf32>
      %27 = arith.addf %24, %26 : vector<4x768xf32>
      %c0_11 = arith.constant 0 : index
      %c0_12 = arith.constant 0 : index
      %c0_13 = arith.constant 0 : index
      %28 = vector.load %arg4[%c0_11, %c0_12, %c0_13] : memref<1x4x768xf32, #tpu.memory_space<vmem>>, vector<1x4x768xf32>
      %29 = vector.shape_cast %28 : vector<1x4x768xf32> to vector<4x768xf32>
      %30 = vector.shape_cast %27 : vector<4x768xf32> to vector<1x4x768xf32>
      tpu.vector_store %arg4[%c0_11, %c0_12, %c0_13], %30 {strides = array<i32>} : memref<1x4x768xf32, #tpu.memory_space<vmem>>, vector<1x4x768xf32>,
    } else {
    }
    return
  }
  func.func @transform_0(%arg0: i32, %arg1: i32, %arg2: i32) -> (i32, i32, i32) {
    %c2_i32 = arith.constant 2 : i32
    %0 = arith.muli %arg1, %c2_i32 : i32
    %1 = arith.addi %0, %arg2 : i32
    %c2_i32_0 = arith.constant 2 : i32
    %2 = arith.minsi %1, %c2_i32_0 : i32
    %c0_i32 = arith.constant 0 : i32
    %c0_i32_1 = arith.constant 0 : i32
    return %arg0, %2, %c0_i32 : i32, i32, i32
  }
  func.func @transform_1(%arg0: i32, %arg1: i32, %arg2: i32) -> (i32, i32, i32) {
    %c0_i32 = arith.constant 0 : i32
    %c0_i32_0 = arith.constant 0 : i32
    return %arg1, %arg0, %c0_i32 : i32, i32, i32
  }
}

module attributes {stable_mosaic.version = 11 : i64} {
  func.func @_heads_finalize_kernel(%arg0: i32, %arg1: memref<2x4x768xf32, #tpu.memory_space<vmem>>, %arg2: memref<768x256xbf16, #tpu.memory_space<vmem>>, %arg3: memref<1x256xf32, #tpu.memory_space<vmem>>, %arg4: memref<4x256xf32, #tpu.memory_space<vmem>>) attributes {dimension_semantics = [#tpu.dimension_semantics<arbitrary>], iteration_bounds = array<i64: 1>, scalar_prefetch = 0 : i64, scratch_operands = 0 : i64, tpu.core_type = #tpu.core_type<tc>, window_params = [{pipeline_mode = #tpu.pipeline_mode<synchronous>, transform_indices = @transform_0, window_bounds = array<i64: 2, 4, 768>}, {pipeline_mode = #tpu.pipeline_mode<synchronous>, transform_indices = @transform_1, window_bounds = array<i64: 768, 256>}, {pipeline_mode = #tpu.pipeline_mode<synchronous>, transform_indices = @transform_2, window_bounds = array<i64: 1, 256>}, {pipeline_mode = #tpu.pipeline_mode<synchronous>, transform_indices = @transform_3, window_bounds = array<i64: 4, 256>}]} {
    %c0 = arith.constant 0 : index
    %c0_0 = arith.constant 0 : index
    %c0_1 = arith.constant 0 : index
    %0 = vector.load %arg1[%c0, %c0_0, %c0_1] : memref<2x4x768xf32, #tpu.memory_space<vmem>>, vector<2x4x768xf32>
    %cst = arith.constant dense<0.000000e+00> : vector<4x768xf32>
    %1 = vector.multi_reduction <add>, %0, %cst [0] : vector<2x4x768xf32> to vector<4x768xf32>
    %cst_2 = arith.constant 0.0073529412 : f32
    %2 = vector.broadcast %cst_2 : f32 to vector<4x768xf32>
    %3 = arith.mulf %1, %2 : vector<4x768xf32>
    %cst_3 = arith.constant dense<0.000000e+00> : vector<768xf32>
    %4 = vector.multi_reduction <add>, %3, %cst_3 [0] : vector<4x768xf32> to vector<768xf32>
    %5 = vector.shape_cast %4 : vector<768xf32> to vector<1x768xf32>
    %cst_4 = arith.constant 4.000000e+00 : f32
    %6 = vector.broadcast %cst_4 : f32 to vector<1x768xf32>
    %7 = arith.divf %5, %6 : vector<1x768xf32>
    %8 = vector.broadcast %7 : vector<1x768xf32> to vector<4x768xf32>
    %9 = arith.subf %3, %8 : vector<4x768xf32>
    %10 = arith.mulf %9, %9 : vector<4x768xf32>
    %cst_5 = arith.constant dense<0.000000e+00> : vector<768xf32>
    %11 = vector.multi_reduction <add>, %10, %cst_5 [0] : vector<4x768xf32> to vector<768xf32>
    %12 = vector.shape_cast %11 : vector<768xf32> to vector<1x768xf32>
    %cst_6 = arith.constant 4.000000e+00 : f32
    %13 = vector.broadcast %cst_6 : f32 to vector<1x768xf32>
    %14 = arith.divf %12, %13 : vector<1x768xf32>
    %15 = vector.broadcast %7 : vector<1x768xf32> to vector<4x768xf32>
    %16 = arith.subf %3, %15 : vector<4x768xf32>
    %cst_7 = arith.constant 9.99999974E-6 : f32
    %17 = vector.broadcast %cst_7 : f32 to vector<1x768xf32>
    %18 = arith.addf %14, %17 : vector<1x768xf32>
    %19 = math.rsqrt %18 : vector<1x768xf32>
    %20 = vector.broadcast %19 : vector<1x768xf32> to vector<4x768xf32>
    %21 = arith.mulf %16, %20 : vector<4x768xf32>
    %22 = arith.truncf %21 : vector<4x768xf32> to vector<4x768xbf16>
    %c0_8 = arith.constant 0 : index
    %c0_9 = arith.constant 0 : index
    %23 = vector.load %arg2[%c0_8, %c0_9] : memref<768x256xbf16, #tpu.memory_space<vmem>>, vector<768x256xbf16>
    %cst_10 = arith.constant dense<0.000000e+00> : vector<4x256xf32>
    %24 = tpu.matmul %22, %23, %cst_10 {dimension_numbers = #tpu.dot_dimension_numbers<[1], [0], [0], [1], [0, 0, 1, 1], [], []>} : vector<4x768xbf16>, vector<768x256xbf16>, vector<4x256xf32> -> vector<4x256xf32>
    %c0_11 = arith.constant 0 : index
    %c0_12 = arith.constant 0 : index
    %25 = vector.load %arg3[%c0_11, %c0_12] : memref<1x256xf32, #tpu.memory_space<vmem>>, vector<1x256xf32>
    %26 = vector.broadcast %25 : vector<1x256xf32> to vector<4x256xf32>
    %27 = arith.addf %24, %26 : vector<4x256xf32>
    %c0_13 = arith.constant 0 : index
    %c0_14 = arith.constant 0 : index
    %28 = vector.load %arg4[%c0_13, %c0_14] : memref<4x256xf32, #tpu.memory_space<vmem>>, vector<4x256xf32>
    tpu.vector_store %arg4[%c0_13, %c0_14], %27 {strides = array<i32>} : memref<4x256xf32, #tpu.memory_space<vmem>>, vector<4x256xf32>,
    return
  }
  func.func @transform_0(%arg0: i32) -> (i32, i32, i32) {
    %c0_i32 = arith.constant 0 : i32
    %c0_i32_0 = arith.constant 0 : i32
    %c0_i32_1 = arith.constant 0 : i32
    %c0_i32_2 = arith.constant 0 : i32
    return %c0_i32, %c0_i32_0, %c0_i32_1 : i32, i32, i32
  }
  func.func @transform_1(%arg0: i32) -> (i32, i32) {
    %c0_i32 = arith.constant 0 : i32
    %c0_i32_0 = arith.constant 0 : i32
    %c0_i32_1 = arith.constant 0 : i32
    return %c0_i32, %c0_i32_0 : i32, i32
  }
  func.func @transform_2(%arg0: i32) -> (i32, i32) {
    %c0_i32 = arith.constant 0 : i32
    %c0_i32_0 = arith.constant 0 : i32
    %c0_i32_1 = arith.constant 0 : i32
    return %c0_i32, %c0_i32_0 : i32, i32
  }
  func.func @transform_3(%arg0: i32) -> (i32, i32) {
    %c0_i32 = arith.constant 0 : i32
    %c0_i32_0 = arith.constant 0 : i32
    %c0_i32_1 = arith.constant 0 : i32
    return %c0_i32, %c0_i32_0 : i32, i32
  }
}

</mosaic_0001>

<bundles_post_ra>
// kernel: vader_forward.2
= control target key start
LH: loop header
LB: loop body
LE: loop exit
PB: predicated region body
PF: predicated region fallthrough
CT: control target
= control target key end

     0   :  { %s2343_s6 = smov 0   ;;  %s2345_s7 = smov 0   ;;  %s4837_s0 = inlined_call_operand.vmem [shape: bf16[4,136,768], index: 0, kind: input, shape index: {}]   ;;  %s4838_s1 = inlined_call_operand.vmem [shape: f32[2,4,768], index: 1, kind: output, shape index: {}]  }
   0x1   :  { %s2347_s8 = smov 0   ;;  %s2349_s9 = smov 0  }
   0x2   :  { %s2351_s10 = smov 0   ;;  %s2353_s11 = smov 0  }
   0x3   :  { %s2355_s12 = smov 0  }
   0x4 LB: > { %s23_s13 = sadd.s32 1, %s2290_s10  ;;  %s26_s14 = sadd.s32 1, %s2294_s11  ;;  %s2298_s12 = sphi %s2355_s12, %s11_s12   ;;  %s2294_s11 = sphi %s2353_s11, %s5700_s11   ;;  %s2290_s10 = sphi %s2351_s10, %s5699_s10   ;;  %s2286_s9 = sphi %s2349_s9, %s5698_s9   ;;  %s2282_s8 = sphi %s2347_s8, %s5697_s8   ;;  %s2278_s7 = sphi %s2345_s7, %s5696_s7   ;;  %s2274_s6 = sphi %s2343_s6, %s5695_s6  }
   0x5   : > { %p24_p0 = scmp.ge.s32.totalorder %s23_s13, 2  ;;  %s2057_s15 = sshll.u32 %s2294_s11, 1 }
   0x6   : > { %s35_s16 = sadd.s32 %s2290_s10, %s2057_s15  ;;  %p54_p2 = scmp.ne.s32.totalorder %s2278_s7, %s2274_s6 }
   0x7   : > { %s5702_s13 = smov (%p24_p0, %s23_s13), 0  ;;  %s5704_s14 = smov (!%p24_p0, %s26_s14), %s2294_s11 }
   0x8   : > { %p36_p1 = scmp.lt.s32.totalorder %s35_s16, 2  ;;  %p28_p3 = scmp.ge.s32.totalorder %s5704_s14, 2 }
   0x9   : > { %p55_p4 = scmp.eq.s32.totalorder %s2298_s12, 0  ;;  %s47_s20 = sadd.s32 1, %s2278_s7 }
   0xa   : > { %s5706_s16 = smov (!%p36_p1, %s35_s16), 2  ;;  %s5708_s14 = smov (%p28_p3, %s5704_s14), 0 }
   0xb   : > { %p56_p5 = por %p55_p4, %p54_p2  ;;  %s2058_s17 = sshll.u32 %s5708_s14, 1 }
   0xc   : > { %s39_s18 = sadd.s32 %s2058_s17, %s5702_s13  ;;  %p2060_p8 = scmp.ge.s32.totalorder %s2298_s12, 4 }
   0xd   : > { %p40_p6 = scmp.lt.s32.totalorder %s39_s18, 2 }
   0xf   : > { %s5710_s18 = smov (!%p40_p6, %s39_s18), 2  ;;  %108 = sbr.rel (%p2060_p8) target bundleno = 108 (0x6c), region = 16 }
  0x10   : > { %s43_s19 = ssub.s32 %s5706_s16, %s5710_s18 }
  0x11   : > { %p45_p7 = scmp.eq.s32.totalorder %s43_s19, 0 }
  0x13   : > { %s2394_s21 = scalar_select %p45_p7, %s2278_s7, %s47_s20  }
  0x14   : > { %111 = sbr.rel (!%p56_p5) target bundleno = 108 (0x6c), region = 20  ;;  %s113_s22 = sand.u32 (%p56_p5), 1, %s2278_s7  }
  0x15   : > { %s2062_s23 = sshll.u32 (%p56_p5), %s5706_s16, 3  ;;  %s2082_s24 = smul.u32 (%p56_p5), 768, %s113_s22 }
  0x16   : > { %s122_s25 = ssub.s32 (%p56_p5), 17, %s2062_s23  ;;  %s2083_s26 = smul.u32 (%p56_p5), 192, %s5706_s16 }
  0x17   : > { %p123_p9 = scmp.lt.s32.totalorder (%p56_p5), %s122_s25, 8  ;;  %s2406_s2 = scalar_lea.vmem (%p56_p5), [#allocation2], %s2082_s24  }
  0x18   : > { %s2403_s29 = scalar_lea.vmem (%p56_p5), %s4837_s0, %s2083_s26  }
  0x19   : > { %s5712_s25 = smov (!%p123_p9, %s122_s25), 8 }
  0x1a   : > { %s2064_s30 = smul.u32 1536, %s5712_s25 }
  0x1c   : > { %p2068_p10 = scmp.eq.s32.totalorder %s2064_s30, 0 }
  0x1d   : > { %2208 = sdivrem.u32 (!%p2068_p10), %s5712_s25, 6 }
  0x1e   : > { %135 = sbr.rel (%p2068_p10) target bundleno = 108 (0x6c), region = 24 }
  0x26   : > { %s2409_s3 = spop.drf %2208 }
  0x27   : > { %p2069_p11 = scmp.le.s32.totalorder %s2409_s3, 0 }
  0x28   : > { %s5041_s4 = smov (!%p2069_p11), %s2406_s2  ;;  %s5042_s5 = smov (!%p2069_p11), %s2403_s29 }
  0x29   : > { %1998 = sbr.rel (%p2069_p11) target bundleno = 83 (0x53), region = 97  ;;  %s2418_s15 = smov (!%p2069_p11), 0  }
  0x2a   : > { %s2420_s16 = smov (!%p2069_p11), 0  }
  0x2e LB: >> { %v149_v0 = vld [vmem:[%s2306_s5] sm:$0xff]  ;;  %v151_v1 = vld [vmem:[%s2306_s5 + $0x18] sm:$0xff]  ;;  %v153_v2 = vld [vmem:[%s2306_s5 + $0x30] sm:$0xff]  ;;  %s293_s17 = sadd.s32 1, %s2310_s15  ;;  %s143_s16 = sadd.s32 1, %s2314_s16   ;;  %s2314_s16 = sphi %s2420_s16, %s143_s16   ;;  %s2310_s15 = sphi %s2418_s15, %s5045_s15   ;;  %s2306_s5 = sphi %s5042_s5, %s5044_s5   ;;  %s2302_s4 = sphi %s5041_s4, %s5043_s4  }
  0x2f   : >> { %150 = vst [vmem:[%s2302_s4] sm:$0xff] %v149_v0  ;;  %152 = vst [vmem:[%s2302_s4 + $0x18] sm:$0xff] %v151_v1  ;;  %v155_v3 = vld [vmem:[%s2306_s5 + $0x48] sm:$0xff]  ;;  %v157_v4 = vld [vmem:[%s2306_s5 + $0x60] sm:$0xff]  ;;  %p294_p12 = scmp.ge.s32.totalorder %s293_s17, %s2409_s3  ;;  %p142_p13 = scmp.ge.s32.totalorder %s143_s16, %s2409_s3 }
  0x30   : >> { %154 = vst [vmem:[%s2302_s4 + $0x30] sm:$0xff] %v153_v2  ;;  %v159_v5 = vld [vmem:[%s2306_s5 + $0x78] sm:$0xff]  ;;  %156 = vst [vmem:[%s2302_s4 + $0x48] sm:$0xff] %v155_v3  ;;  %v161_v6 = vld [vmem:[%s2306_s5 + $0x8] sm:$0xff] }
  0x31   : >> { %158 = vst [vmem:[%s2302_s4 + $0x60] sm:$0xff] %v157_v4  ;;  %160 = vst [vmem:[%s2302_s4 + $0x78] sm:$0xff] %v159_v5  ;;  %v163_v7 = vld [vmem:[%s2306_s5 + $0x20] sm:$0xff]  ;;  %v165_v8 = vld [vmem:[%s2306_s5 + $0x38] sm:$0xff]  ;;  %s5714_s17 = smov (%p294_p12, %s293_s17), 0 }
  0x32   : >> { %162 = vst [vmem:[%s2302_s4 + $0x8] sm:$0xff] %v161_v6  ;;  %164 = vst [vmem:[%s2302_s4 + $0x20] sm:$0xff] %v163_v7  ;;  %v167_v9 = vld [vmem:[%s2306_s5 + $0x50] sm:$0xff]  ;;  %v169_v10 = vld [vmem:[%s2306_s5 + $0x68] sm:$0xff]  ;;  %s296_s18 = smul.u32 144, %s5714_s17  ;;  %s5045_s15 = smov %s5714_s17 }
  0x33   : >> { %166 = vst [vmem:[%s2302_s4 + $0x38] sm:$0xff] %v165_v8  ;;  %v171_v11 = vld [vmem:[%s2306_s5 + $0x80] sm:$0xff]  ;;  %168 = vst [vmem:[%s2302_s4 + $0x50] sm:$0xff] %v167_v9  ;;  %v173_v12 = vld [vmem:[%s2306_s5 + $0x10] sm:$0xff] }
  0x34   : >> { %170 = vst [vmem:[%s2302_s4 + $0x68] sm:$0xff] %v169_v10  ;;  %172 = vst [vmem:[%s2302_s4 + $0x80] sm:$0xff] %v171_v11  ;;  %v175_v13 = vld [vmem:[%s2306_s5 + $0x28] sm:$0xff]  ;;  %v177_v14 = vld [vmem:[%s2306_s5 + $0x40] sm:$0xff]  ;;  %s2482_s19 = scalar_lea.vmem %s2403_s29, %s296_s18   ;;  %s2485_s20 = scalar_lea.vmem %s2406_s2, %s296_s18 [#allocation2]  }
  0x35   : >> { %174 = vst [vmem:[%s2302_s4 + $0x10] sm:$0xff] %v173_v12  ;;  %176 = vst [vmem:[%s2302_s4 + $0x28] sm:$0xff] %v175_v13  ;;  %v179_v15 = vld [vmem:[%s2306_s5 + $0x58] sm:$0xff]  ;;  %v181_v16 = vld [vmem:[%s2306_s5 + $0x70] sm:$0xff] }
  0x36   : >> { %178 = vst [vmem:[%s2302_s4 + $0x40] sm:$0xff] %v177_v14  ;;  %v183_v17 = vld [vmem:[%s2306_s5 + $0x88] sm:$0xff]  ;;  %180 = vst [vmem:[%s2302_s4 + $0x58] sm:$0xff] %v179_v15  ;;  %v185_v18 = vld [vmem:[%s2306_s5 + $0x198] sm:$0xff] }
  0x37   : >> { %182 = vst [vmem:[%s2302_s4 + $0x70] sm:$0xff] %v181_v16  ;;  %184 = vst [vmem:[%s2302_s4 + $0x88] sm:$0xff] %v183_v17  ;;  %v187_v19 = vld [vmem:[%s2306_s5 + $0x1b0] sm:$0xff]  ;;  %v189_v20 = vld [vmem:[%s2306_s5 + $0x1c8] sm:$0xff] }
  0x38   : >> { %186 = vst [vmem:[%s2302_s4 + $0xc0] sm:$0xff] %v185_v18  ;;  %188 = vst [vmem:[%s2302_s4 + $0xd8] sm:$0xff] %v187_v19  ;;  %v191_v21 = vld [vmem:[%s2306_s5 + $0x1e0] sm:$0xff]  ;;  %v193_v22 = vld [vmem:[%s2306_s5 + $0x1f8] sm:$0xff] }
  0x39   : >> { %190 = vst [vmem:[%s2302_s4 + $0xf0] sm:$0xff] %v189_v20  ;;  %v195_v23 = vld [vmem:[%s2306_s5 + $0x210] sm:$0xff]  ;;  %192 = vst [vmem:[%s2302_s4 + $0x108] sm:$0xff] %v191_v21  ;;  %v197_v24 = vld [vmem:[%s2306_s5 + $0x1a0] sm:$0xff] }
  0x3a   : >> { %194 = vst [vmem:[%s2302_s4 + $0x120] sm:$0xff] %v193_v22  ;;  %196 = vst [vmem:[%s2302_s4 + $0x138] sm:$0xff] %v195_v23  ;;  %v199_v25 = vld [vmem:[%s2306_s5 + $0x1b8] sm:$0xff]  ;;  %v201_v26 = vld [vmem:[%s2306_s5 + $0x1d0] sm:$0xff] }
  0x3b   : >> { %198 = vst [vmem:[%s2302_s4 + $0xc8] sm:$0xff] %v197_v24  ;;  %200 = vst [vmem:[%s2302_s4 + $0xe0] sm:$0xff] %v199_v25  ;;  %v203_v27 = vld [vmem:[%s2306_s5 + $0x1e8] sm:$0xff]  ;;  %v205_v28 = vld [vmem:[%s2306_s5 + $0x200] sm:$0xff] }
  0x3c   : >> { %202 = vst [vmem:[%s2302_s4 + $0xf8] sm:$0xff] %v201_v26  ;;  %v207_v29 = vld [vmem:[%s2306_s5 + $0x218] sm:$0xff]  ;;  %204 = vst [vmem:[%s2302_s4 + $0x110] sm:$0xff] %v203_v27  ;;  %v209_v30 = vld [vmem:[%s2306_s5 + $0x1a8] sm:$0xff] }
  0x3d   : >> { %206 = vst [vmem:[%s2302_s4 + $0x128] sm:$0xff] %v205_v28  ;;  %208 = vst [vmem:[%s2302_s4 + $0x140] sm:$0xff] %v207_v29  ;;  %v211_v31 = vld [vmem:[%s2306_s5 + $0x1c0] sm:$0xff]  ;;  %v213_v32 = vld [vmem:[%s2306_s5 + $0x1d8] sm:$0xff] }
  0x3e   : >> { %210 = vst [vmem:[%s2302_s4 + $0xd0] sm:$0xff] %v209_v30  ;;  %212 = vst [vmem:[%s2302_s4 + $0xe8] sm:$0xff] %v211_v31  ;;  %v215_v33 = vld [vmem:[%s2306_s5 + $0x1f0] sm:$0xff]  ;;  %v217_v34 = vld [vmem:[%s2306_s5 + $0x208] sm:$0xff] }
  0x3f   : >> { %214 = vst [vmem:[%s2302_s4 + $0x100] sm:$0xff] %v213_v32  ;;  %v219_v35 = vld [vmem:[%s2306_s5 + $0x220] sm:$0xff]  ;;  %216 = vst [vmem:[%s2302_s4 + $0x118] sm:$0xff] %v215_v33  ;;  %v221_v36 = vld [vmem:[%s2306_s5 + $0x330] sm:$0xff] }
  0x40   : >> { %218 = vst [vmem:[%s2302_s4 + $0x130] sm:$0xff] %v217_v34  ;;  %220 = vst [vmem:[%s2302_s4 + $0x148] sm:$0xff] %v219_v35  ;;  %v223_v37 = vld [vmem:[%s2306_s5 + $0x348] sm:$0xff]  ;;  %v225_v38 = vld [vmem:[%s2306_s5 + $0x360] sm:$0xff] }
  0x41   : >> { %222 = vst [vmem:[%s2302_s4 + $0x180] sm:$0xff] %v221_v36  ;;  %224 = vst [vmem:[%s2302_s4 + $0x198] sm:$0xff] %v223_v37  ;;  %v227_v39 = vld [vmem:[%s2306_s5 + $0x378] sm:$0xff]  ;;  %v229_v40 = vld [vmem:[%s2306_s5 + $0x390] sm:$0xff] }
  0x42   : >> { %226 = vst [vmem:[%s2302_s4 + $0x1b0] sm:$0xff] %v225_v38  ;;  %v231_v41 = vld [vmem:[%s2306_s5 + $0x3a8] sm:$0xff]  ;;  %228 = vst [vmem:[%s2302_s4 + $0x1c8] sm:$0xff] %v227_v39  ;;  %v233_v42 = vld [vmem:[%s2306_s5 + $0x338] sm:$0xff] }
  0x43   : >> { %230 = vst [vmem:[%s2302_s4 + $0x1e0] sm:$0xff] %v229_v40  ;;  %232 = vst [vmem:[%s2302_s4 + $0x1f8] sm:$0xff] %v231_v41  ;;  %v235_v43 = vld [vmem:[%s2306_s5 + $0x350] sm:$0xff]  ;;  %v237_v44 = vld [vmem:[%s2306_s5 + $0x368] sm:$0xff] }
  0x44   : >> { %234 = vst [vmem:[%s2302_s4 + $0x188] sm:$0xff] %v233_v42  ;;  %236 = vst [vmem:[%s2302_s4 + $0x1a0] sm:$0xff] %v235_v43  ;;  %v239_v45 = vld [vmem:[%s2306_s5 + $0x380] sm:$0xff]  ;;  %v241_v46 = vld [vmem:[%s2306_s5 + $0x398] sm:$0xff] }
  0x45   : >> { %238 = vst [vmem:[%s2302_s4 + $0x1b8] sm:$0xff] %v237_v44  ;;  %v243_v47 = vld [vmem:[%s2306_s5 + $0x3b0] sm:$0xff]  ;;  %240 = vst [vmem:[%s2302_s4 + $0x1d0] sm:$0xff] %v239_v45  ;;  %v245_v48 = vld [vmem:[%s2306_s5 + $0x340] sm:$0xff] }
  0x46   : >> { %242 = vst [vmem:[%s2302_s4 + $0x1e8] sm:$0xff] %v241_v46  ;;  %244 = vst [vmem:[%s2302_s4 + $0x200] sm:$0xff] %v243_v47  ;;  %v247_v49 = vld [vmem:[%s2306_s5 + $0x358] sm:$0xff]  ;;  %v249_v50 = vld [vmem:[%s2306_s5 + $0x370] sm:$0xff] }
  0x47   : >> { %246 = vst [vmem:[%s2302_s4 + $0x190] sm:$0xff] %v245_v48  ;;  %248 = vst [vmem:[%s2302_s4 + $0x1a8] sm:$0xff] %v247_v49  ;;  %v251_v51 = vld [vmem:[%s2306_s5 + $0x388] sm:$0xff]  ;;  %v253_v52 = vld [vmem:[%s2306_s5 + $0x3a0] sm:$0xff] }
  0x48   : >> { %250 = vst [vmem:[%s2302_s4 + $0x1c0] sm:$0xff] %v249_v50  ;;  %v255_v53 = vld [vmem:[%s2306_s5 + $0x3b8] sm:$0xff]  ;;  %252 = vst [vmem:[%s2302_s4 + $0x1d8] sm:$0xff] %v251_v51  ;;  %v257_v54 = vld [vmem:[%s2306_s5 + $0x4c8] sm:$0xff] }
  0x49   : >> { %254 = vst [vmem:[%s2302_s4 + $0x1f0] sm:$0xff] %v253_v52  ;;  %256 = vst [vmem:[%s2302_s4 + $0x208] sm:$0xff] %v255_v53  ;;  %v259_v55 = vld [vmem:[%s2306_s5 + $0x4e0] sm:$0xff]  ;;  %v261_v56 = vld [vmem:[%s2306_s5 + $0x4f8] sm:$0xff] }
  0x4a   : >> { %258 = vst [vmem:[%s2302_s4 + $0x240] sm:$0xff] %v257_v54  ;;  %260 = vst [vmem:[%s2302_s4 + $0x258] sm:$0xff] %v259_v55  ;;  %v263_v57 = vld [vmem:[%s2306_s5 + $0x510] sm:$0xff]  ;;  %v265_v58 = vld [vmem:[%s2306_s5 + $0x528] sm:$0xff] }
  0x4b   : >> { %262 = vst [vmem:[%s2302_s4 + $0x270] sm:$0xff] %v261_v56  ;;  %v267_v59 = vld [vmem:[%s2306_s5 + $0x540] sm:$0xff]  ;;  %264 = vst [vmem:[%s2302_s4 + $0x288] sm:$0xff] %v263_v57  ;;  %v269_v60 = vld [vmem:[%s2306_s5 + $0x4d0] sm:$0xff] }
  0x4c   : >> { %266 = vst [vmem:[%s2302_s4 + $0x2a0] sm:$0xff] %v265_v58  ;;  %268 = vst [vmem:[%s2302_s4 + $0x2b8] sm:$0xff] %v267_v59  ;;  %v271_v61 = vld [vmem:[%s2306_s5 + $0x4e8] sm:$0xff]  ;;  %v273_v62 = vld [vmem:[%s2306_s5 + $0x500] sm:$0xff] }
  0x4d   : >> { %270 = vst [vmem:[%s2302_s4 + $0x248] sm:$0xff] %v269_v60  ;;  %272 = vst [vmem:[%s2302_s4 + $0x260] sm:$0xff] %v271_v61  ;;  %v275_v63 = vld [vmem:[%s2306_s5 + $0x518] sm:$0xff]  ;;  %v277_v0 = vld [vmem:[%s2306_s5 + $0x530] sm:$0xff] }
  0x4e   : >> { %274 = vst [vmem:[%s2302_s4 + $0x278] sm:$0xff] %v273_v62  ;;  %v279_v1 = vld [vmem:[%s2306_s5 + $0x548] sm:$0xff]  ;;  %276 = vst [vmem:[%s2302_s4 + $0x290] sm:$0xff] %v275_v63  ;;  %v281_v2 = vld [vmem:[%s2306_s5 + $0x4d8] sm:$0xff]  ;;  %145 = sbr.rel (!%p142_p13) target bundleno = 46 (0x2e), region = 103 }
  0x4f   : >> { %278 = vst [vmem:[%s2302_s4 + $0x2a8] sm:$0xff] %v277_v0  ;;  %280 = vst [vmem:[%s2302_s4 + $0x2c0] sm:$0xff] %v279_v1  ;;  %v283_v3 = vld [vmem:[%s2306_s5 + $0x4f0] sm:$0xff]  ;;  %v285_v4 = vld [vmem:[%s2306_s5 + $0x508] sm:$0xff] }
  0x50   : >> { %282 = vst [vmem:[%s2302_s4 + $0x250] sm:$0xff] %v281_v2  ;;  %284 = vst [vmem:[%s2302_s4 + $0x268] sm:$0xff] %v283_v3  ;;  %v287_v5 = vld [vmem:[%s2306_s5 + $0x520] sm:$0xff]  ;;  %v289_v6 = vld [vmem:[%s2306_s5 + $0x538] sm:$0xff] }
  0x51   : >> { %286 = vst [vmem:[%s2302_s4 + $0x280] sm:$0xff] %v285_v4  ;;  %v291_v7 = vld [vmem:[%s2306_s5 + $0x550] sm:$0xff]  ;;  %288 = vst [vmem:[%s2302_s4 + $0x298] sm:$0xff] %v287_v5  ;;  %s5044_s5 = smov %s2482_s19 }
  0x52   : >> { %290 = vst [vmem:[%s2302_s4 + $0x2b0] sm:$0xff] %v289_v6  ;;  %292 = vst [vmem:[%s2302_s4 + $0x2c8] sm:$0xff] %v291_v7  ;;  %s5043_s4 = smov %s2485_s20 }
  0x53 PF: > { %2210 = sdivrem.u32 %s5712_s25, 6 }
  0x54   : > { %s2070_s22 = smul.u32 144, %s2409_s3 }
  0x56   : > { %s2602_s23 = scalar_lea.vmem %s2403_s29, %s2070_s22   ;;  %s2605_s24 = scalar_lea.vmem %s2406_s2, %s2070_s22 [#allocation2]  }
  0x5c   : > { %s2607_s26 = spop.drf %2210 }
  0x5d   : > { %p2072_p0 = scmp.le.s32.totalorder %s2607_s26, 0 }
  0x5e   : > { %s5046_s27 = smov (!%p2072_p0), %s2605_s24  ;;  %s5047_s28 = smov (!%p2072_p0), %s2602_s23 }
  0x5f   : > { %2012 = sbr.rel (%p2072_p0) target bundleno = 108 (0x6c), region = 108  ;;  %s2616_s30 = smov (!%p2072_p0), 0  }
  0x60   : > { %s2618_s4 = smov (!%p2072_p0), 0  }
  0x64 LB: >> { %v316_v8 = vld [vmem:[%s2322_s28] sm:$0xff]  ;;  %v318_v9 = vld [vmem:[%s2322_s28 + $0x8] sm:$0xff]  ;;  %v320_v10 = vld [vmem:[%s2322_s28 + $0x10] sm:$0xff]  ;;  %s340_s25 = sadd.s32 1, %s2326_s30  ;;  %s310_s4 = sadd.s32 1, %s2330_s4   ;;  %s2330_s4 = sphi %s2618_s4, %s310_s4   ;;  %s2326_s30 = sphi %s2616_s30, %s5048_s30   ;;  %s2322_s28 = sphi %s5047_s28, %s345_s28   ;;  %s2318_s27 = sphi %s5046_s27, %s346_s27  }
  0x65   : >> { %317 = vst [vmem:[%s2318_s27] sm:$0xff] %v316_v8  ;;  %319 = vst [vmem:[%s2318_s27 + $0x8] sm:$0xff] %v318_v9  ;;  %v322_v11 = vld [vmem:[%s2322_s28 + $0x198] sm:$0xff]  ;;  %v324_v12 = vld [vmem:[%s2322_s28 + $0x1a0] sm:$0xff]  ;;  %p341_p1 = scmp.ge.s32.totalorder %s340_s25, %s2607_s26  ;;  %p309_p2 = scmp.ge.s32.totalorder %s310_s4, %s2607_s26 }
  0x66   : >> { %321 = vst [vmem:[%s2318_s27 + $0x10] sm:$0xff] %v320_v10  ;;  %v326_v13 = vld [vmem:[%s2322_s28 + $0x1a8] sm:$0xff]  ;;  %323 = vst [vmem:[%s2318_s27 + $0xc0] sm:$0xff] %v322_v11  ;;  %v328_v14 = vld [vmem:[%s2322_s28 + $0x330] sm:$0xff] }
  0x67   : >> { %325 = vst [vmem:[%s2318_s27 + $0xc8] sm:$0xff] %v324_v12  ;;  %327 = vst [vmem:[%s2318_s27 + $0xd0] sm:$0xff] %v326_v13  ;;  %v330_v15 = vld [vmem:[%s2322_s28 + $0x338] sm:$0xff]  ;;  %v332_v16 = vld [vmem:[%s2322_s28 + $0x340] sm:$0xff]  ;;  %s5716_s25 = smov (%p341_p1, %s340_s25), 0  ;;  %312 = sbr.rel (!%p309_p2) target bundleno = 100 (0x64), region = 114 }
  0x68   : >> { %329 = vst [vmem:[%s2318_s27 + $0x180] sm:$0xff] %v328_v14  ;;  %331 = vst [vmem:[%s2318_s27 + $0x188] sm:$0xff] %v330_v15  ;;  %v334_v17 = vld [vmem:[%s2322_s28 + $0x4c8] sm:$0xff]  ;;  %v336_v18 = vld [vmem:[%s2322_s28 + $0x4d0] sm:$0xff]  ;;  %s343_s29 = smul.u32 24, %s5716_s25  ;;  %s5048_s30 = smov %s5716_s25 }
  0x69   : >> { %333 = vst [vmem:[%s2318_s27 + $0x190] sm:$0xff] %v332_v16  ;;  %v338_v19 = vld [vmem:[%s2322_s28 + $0x4d8] sm:$0xff]  ;;  %335 = vst [vmem:[%s2318_s27 + $0x240] sm:$0xff] %v334_v17 }
  0x6a   : >> { %337 = vst [vmem:[%s2318_s27 + $0x248] sm:$0xff] %v336_v18  ;;  %339 = vst [vmem:[%s2318_s27 + $0x250] sm:$0xff] %v338_v19  ;;  %s345_s28 = scalar_lea.vmem %s2602_s23, %s343_s29   ;;  %s346_s27 = scalar_lea.vmem %s2605_s24, %s343_s29 [#allocation2]  }
  0x6c PF: > { %p2073_p3 = scmp.ge.s32.totalorder %s2298_s12, 1  ;;  %p351_p4 = scmp.lt.s32.totalorder %s2298_s12, 5 }
  0x6e   : > { %p352_p5 = pnand %p2073_p3, %p351_p4 }
  0x6f   : > { %s358_s2 = sand.u32 (!%p352_p5), 1, %s2274_s6   ;;  %p392_p6 = scmp.lt.s32.totalorder (!%p352_p5), %s2286_s9, 1 }
  0x70   : > { %355 = sbr.rel (%p352_p5) target bundleno = 507 (0x1fb), region = 50  ;;  %p2075_p7 = scmp.ne.s32.totalorder (!%p352_p5), %s2282_s8, 0 }
  0x71   : > { %s2084_s3 = smul.u32 (!%p352_p5), 768, %s358_s2 }
  0x73   : > { %s2649_s19 = scalar_lea.vmem (!%p352_p5), [#allocation2], %s2084_s3 }
  0x75   : > { %s393_s5 = scalar_select %p392_p6, %s2286_s9, 1 }
  0x76   : > { %405 = sbr.rel (%p2075_p7) target bundleno = 126 (0x7e), region = 58 }
  0x77   : > { %s2085_s15 = smul.u32 24, %s393_s5 }
  0x79   : > { %s2647_s18 = scalar_lea.vmem %s4838_s1, %s2085_s15 }
  0x7b   : > { %v2332_v20 = vmov 0.0  }
  0x7c   : > { %406 = vst [vmem:[%s2647_s18] sm:$0xff] %v2332_v20  ;;  %407 = vst [vmem:[%s2647_s18 + $0x8] sm:$0xff] %v2332_v20 }
  0x7d   : > { %408 = vst [vmem:[%s2647_s18 + $0x10] sm:$0xff] %v2332_v20 }
  0x7e PF: > { %s2076_s6 = sshll.u32 %s2286_s9, 1 }
  0x7f   : > { %s410_s20 = sadd.s32 %s2282_s8, %s2076_s6 }
  0x80   : > { %s2077_s22 = sshll.u32 %s410_s20, 6 }
  0x81   : > { %s2657_s23 = ssub.s32 136, %s2077_s22 }
  0x82   : > { %p2078_p8 = scmp.lt.s32.totalorder %s2657_s23, 64 }
  0x84   : > { %416 = sbr.rel (%p2078_p8) target bundleno = 311 (0x137), region = 62 }
  0x89   : > { %v2661_v21 = vld [vmem:[%s2649_s19] sm:$0xff]  ;;  %v2664_v22 = vld [vmem:[%s2649_s19 + $0x8] sm:$0xff]  ;;  %v2667_v23 = vld [vmem:[%s2649_s19 + $0x10] sm:$0xff]  ;;  %vm1057_vm0 = vcmask 1041409   ;;  %vm1059_vm1 = vcmask 1045509   ;;  %vm1062_vm2 = vcmask 1042434  }
  0x8a   : > { %v2670_v24 = vld [vmem:[%s2649_s19 + $0x18] sm:$0xff]  ;;  %v2673_v25 = vld [vmem:[%s2649_s19 + $0x20] sm:$0xff]  ;;  %v2676_v26 = vld [vmem:[%s2649_s19 + $0x28] sm:$0xff]  ;;  %vm1064_vm3 = vcmask 1046534   ;;  %vm1067_vm4 = vcmask 1043459   ;;  %vm1069_vm5 = vcmask 1047559  }
  0x8b   : > { %v2681_v29 = vld [vmem:[%s2649_s19 + $0x30] sm:$0xff]  ;;  %v2684_v30 = vld [vmem:[%s2649_s19 + $0x38] sm:$0xff]  ;;  %v2687_v31 = vld [vmem:[%s2649_s19 + $0x40] sm:$0xff] }
  0x8c   : > { %v2694_v36 = vld [vmem:[%s2649_s19 + $0x48] sm:$0xff]  ;;  %v2697_v37 = vld [vmem:[%s2649_s19 + $0x50] sm:$0xff]  ;;  %v2704_v42 = vld [vmem:[%s2649_s19 + $0x58] sm:$0xff] }
  0x8d   : > { %v2707_v43 = vld [vmem:[%s2649_s19 + $0x60] sm:$0xff]  ;;  %v2714_v48 = vld [vmem:[%s2649_s19 + $0x68] sm:$0xff]  ;;  %v2717_v49 = vld [vmem:[%s2649_s19 + $0x70] sm:$0xff] }
  0x8e   : > { %v2724_v54 = vld [vmem:[%s2649_s19 + $0x78] sm:$0xff]  ;;  %v2727_v55 = vld [vmem:[%s2649_s19 + $0x80] sm:$0xff]  ;;  %v2734_v60 = vld [vmem:[%s2649_s19 + $0x88] sm:$0xff] }
  0x8f   : > { %v2737_v61 = vld [vmem:[%s2649_s19 + $0x90] sm:$0xff]  ;;  %v2744_v2 = vld [vmem:[%s2649_s19 + $0x98] sm:$0xff]  ;;  %v2747_v3 = vld [vmem:[%s2649_s19 + $0xa0] sm:$0xff] }
  0x90   : > { %v2754_v8 = vld [vmem:[%s2649_s19 + $0xa8] sm:$0xff]  ;;  %v2757_v9 = vld [vmem:[%s2649_s19 + $0xb0] sm:$0xff]  ;;  %v2764_v14 = vld [vmem:[%s2649_s19 + $0xb8] sm:$0xff] }
  0x91   : > { %v2767_v15 = vld [vmem:[%s2649_s19 + $0xc0] sm:$0xff]  ;;  %v2774_v20 = vld [vmem:[%s2649_s19 + $0xc8] sm:$0xff]  ;;  %v2777_v11 = vld [vmem:[%s2649_s19 + $0xd0] sm:$0xff] }
  0x92   : > { %v2784_v17 = vld [vmem:[%s2649_s19 + $0xd8] sm:$0xff]  ;;  %v2787_v7 = vld [vmem:[%s2649_s19 + $0xe0] sm:$0xff]  ;;  %v2794_v12 = vld [vmem:[%s2649_s19 + $0xe8] sm:$0xff] }
  0x93   : > { %v2797_v5 = vld [vmem:[%s2649_s19 + $0xf0] sm:$0xff]  ;;  %v2804_v18 = vld [vmem:[%s2649_s19 + $0xf8] sm:$0xff]  ;;  %v2807_v1 = vld [vmem:[%s2649_s19 + $0x100] sm:$0xff] }
  0x94   : > { %v2814_v16 = vld [vmem:[%s2649_s19 + $0x108] sm:$0xff]  ;;  %v2817_v63 = vld [vmem:[%s2649_s19 + $0x110] sm:$0xff]  ;;  %v2824_v13 = vld [vmem:[%s2649_s19 + $0x118] sm:$0xff] }
  0x95   : > { %5049 = vst [vmem:[#allocation3_spill] sm:$0xff] %v2824_v13  ;;  %v2827_v57 = vld [vmem:[%s2649_s19 + $0x120] sm:$0xff]  ;;  %v2834_v52 = vld [vmem:[%s2649_s19 + $0x128] sm:$0xff]  ;;  %v2837_v51 = vld [vmem:[%s2649_s19 + $0x130] sm:$0xff] }
  0x96   : > { %5050 = vst [vmem:[#allocation4_spill] sm:$0xff] %v2834_v52  ;;  %5051 = vst [vmem:[#allocation5_spill] sm:$0xff] %v2837_v51  ;;  %v2844_v10 = vld [vmem:[%s2649_s19 + $0x138] sm:$0xff]  ;;  %v2847_v47 = vld [vmem:[%s2649_s19 + $0x140] sm:$0xff] }
  0x97   : > { %5052 = vst [vmem:[#allocation6_spill] sm:$0xff] %v2847_v47  ;;  %v2854_v6 = vld [vmem:[%s2649_s19 + $0x148] sm:$0xff]  ;;  %v2857_v59 = vld [vmem:[%s2649_s19 + $0x150] sm:$0xff]  ;;  %v2864_v56 = vld [vmem:[%s2649_s19 + $0x158] sm:$0xff] }
  0x98   : > { %5053 = vst [vmem:[#allocation7_spill] sm:$0xff] %v2854_v6  ;;  %5054 = vst [vmem:[#allocation8_spill] sm:$0xff] %v2864_v56  ;;  %v2867_v62 = vld [vmem:[%s2649_s19 + $0x160] sm:$0xff]  ;;  %v2874_v0 = vld [vmem:[%s2649_s19 + $0x168] sm:$0xff] }
  0x99   : > { %5055 = vst [vmem:[#allocation9_spill] sm:$0xff] %v2867_v62  ;;  %v2877_v45 = vld [vmem:[%s2649_s19 + $0x170] sm:$0xff]  ;;  %v2884_v58 = vld [vmem:[%s2649_s19 + $0x178] sm:$0xff]  ;;  %v2887_v44 = vld [vmem:[%s2649_s19 + $0x180] sm:$0xff] }
  0x9a   : > { %5056 = vst [vmem:[#allocation10_spill] sm:$0xff] %v2877_v45  ;;  %5057 = vst [vmem:[#allocation11_spill] sm:$0xff] %v2884_v58  ;;  %v2894_v53 = vld [vmem:[%s2649_s19 + $0x188] sm:$0xff]  ;;  %v2897_v41 = vld [vmem:[%s2649_s19 + $0x190] sm:$0xff] }
  0x9b   : > { %5058 = vst [vmem:[#allocation12_spill] sm:$0xff] %v2897_v41  ;;  %v2904_v50 = vld [vmem:[%s2649_s19 + $0x198] sm:$0xff]  ;;  %v2907_v40 = vld [vmem:[%s2649_s19 + $0x1a0] sm:$0xff]  ;;  %v2914_v46 = vld [vmem:[%s2649_s19 + $0x1a8] sm:$0xff] }
  0x9c   : > { %5059 = vst [vmem:[#allocation13_spill] sm:$0xff] %v2914_v46  ;;  %v2917_v39 = vld [vmem:[%s2649_s19 + $0x1b0] sm:$0xff]  ;;  %v2924_v4 = vld [vmem:[%s2649_s19 + $0x1b8] sm:$0xff]  ;;  %v2927_v38 = vld [vmem:[%s2649_s19 + $0x1c0] sm:$0xff] }
  0x9d   : > { %5060 = vst [vmem:[#allocation14_spill] sm:$0xff] %v2927_v38  ;;  %v2934_v19 = vld [vmem:[%s2649_s19 + $0x1c8] sm:$0xff]  ;;  %v2937_v58 = vld [vmem:[%s2649_s19 + $0x1d0] sm:$0xff]  ;;  %v2944_v35 = vld [vmem:[%s2649_s19 + $0x1d8] sm:$0xff] }
  0x9e   : > { %5061 = vst [vmem:[#allocation15_spill] sm:$0xff] %v2934_v19  ;;  %5062 = vst [vmem:[#allocation16_spill] sm:$0xff] %v2937_v58  ;;  %v2947_v62 = vld [vmem:[%s2649_s19 + $0x1e0] sm:$0xff]  ;;  %v2954_v34 = vld [vmem:[%s2649_s19 + $0x1e8] sm:$0xff] }
  0x9f   : > { %5063 = vst [vmem:[#allocation17_spill] sm:$0xff] %v2944_v35  ;;  %5064 = vst [vmem:[#allocation18_spill] sm:$0xff] %v2947_v62  ;;  %v2957_v56 = vld [vmem:[%s2649_s19 + $0x1f0] sm:$0xff]  ;;  %v2964_v33 = vld [vmem:[%s2649_s19 + $0x1f8] sm:$0xff] }
  0xa0   : > { %5065 = vst [vmem:[#allocation19_spill] sm:$0xff] %v2954_v34  ;;  %5066 = vst [vmem:[#allocation20_spill] sm:$0xff] %v2957_v56  ;;  %v2967_v46 = vld [vmem:[%s2649_s19 + $0x200] sm:$0xff]  ;;  %v2974_v32 = vld [vmem:[%s2649_s19 + $0x208] sm:$0xff] }
  0xa1   : > { %5067 = vst [vmem:[#allocation21_spill] sm:$0xff] %v2964_v33  ;;  %5068 = vst [vmem:[#allocation22_spill] sm:$0xff] %v2967_v46  ;;  %v2977_v51 = vld [vmem:[%s2649_s19 + $0x210] sm:$0xff]  ;;  %v2984_v28 = vld [vmem:[%s2649_s19 + $0x218] sm:$0xff] }
  0xa2   : > { %5069 = vst [vmem:[#allocation23_spill] sm:$0xff] %v2974_v32  ;;  %5070 = vst [vmem:[#allocation24_spill] sm:$0xff] %v2977_v51  ;;  %v2987_v52 = vld [vmem:[%s2649_s19 + $0x220] sm:$0xff]  ;;  %v2994_v27 = vld [vmem:[%s2649_s19 + $0x228] sm:$0xff] }
  0xa3   : > { %5071 = vst [vmem:[#allocation25_spill] sm:$0xff] %v2984_v28  ;;  %5072 = vst [vmem:[#allocation26_spill] sm:$0xff] %v2987_v52  ;;  %v2997_v35 = vld [vmem:[%s2649_s19 + $0x230] sm:$0xff]  ;;  %v3004_v45 = vld [vmem:[%s2649_s19 + $0x238] sm:$0xff] }
  0xa4   : > { %5073 = vst [vmem:[#allocation27_spill] sm:$0xff] %v2994_v27  ;;  %5074 = vst [vmem:[#allocation28_spill] sm:$0xff] %v2997_v35  ;;  %v3007_v34 = vld [vmem:[%s2649_s19 + $0x240] sm:$0xff]  ;;  %v3014_v41 = vld [vmem:[%s2649_s19 + $0x248] sm:$0xff]  ;;  %v5100_v35 = vunpack.c.l.bf16 %v2673_v25 }
  0xa5   : > { %5075 = vst [vmem:[#allocation29_spill] sm:$0xff] %v3004_v45  ;;  %5076 = vst [vmem:[#allocation30_spill] sm:$0xff] %v3007_v34  ;;  %v3017_v33 = vld [vmem:[%s2649_s19 + $0x250] sm:$0xff]  ;;  %v3024_v6 = vld [vmem:[%s2649_s19 + $0x258] sm:$0xff]  ;;  %v5102_v34 = vunpack.c.h.bf16 %v2673_v25  ;;  %v5110_v25 = vunpack.c.h.bf16 %v2784_v17 }
  0xa6   : > { %5077 = vst [vmem:[#allocation31_spill] sm:$0xff] %v3014_v41  ;;  %5078 = vst [vmem:[#allocation32_spill] sm:$0xff] %v3017_v33  ;;  %v3027_v32 = vld [vmem:[%s2649_s19 + $0x260] sm:$0xff]  ;;  %v3034_v47 = vld [vmem:[%s2649_s19 + $0x268] sm:$0xff]  ;;  %v5099_v33 = vunpack.c.l.bf16 %v2664_v22 }
  0xa7   : > { %5079 = vst [vmem:[#allocation33_spill] sm:$0xff] %v3024_v6  ;;  %5080 = vst [vmem:[#allocation34_spill] sm:$0xff] %v3027_v32  ;;  %v3037_v28 = vld [vmem:[%s2649_s19 + $0x270] sm:$0xff]  ;;  %v3044_v38 = vld [vmem:[%s2649_s19 + $0x278] sm:$0xff] }
  0xa8   : > { %5081 = vst [vmem:[#allocation35_spill] sm:$0xff] %v3034_v47  ;;  %5082 = vst [vmem:[#allocation36_spill] sm:$0xff] %v3037_v28  ;;  %v3047_v27 = vld [vmem:[%s2649_s19 + $0x280] sm:$0xff]  ;;  %v3054_v58 = vld [vmem:[%s2649_s19 + $0x288] sm:$0xff] }
  0xa9   : > { %5083 = vst [vmem:[#allocation37_spill] sm:$0xff] %v3044_v38  ;;  %5084 = vst [vmem:[#allocation38_spill] sm:$0xff] %v3047_v27  ;;  %v3057_v45 = vld [vmem:[%s2649_s19 + $0x290] sm:$0xff]  ;;  %v3064_v62 = vld [vmem:[%s2649_s19 + $0x298] sm:$0xff] }
  0xaa   : > { %5085 = vst [vmem:[#allocation39_spill] sm:$0xff] %v3054_v58  ;;  %5086 = vst [vmem:[#allocation40_spill] sm:$0xff] %v3057_v45  ;;  %v3067_v41 = vld [vmem:[%s2649_s19 + $0x2a0] sm:$0xff]  ;;  %v3074_v56 = vld [vmem:[%s2649_s19 + $0x2a8] sm:$0xff]  ;;  %v5095_v45 = vunpack.c.l.bf16 %v2661_v21  ;;  %v5096_v58 = vunpack.c.l.bf16 %v2670_v24 }
  0xab   : > { %5087 = vst [vmem:[#allocation41_spill] sm:$0xff] %v3067_v41  ;;  %5088 = vst [vmem:[#allocation42_spill] sm:$0xff] %v3074_v56  ;;  %v3077_v6 = vld [vmem:[%s2649_s19 + $0x2b0] sm:$0xff]  ;;  %v3084_v46 = vld [vmem:[%s2649_s19 + $0x2b8] sm:$0xff]  ;;  %v5098_v56 = vunpack.c.h.bf16 %v2670_v24  ;;  %v5101_v41 = vunpack.c.h.bf16 %v2664_v22  ;;  %v5106_v24 = vunpack.c.h.bf16 %v2676_v26  ;;  %v5109_v22 = vunpack.c.h.bf16 %v2767_v15 }
  0xac   : > { %5089 = vst [vmem:[#allocation43_spill] sm:$0xff] %v3077_v6  ;;  %v3087_v47 = vld [vmem:[%s2649_s19 + $0x2c0] sm:$0xff]  ;;  %v3094_v51 = vld [vmem:[%s2649_s19 + $0x2c8] sm:$0xff]  ;;  %v3097_v38 = vld [vmem:[%s2649_s19 + $0x2d0] sm:$0xff]  ;;  %v5097_v6 = vunpack.c.h.bf16 %v2661_v21  ;;  %v5105_v21 = vunpack.c.h.bf16 %v2667_v23 }
  0xad   : > { %5090 = vst [vmem:[#allocation44_spill] sm:$0xff] %v3097_v38  ;;  %v3104_v19 = vld [vmem:[%s2649_s19 + $0x2d8] sm:$0xff]  ;;  %v3107_v52 = vld [vmem:[%s2649_s19 + $0x2e0] sm:$0xff]  ;;  %v3114_v13 = vld [vmem:[%s2649_s19 + $0x2e8] sm:$0xff]  ;;  %v708_v38 = vadd.f32 %v5096_v58, %v5095_v45  ;;  %v747_v28 = vadd.f32 %v5102_v34, %v5101_v41  ;;  %v5107_v58 = vunpack.c.l.bf16 %v2767_v15  ;;  %v799_v34 = vadd.f32 %v5110_v25, %v5109_v22 }
  0xae   : > { %5091 = vst [vmem:[#allocation45_spill] sm:$0xff] %v3104_v19  ;;  %5092 = vst [vmem:[#allocation46_spill] sm:$0xff] %v3107_v52  ;;  %v3117_v32 = vld [vmem:[%s2649_s19 + $0x2f0] sm:$0xff]  ;;  %v721_v27 = vadd.f32 %v5098_v56, %v5097_v6  ;;  %v734_v52 = vadd.f32 %v5100_v35, %v5099_v33  ;;  %v773_v56 = vadd.f32 %v5106_v24, %v5105_v21  ;;  %v5108_v6 = vunpack.c.l.bf16 %v2784_v17 }
  0xaf   : > { %5093 = vst [vmem:[#allocation47_spill] sm:$0xff] %v3114_v13  ;;  %5094 = vst [vmem:[#allocation48_spill] sm:$0xff] %v3117_v32  ;;  %v5103_v32 = vunpack.c.l.bf16 %v2667_v23  ;;  %v5104_v13 = vunpack.c.l.bf16 %v2676_v26  ;;  %v5111_v35 = vunpack.c.l.bf16 %v2681_v29  ;;  %v5113_v23 = vunpack.c.l.bf16 %v2684_v30 }
  0xb0   : > { %v786_v33 = vadd.f32 %v5108_v6, %v5107_v58  ;;  %v5114_v21 = vunpack.c.h.bf16 %v2684_v30  ;;  %v5115_v19 = vunpack.c.l.bf16 %v2687_v31  ;;  %v5116_v15 = vunpack.c.h.bf16 %v2687_v31 }
  0xb1   : > { %v760_v45 = vadd.f32 %v5104_v13, %v5103_v32  ;;  %v709_v41 = vadd.f32 %v708_v38, %v5111_v35  ;;  %v5112_v32 = vunpack.c.h.bf16 %v2681_v29  ;;  %v735_v26 = vadd.f32 %v734_v52, %v5113_v23 }
  0xb2   : > { %v748_v24 = vadd.f32 %v747_v28, %v5114_v21  ;;  %v774_v6 = vadd.f32 %v773_v56, %v5116_v15  ;;  %v5117_v17 = vunpack.c.l.bf16 %v2797_v5  ;;  %v5118_v38 = vunpack.c.h.bf16 %v2797_v5 }
  0xb3   : > { %v722_v13 = vadd.f32 %v721_v27, %v5112_v32  ;;  %v761_v58 = vadd.f32 %v760_v45, %v5115_v19  ;;  %v5119_v27 = vunpack.c.l.bf16 %v2694_v36  ;;  %v5120_v52 = vunpack.c.h.bf16 %v2694_v36 }
  0xb4   : > { %v787_v22 = vadd.f32 %v786_v33, %v5117_v17  ;;  %v800_v25 = vadd.f32 %v799_v34, %v5118_v38  ;;  %v5121_v28 = vunpack.c.l.bf16 %v2697_v37  ;;  %v5122_v19 = vunpack.c.h.bf16 %v2697_v37 }
  0xb5   : > { %v710_v29 = vadd.f32 %v709_v41, %v5119_v27  ;;  %v723_v35 = vadd.f32 %v722_v13, %v5120_v52  ;;  %v5123_v31 = vunpack.c.l.bf16 %v2704_v42  ;;  %v5124_v33 = vunpack.c.h.bf16 %v2704_v42 }
  0xb6   : > { %v736_v30 = vadd.f32 %v735_v26, %v5121_v28  ;;  %v749_v45 = vadd.f32 %v748_v24, %v5122_v19  ;;  %v5125_v5 = vunpack.c.l.bf16 %v2814_v16  ;;  %v5126_v41 = vunpack.c.h.bf16 %v2814_v16 }
  0xb7   : > { %v762_v56 = vadd.f32 %v761_v58, %v5123_v31  ;;  %v775_v32 = vadd.f32 %v774_v6, %v5124_v33  ;;  %v5127_v36 = vunpack.c.l.bf16 %v2707_v43  ;;  %v5128_v26 = vunpack.c.h.bf16 %v2707_v43 }
  0xb8   : > { %v788_v34 = vadd.f32 %v787_v22, %v5125_v5  ;;  %v801_v23 = vadd.f32 %v800_v25, %v5126_v41  ;;  %v5129_v37 = vunpack.c.l.bf16 %v2714_v48  ;;  %v5130_v58 = vunpack.c.h.bf16 %v2714_v48 }
  0xb9   : > { %v711_v13 = vadd.f32 %v710_v29, %v5127_v36  ;;  %v724_v21 = vadd.f32 %v723_v35, %v5128_v26  ;;  %v5131_v42 = vunpack.c.l.bf16 %v2717_v49  ;;  %v5132_v17 = vunpack.c.h.bf16 %v2717_v49 }
  0xba   : > { %v737_v24 = vadd.f32 %v736_v30, %v5129_v37  ;;  %v750_v15 = vadd.f32 %v749_v45, %v5130_v58  ;;  %v5133_v16 = vunpack.c.l.bf16 %v2827_v57  ;;  %v5134_v25 = vunpack.c.h.bf16 %v2827_v57 }
  0xbb   : > { %v763_v6 = vadd.f32 %v762_v56, %v5131_v42  ;;  %v776_v22 = vadd.f32 %v775_v32, %v5132_v17  ;;  %v5135_v43 = vunpack.c.l.bf16 %v2724_v54  ;;  %v5136_v52 = vunpack.c.h.bf16 %v2724_v54 }
  0xbc   : > { %v789_v38 = vadd.f32 %v788_v34, %v5133_v16  ;;  %v802_v27 = vadd.f32 %v801_v23, %v5134_v25  ;;  %v5137_v48 = vunpack.c.l.bf16 %v2727_v55  ;;  %v5138_v30 = vunpack.c.h.bf16 %v2727_v55 }
  0xbd   : > { %v712_v29 = vadd.f32 %v711_v13, %v5135_v43  ;;  %v725_v35 = vadd.f32 %v724_v21, %v5136_v52  ;;  %v5139_v49 = vunpack.c.l.bf16 %v2734_v60  ;;  %v5140_v31 = vunpack.c.h.bf16 %v2734_v60 }
  0xbe   : > { %v738_v28 = vadd.f32 %v737_v24, %v5137_v48  ;;  %v751_v19 = vadd.f32 %v750_v15, %v5138_v30  ;;  %v5141_v57 = vunpack.c.l.bf16 %v2844_v10  ;;  %v5142_v32 = vunpack.c.h.bf16 %v2844_v10 }
  0xbf   : > { %v764_v45 = vadd.f32 %v763_v6, %v5139_v49  ;;  %v777_v56 = vadd.f32 %v776_v22, %v5140_v31  ;;  %v5143_v54 = vunpack.c.l.bf16 %v2737_v61  ;;  %v5144_v41 = vunpack.c.h.bf16 %v2737_v61 }
  0xc0   : > { %v790_v33 = vadd.f32 %v789_v38, %v5141_v57  ;;  %v803_v5 = vadd.f32 %v802_v27, %v5142_v32  ;;  %v5145_v55 = vunpack.c.l.bf16 %v2744_v2  ;;  %v5146_v13 = vunpack.c.h.bf16 %v2744_v2 }
  0xc1   : > { %v713_v34 = vadd.f32 %v712_v29, %v5143_v54  ;;  %v726_v23 = vadd.f32 %v725_v35, %v5144_v41  ;;  %v5147_v60 = vunpack.c.l.bf16 %v2747_v3  ;;  %v5148_v37 = vunpack.c.h.bf16 %v2747_v3 }
  0xc2   : > { %v739_v36 = vadd.f32 %v738_v28, %v5145_v55  ;;  %v752_v26 = vadd.f32 %v751_v19, %v5146_v13  ;;  %v5149_v10 = vunpack.c.l.bf16 %v2857_v59  ;;  %v5150_v15 = vunpack.c.h.bf16 %v2857_v59 }
  0xc3   : > { %v765_v21 = vadd.f32 %v764_v45, %v5147_v60  ;;  %v778_v24 = vadd.f32 %v777_v56, %v5148_v37  ;;  %v5151_v61 = vunpack.c.l.bf16 %v2754_v8  ;;  %v5152_v17 = vunpack.c.h.bf16 %v2754_v8 }
  0xc4   : > { %v791_v58 = vadd.f32 %v790_v33, %v5149_v10  ;;  %v804_v42 = vadd.f32 %v803_v5, %v5150_v15  ;;  %v5153_v2 = vunpack.c.l.bf16 %v2757_v9  ;;  %v5154_v38 = vunpack.c.h.bf16 %v2757_v9 }
  0xc5   : > { %v714_v6 = vadd.f32 %v713_v34, %v5151_v61  ;;  %v727_v22 = vadd.f32 %v726_v23, %v5152_v17  ;;  %v5155_v3 = vunpack.c.l.bf16 %v2764_v14  ;;  %v5156_v43 = vunpack.c.h.bf16 %v2764_v14 }
  0xc6   : > { %v740_v16 = vadd.f32 %v739_v36, %v5153_v2  ;;  %v753_v25 = vadd.f32 %v752_v26, %v5154_v38  ;;  %v5157_v59 = vunpack.c.l.bf16 %v2874_v0  ;;  %v5158_v35 = vunpack.c.h.bf16 %v2874_v0 }
  0xc7   : > { %v766_v27 = vadd.f32 %v765_v21, %v5155_v3  ;;  %v779_v29 = vadd.f32 %v778_v24, %v5156_v43  ;;  %v715_v8 = vrot.slane %v714_v6, 4  ;;  %v728_v28 = vrot.slane %v727_v22, 4  ;;  %v3264_v21 = vld [vmem:[%s2649_s19 + $0x2f8] sm:$0xff] }
  0xc8   : > { %v792_v52 = vadd.f32 %v791_v58, %v5157_v59  ;;  %v805_v48 = vadd.f32 %v804_v42, %v5158_v35  ;;  %v741_v30 = vrot.slane %v740_v16, 4  ;;  %v754_v19 = vrot.slane %v753_v25, 4 }
  0xc9   : > { %v767_v49 = vrot.slane %v766_v27, 4  ;;  %v780_v45 = vrot.slane %v779_v29, 4  ;;  %v716_v56 = vadd.f32 %v715_v8, %v714_v6  ;;  %v729_v57 = vadd.f32 %v728_v28, %v727_v22 }
  0xca   : > { %v793_v9 = vrot.slane %v792_v52, 4  ;;  %v806_v31 = vrot.slane %v805_v48, 4  ;;  %v742_v33 = vadd.f32 %v741_v30, %v740_v16  ;;  %v755_v14 = vadd.f32 %v754_v19, %v753_v25 }
  0xcb   : > { %v768_v32 = vadd.f32 %v767_v49, %v766_v27  ;;  %v781_v5 = vadd.f32 %v780_v45, %v779_v29  ;;  %v717_v41 = vrot.slane %v716_v56, 2  ;;  %v730_v0 = vrot.slane %v729_v57, 2 }
  0xcc   : > { %v794_v54 = vadd.f32 %v793_v9, %v792_v52  ;;  %v807_v34 = vadd.f32 %v806_v31, %v805_v48  ;;  %v743_v23 = vrot.slane %v742_v33, 2  ;;  %v756_v55 = vrot.slane %v755_v14, 2 }
  0xcd   : > { %v769_v36 = vrot.slane %v768_v32, 2  ;;  %v782_v13 = vrot.slane %v781_v5, 2  ;;  %v718_v37 = vadd.f32 %v717_v41, %v716_v56  ;;  %v731_v24 = vadd.f32 %v730_v0, %v729_v57 }
  0xce   : > { %v795_v26 = vrot.slane %v794_v54, 2  ;;  %v808_v60 = vrot.slane %v807_v34, 2  ;;  %v744_v10 = vadd.f32 %v743_v23, %v742_v33  ;;  %v757_v58 = vadd.f32 %v756_v55, %v755_v14 }
  0xcf   : > { %v3266_v15 = vadd.f32 %v769_v36, %v768_v32  ;;  %v3268_v42 = vadd.f32 %v782_v13, %v781_v5  ;;  %v719_v17 = vrot.slane %v718_v37, 1  ;;  %v732_v22 = vrot.slane %v731_v24, 1 }
  0xd0   : > { %v796_v61 = vadd.f32 %v795_v26, %v794_v54  ;;  %v809_v6 = vadd.f32 %v808_v60, %v807_v34  ;;  %v745_v2 = vrot.slane %v744_v10, 1  ;;  %v758_v16 = vrot.slane %v757_v58, 1 }
  0xd1   : > { %v706_v38 = vunpack.c.l.bf16 %v3264_v21  ;;  %v707_v25 = vunpack.c.h.bf16 %v3264_v21  ;;  %v3272_v43 = vadd.f32 %v719_v17, %v718_v37  ;;  %v3274_v29 = vadd.f32 %v732_v22, %v731_v24 }
  0xd2   : > { %v797_v3 = vrot.slane %v796_v61, 1  ;;  %v810_v27 = vrot.slane %v809_v6, 1  ;;  %v771_v59 = vrot.slane %v3266_v15, 1  ;;  %v784_v52 = vrot.slane %v3268_v42, 1 }
  0xd3   : > { %v3278_v35 = vadd.f32 %v745_v2, %v744_v10  ;;  %v3280_v48 = vadd.f32 %v758_v16, %v757_v58  ;;  %v5159_v30 = vunpack.c.l.bf16 %v2774_v20  ;;  %v5160_v19 = vunpack.c.l.bf16 %v2787_v7 }
  0xd4   : > { %v3282_v8 = vadd.f32 %v797_v3, %v796_v61  ;;  %v3284_v28 = vadd.f32 %v810_v27, %v809_v6  ;;  %v5161_v45 = vunpack.c.h.bf16 %v2774_v20  ;;  %v5162_v9 = vunpack.c.h.bf16 %v2787_v7 }
  0xd5   : > { %v812_v49 = vadd.f32 %v5160_v19, %v5159_v30  ;;  %v5163_v56 = vunpack.c.l.bf16 %v2777_v11  ;;  %v5164_v57 = vunpack.c.l.bf16 %v2794_v12  ;;  %v5165_v14 = vunpack.c.h.bf16 %v2777_v11 }
  0xd6   : > { %v825_v31 = vadd.f32 %v5162_v9, %v5161_v45  ;;  %v5166_v32 = vunpack.c.h.bf16 %v2794_v12  ;;  %v5167_v54 = vunpack.c.l.bf16 %v2887_v44  ;;  %v5168_v34 = vunpack.c.l.bf16 %v2904_v50 }
  0xd7   : > { %v838_v33 = vadd.f32 %v5164_v57, %v5163_v56  ;;  %v5169_v20 = vunpack.c.h.bf16 %v2887_v44  ;;  %v5170_v7 = vunpack.c.h.bf16 %v2904_v50  ;;  %v5171_v23 = vunpack.c.l.bf16 %v2894_v53 }
  0xd8   : > { %v851_v5 = vadd.f32 %v5166_v32, %v5165_v14  ;;  %v864_v41 = vadd.f32 %v5168_v34, %v5167_v54  ;;  %v5172_v55 = vunpack.c.l.bf16 %v2907_v40  ;;  %v5173_v11 = vunpack.c.h.bf16 %v2894_v53 }
  0xd9   : > { %v877_v0 = vadd.f32 %v5170_v7, %v5169_v20  ;;  %v5174_v12 = vunpack.c.h.bf16 %v2907_v40  ;;  %v5175_v26 = vunpack.c.l.bf16 %v2804_v18  ;;  %v5176_v37 = vunpack.c.h.bf16 %v2804_v18 }
  0xda   : > { %v890_v36 = vadd.f32 %v5172_v55, %v5171_v23  ;;  %v5177_v44 = vunpack.c.l.bf16 %v2807_v1  ;;  %v5178_v10 = vunpack.c.h.bf16 %v2807_v1  ;;  %v5179_v61 = vunpack.c.l.bf16 %v2917_v39  ;;  %v5185_v1 = vld [vmem:[#allocation3_spill] sm:$0xff] }
  0xdb   : > { %v903_v13 = vadd.f32 %v5174_v12, %v5173_v11  ;;  %v813_v60 = vadd.f32 %v812_v49, %v5175_v26  ;;  %v826_v24 = vadd.f32 %v825_v31, %v5176_v37  ;;  %v5180_v53 = vunpack.c.h.bf16 %v2917_v39  ;;  %v5188_v39 = vld [vmem:[#allocation15_spill] sm:$0xff]  ;;  %v5200_v12 = vld [vmem:[#allocation18_spill] sm:$0xff] }
  0xdc   : > { %v839_v50 = vadd.f32 %v838_v33, %v5177_v44  ;;  %v852_v58 = vadd.f32 %v851_v5, %v5178_v10  ;;  %v865_v6 = vadd.f32 %v864_v41, %v5179_v61  ;;  %v5181_v40 = vunpack.c.l.bf16 %v2924_v4  ;;  %v5206_v61 = vld [vmem:[#allocation6_spill] sm:$0xff] }
  0xdd   : > { %v878_v17 = vadd.f32 %v877_v0, %v5180_v53  ;;  %v5182_v2 = vunpack.c.h.bf16 %v2924_v4  ;;  %v5183_v18 = vunpack.c.l.bf16 %v2817_v63  ;;  %v5184_v27 = vunpack.c.h.bf16 %v2817_v63  ;;  %v5191_v4 = vld [vmem:[#allocation16_spill] sm:$0xff]  ;;  %v5197_v0 = vld [vmem:[#allocation5_spill] sm:$0xff] }
  0xde   : > { %v891_v22 = vadd.f32 %v890_v36, %v5181_v40  ;;  %v5186_v19 = vunpack.c.l.bf16 %v5185_v1  ;;  %v5187_v45 = vunpack.c.h.bf16 %v5185_v1  ;;  %v5189_v31 = vunpack.c.l.bf16 %v5188_v39  ;;  %v5194_v63 = vld [vmem:[#allocation4_spill] sm:$0xff] }
  0xdf   : > { %v904_v16 = vadd.f32 %v903_v13, %v5182_v2  ;;  %v814_v3 = vadd.f32 %v813_v60, %v5183_v18  ;;  %v827_v30 = vadd.f32 %v826_v24, %v5184_v27  ;;  %v5190_v57 = vunpack.c.h.bf16 %v5188_v39  ;;  %v5203_v24 = vld [vmem:[#allocation19_spill] sm:$0xff]  ;;  %v5212_v27 = vld [vmem:[#allocation21_spill] sm:$0xff] }
  0xe0   : > { %v840_v49 = vadd.f32 %v839_v50, %v5186_v19  ;;  %v853_v9 = vadd.f32 %v852_v58, %v5187_v45  ;;  %v866_v56 = vadd.f32 %v865_v6, %v5189_v31  ;;  %v5192_v14 = vunpack.c.l.bf16 %v5191_v4  ;;  %v5215_v45 = vld [vmem:[#allocation22_spill] sm:$0xff] }
  0xe1   : > { %v879_v33 = vadd.f32 %v878_v17, %v5190_v57  ;;  %v5193_v5 = vunpack.c.h.bf16 %v5191_v4  ;;  %v5195_v34 = vunpack.c.l.bf16 %v5194_v63  ;;  %v5196_v20 = vunpack.c.h.bf16 %v5194_v63  ;;  %v5218_v57 = vld [vmem:[#allocation8_spill] sm:$0xff] }
  0xe2   : > { %v892_v32 = vadd.f32 %v891_v22, %v5192_v14  ;;  %v5198_v23 = vunpack.c.l.bf16 %v5197_v0  ;;  %v5199_v36 = vunpack.c.h.bf16 %v5197_v0  ;;  %v5201_v13 = vunpack.c.l.bf16 %v5200_v12  ;;  %v5209_v22 = vld [vmem:[#allocation7_spill] sm:$0xff] }
  0xe3   : > { %v905_v54 = vadd.f32 %v904_v16, %v5193_v5  ;;  %v815_v41 = vadd.f32 %v814_v3, %v5195_v34  ;;  %v828_v7 = vadd.f32 %v827_v30, %v5196_v20  ;;  %v5202_v60 = vunpack.c.h.bf16 %v5200_v12  ;;  %v5221_v5 = vld [vmem:[#allocation9_spill] sm:$0xff]  ;;  %v5224_v20 = vld [vmem:[#allocation24_spill] sm:$0xff] }
  0xe4   : > { %v841_v55 = vadd.f32 %v840_v49, %v5198_v23  ;;  %v854_v11 = vadd.f32 %v853_v9, %v5199_v36  ;;  %v867_v26 = vadd.f32 %v866_v56, %v5201_v13  ;;  %v5204_v44 = vunpack.c.l.bf16 %v5203_v24  ;;  %v5227_v36 = vld [vmem:[#allocation25_spill] sm:$0xff] }
  0xe5   : > { %v880_v37 = vadd.f32 %v879_v33, %v5202_v60  ;;  %v5205_v10 = vunpack.c.h.bf16 %v5203_v24  ;;  %v5207_v6 = vunpack.c.l.bf16 %v5206_v61  ;;  %v5208_v17 = vunpack.c.h.bf16 %v5206_v61  ;;  %v5230_v60 = vld [vmem:[#allocation10_spill] sm:$0xff] }
  0xe6   : > { %v893_v50 = vadd.f32 %v892_v32, %v5204_v44  ;;  %v5210_v2 = vunpack.c.l.bf16 %v5209_v22  ;;  %v5211_v18 = vunpack.c.h.bf16 %v5209_v22  ;;  %v5213_v30 = vunpack.c.l.bf16 %v5212_v27 }
  0xe7   : > { %v906_v58 = vadd.f32 %v905_v54, %v5205_v10  ;;  %v816_v53 = vadd.f32 %v815_v41, %v5207_v6  ;;  %v829_v40 = vadd.f32 %v828_v7, %v5208_v17  ;;  %v5214_v19 = vunpack.c.h.bf16 %v5212_v27  ;;  %v5233_v10 = vld [vmem:[#allocation11_spill] sm:$0xff] }
  0xe8   : > { %v842_v16 = vadd.f32 %v841_v55, %v5210_v2  ;;  %v855_v3 = vadd.f32 %v854_v11, %v5211_v18  ;;  %v868_v1 = vadd.f32 %v867_v26, %v5213_v30  ;;  %v5216_v9 = vunpack.c.l.bf16 %v5215_v45  ;;  %v5236_v17 = vld [vmem:[#allocation27_spill] sm:$0xff]  ;;  %v5239_v18 = vld [vmem:[#allocation28_spill] sm:$0xff] }
  0xe9   : > { %v881_v49 = vadd.f32 %v880_v37, %v5214_v19  ;;  %v5217_v31 = vunpack.c.h.bf16 %v5215_v45  ;;  %v5219_v33 = vunpack.c.l.bf16 %v5218_v57  ;;  %v5220_v14 = vunpack.c.h.bf16 %v5218_v57 }
  0xea   : > { %v894_v39 = vadd.f32 %v893_v50, %v5216_v9  ;;  %v5222_v54 = vunpack.c.l.bf16 %v5221_v5  ;;  %v5223_v34 = vunpack.c.h.bf16 %v5221_v5  ;;  %v5225_v7 = vunpack.c.l.bf16 %v5224_v20 }
  0xeb   : > { %v907_v56 = vadd.f32 %v906_v58, %v5217_v31  ;;  %v817_v4 = vadd.f32 %v816_v53, %v5219_v33  ;;  %v830_v32 = vadd.f32 %v829_v40, %v5220_v14  ;;  %v5226_v23 = vunpack.c.h.bf16 %v5224_v20 }
  0xec   : > { %v843_v63 = vadd.f32 %v842_v16, %v5222_v54  ;;  %v856_v41 = vadd.f32 %v855_v3, %v5223_v34  ;;  %v869_v0 = vadd.f32 %v868_v1, %v5225_v7  ;;  %v5228_v11 = vunpack.c.l.bf16 %v5227_v36 }
  0xed   : > { %v882_v55 = vadd.f32 %v881_v49, %v5226_v23  ;;  %v5229_v13 = vunpack.c.h.bf16 %v5227_v36  ;;  %v5231_v37 = vunpack.c.l.bf16 %v5230_v60  ;;  %v5232_v44 = vunpack.c.h.bf16 %v5230_v60 }
  0xee   : > { %v895_v12 = vadd.f32 %v894_v39, %v5228_v11  ;;  %v5234_v58 = vunpack.c.l.bf16 %v5233_v10  ;;  %v5235_v6 = vunpack.c.h.bf16 %v5233_v10  ;;  %v5237_v40 = vunpack.c.l.bf16 %v5236_v17 }
  0xef   : > { %v908_v26 = vadd.f32 %v907_v56, %v5229_v13  ;;  %v818_v24 = vadd.f32 %v817_v4, %v5231_v37  ;;  %v831_v50 = vadd.f32 %v830_v32, %v5232_v44  ;;  %v5238_v2 = vunpack.c.h.bf16 %v5236_v17 }
  0xf0   : > { %v844_v61 = vadd.f32 %v843_v63, %v5234_v58  ;;  %v857_v53 = vadd.f32 %v856_v41, %v5235_v6  ;;  %v870_v22 = vadd.f32 %v869_v0, %v5237_v40  ;;  %v5240_v3 = vunpack.c.l.bf16 %v5239_v18 }
  0xf1   : > { %v883_v16 = vadd.f32 %v882_v55, %v5238_v2  ;;  %v5241_v30 = vunpack.c.h.bf16 %v5239_v18  ;;  %v819_v19 = vrot.slane %v818_v24, 4  ;;  %v832_v49 = vrot.slane %v831_v50, 4 }
  0xf2   : > { %v896_v27 = vadd.f32 %v895_v12, %v5240_v3  ;;  %v845_v45 = vrot.slane %v844_v61, 4  ;;  %v858_v9 = vrot.slane %v857_v53, 4  ;;  %v871_v39 = vrot.slane %v870_v22, 4 }
  0xf3   : > { %v909_v1 = vadd.f32 %v908_v26, %v5241_v30  ;;  %v884_v31 = vrot.slane %v883_v16, 4  ;;  %v820_v33 = vadd.f32 %v819_v19, %v818_v24  ;;  %v833_v4 = vadd.f32 %v832_v49, %v831_v50  ;;  %v5242_v49 = vld [vmem:[#allocation12_spill] sm:$0xff] }
  0xf4   : > { %v897_v56 = vrot.slane %v896_v27, 4  ;;  %v846_v14 = vadd.f32 %v845_v45, %v844_v61  ;;  %v859_v32 = vadd.f32 %v858_v9, %v857_v53  ;;  %v872_v5 = vadd.f32 %v871_v39, %v870_v22  ;;  %v5244_v9 = vld [vmem:[#allocation13_spill] sm:$0xff] }
  0xf5   : > { %v910_v57 = vrot.slane %v909_v1, 4  ;;  %v885_v54 = vadd.f32 %v884_v31, %v883_v16  ;;  %v821_v41 = vrot.slane %v820_v33, 2  ;;  %v834_v20 = vrot.slane %v833_v4, 2 }
  0xf6   : > { %v898_v63 = vadd.f32 %v897_v56, %v896_v27  ;;  %v847_v7 = vrot.slane %v846_v14, 2  ;;  %v860_v0 = vrot.slane %v859_v32, 2  ;;  %v873_v23 = vrot.slane %v872_v5, 2 }
  0xf7   : > { %v911_v34 = vadd.f32 %v910_v57, %v909_v1  ;;  %v886_v55 = vrot.slane %v885_v54, 2  ;;  %v822_v12 = vadd.f32 %v821_v41, %v820_v33  ;;  %v835_v13 = vadd.f32 %v834_v20, %v833_v4  ;;  %v5248_v4 = vld [vmem:[#allocation30_spill] sm:$0xff]  ;;  %v5254_v20 = vld [vmem:[#allocation31_spill] sm:$0xff] }
  0xf8   : > { %v899_v36 = vrot.slane %v898_v63, 2  ;;  %v848_v26 = vadd.f32 %v847_v7, %v846_v14  ;;  %v861_v60 = vadd.f32 %v860_v0, %v859_v32  ;;  %v874_v37 = vadd.f32 %v873_v23, %v872_v5  ;;  %v5250_v32 = vld [vmem:[#allocation33_spill] sm:$0xff]  ;;  %v5256_v0 = vld [vmem:[#allocation34_spill] sm:$0xff] }
  0xf9   : > { %v912_v11 = vrot.slane %v911_v34, 2  ;;  %v887_v24 = vadd.f32 %v886_v55, %v885_v54  ;;  %v823_v10 = vrot.slane %v822_v12, 1  ;;  %v836_v58 = vrot.slane %v835_v13, 1 }
  0xfa   : > { %v900_v44 = vadd.f32 %v899_v36, %v898_v63  ;;  %v849_v61 = vrot.slane %v848_v26, 1  ;;  %v862_v6 = vrot.slane %v861_v60, 1  ;;  %v875_v53 = vrot.slane %v874_v37, 1 }
  0xfb   : > { %v913_v50 = vadd.f32 %v912_v11, %v911_v34  ;;  %v888_v17 = vrot.slane %v887_v24, 1  ;;  %v3414_v2 = vadd.f32 %v823_v10, %v822_v12  ;;  %v3416_v16 = vadd.f32 %v836_v58, %v835_v13  ;;  %v5260_v13 = vld [vmem:[#allocation32_spill] sm:$0xff]  ;;  %v5266_v58 = vld [vmem:[#allocation14_spill] sm:$0xff] }
  0xfc   : > { %v901_v40 = vrot.slane %v900_v44, 1  ;;  %v3418_v18 = vadd.f32 %v849_v61, %v848_v26  ;;  %v3420_v3 = vadd.f32 %v862_v6, %v861_v60  ;;  %v3422_v27 = vadd.f32 %v875_v53, %v874_v37  ;;  %v5262_v60 = vld [vmem:[#allocation35_spill] sm:$0xff] }
  0xfd   : > { %v914_v22 = vrot.slane %v913_v50, 1  ;;  %v3424_v30 = vadd.f32 %v888_v17, %v887_v24  ;;  %v5243_v45 = vunpack.c.l.bf16 %v5242_v49  ;;  %v5245_v39 = vunpack.c.l.bf16 %v5244_v9 }
  0xfe   : > { %v3426_v1 = vadd.f32 %v901_v40, %v900_v44  ;;  %v5246_v56 = vunpack.c.h.bf16 %v5242_v49  ;;  %v5247_v57 = vunpack.c.h.bf16 %v5244_v9  ;;  %v5249_v14 = vunpack.c.l.bf16 %v5248_v4  ;;  %v5269_v40 = vld [vmem:[#allocation36_spill] sm:$0xff] }
  0xff   : > { %v3428_v19 = vadd.f32 %v914_v22, %v913_v50  ;;  %v916_v31 = vadd.f32 %v5245_v39, %v5243_v45  ;;  %v5251_v5 = vunpack.c.l.bf16 %v5250_v32  ;;  %v5252_v63 = vunpack.c.h.bf16 %v5248_v4  ;;  %v5272_v39 = vld [vmem:[#allocation37_spill] sm:$0xff] }
 0x100   : > { %v929_v33 = vadd.f32 %v5247_v57, %v5246_v56  ;;  %v5253_v34 = vunpack.c.h.bf16 %v5250_v32  ;;  %v5255_v7 = vunpack.c.l.bf16 %v5254_v20  ;;  %v5257_v23 = vunpack.c.l.bf16 %v5256_v0  ;;  %v5275_v32 = vld [vmem:[#allocation38_spill] sm:$0xff] }
 0x101   : > { %v942_v54 = vadd.f32 %v5251_v5, %v5249_v14  ;;  %v5258_v36 = vunpack.c.h.bf16 %v5254_v20  ;;  %v5259_v11 = vunpack.c.h.bf16 %v5256_v0  ;;  %v5261_v26 = vunpack.c.l.bf16 %v5260_v13  ;;  %v5278_v20 = vld [vmem:[#allocation17_spill] sm:$0xff] }
 0x102   : > { %v955_v41 = vadd.f32 %v5253_v34, %v5252_v63  ;;  %v968_v55 = vadd.f32 %v5257_v23, %v5255_v7  ;;  %v5263_v37 = vunpack.c.l.bf16 %v5262_v60  ;;  %v5264_v44 = vunpack.c.h.bf16 %v5260_v13  ;;  %v5281_v23 = vld [vmem:[#allocation39_spill] sm:$0xff]  ;;  %v5284_v13 = vld [vmem:[#allocation40_spill] sm:$0xff] }
 0x103   : > { %v981_v12 = vadd.f32 %v5259_v11, %v5258_v36  ;;  %v5265_v50 = vunpack.c.h.bf16 %v5262_v60  ;;  %v5267_v61 = vunpack.c.l.bf16 %v5266_v58  ;;  %v5268_v53 = vunpack.c.h.bf16 %v5266_v58  ;;  %v5289_v58 = vld [vmem:[#allocation20_spill] sm:$0xff] }
 0x104   : > { %v994_v24 = vadd.f32 %v5263_v37, %v5261_v26  ;;  %v5270_v22 = vunpack.c.l.bf16 %v5269_v40  ;;  %v5271_v45 = vunpack.c.h.bf16 %v5269_v40  ;;  %v5273_v56 = vunpack.c.l.bf16 %v5272_v39  ;;  %v5292_v40 = vld [vmem:[#allocation41_spill] sm:$0xff] }
 0x105   : > { %v1007_v10 = vadd.f32 %v5265_v50, %v5264_v44  ;;  %v917_v6 = vadd.f32 %v916_v31, %v5267_v61  ;;  %v930_v17 = vadd.f32 %v929_v33, %v5268_v53  ;;  %v5274_v4 = vunpack.c.h.bf16 %v5272_v39  ;;  %v5295_v39 = vld [vmem:[#allocation42_spill] sm:$0xff] }
 0x106   : > { %v943_v49 = vadd.f32 %v942_v54, %v5270_v22  ;;  %v956_v9 = vadd.f32 %v955_v41, %v5271_v45  ;;  %v969_v57 = vadd.f32 %v968_v55, %v5273_v56  ;;  %v5276_v5 = vunpack.c.l.bf16 %v5275_v32 }
 0x107   : > { %v982_v14 = vadd.f32 %v981_v12, %v5274_v4  ;;  %v5277_v31 = vunpack.c.h.bf16 %v5275_v32  ;;  %v5279_v33 = vunpack.c.l.bf16 %v5278_v20  ;;  %v5280_v54 = vunpack.c.h.bf16 %v5278_v20 }
 0x108   : > { %v995_v63 = vadd.f32 %v994_v24, %v5276_v5  ;;  %v5282_v41 = vunpack.c.l.bf16 %v5281_v23  ;;  %v5283_v55 = vunpack.c.h.bf16 %v5281_v23  ;;  %v5285_v12 = vunpack.c.l.bf16 %v5284_v13 }
 0x109   : > { %v1008_v34 = vadd.f32 %v1007_v10, %v5277_v31  ;;  %v918_v7 = vadd.f32 %v917_v6, %v5279_v33  ;;  %v931_v0 = vadd.f32 %v930_v17, %v5280_v54  ;;  %v5286_v60 = vunpack.c.h.bf16 %v5284_v13 }
 0x10a   : > { %v944_v36 = vadd.f32 %v943_v49, %v5282_v41  ;;  %v957_v11 = vadd.f32 %v956_v9, %v5283_v55  ;;  %v970_v26 = vadd.f32 %v969_v57, %v5285_v12  ;;  %v5287_v24 = vunpack.c.l.bf16 %v3064_v62 }
 0x10b   : > { %v983_v37 = vadd.f32 %v982_v14, %v5286_v60  ;;  %v5288_v50 = vunpack.c.h.bf16 %v3064_v62  ;;  %v5290_v61 = vunpack.c.l.bf16 %v5289_v58  ;;  %v5291_v53 = vunpack.c.h.bf16 %v5289_v58  ;;  %v5298_v62 = vld [vmem:[#allocation43_spill] sm:$0xff] }
 0x10c   : > { %v996_v44 = vadd.f32 %v995_v63, %v5287_v24  ;;  %v5293_v22 = vunpack.c.l.bf16 %v5292_v40  ;;  %v5294_v45 = vunpack.c.h.bf16 %v5292_v40  ;;  %v5296_v56 = vunpack.c.l.bf16 %v5295_v39 }
 0x10d   : > { %v1009_v10 = vadd.f32 %v1008_v34, %v5288_v50  ;;  %v919_v6 = vadd.f32 %v918_v7, %v5290_v61  ;;  %v932_v17 = vadd.f32 %v931_v0, %v5291_v53  ;;  %v5297_v4 = vunpack.c.h.bf16 %v5295_v39  ;;  %v5301_v34 = vld [vmem:[#allocation23_spill] sm:$0xff] }
 0x10e   : > { %v945_v49 = vadd.f32 %v944_v36, %v5293_v22  ;;  %v958_v9 = vadd.f32 %v957_v11, %v5294_v45  ;;  %v971_v57 = vadd.f32 %v970_v26, %v5296_v56  ;;  %v5299_v32 = vunpack.c.l.bf16 %v5298_v62 }
 0x10f   : > { %v984_v14 = vadd.f32 %v983_v37, %v5297_v4  ;;  %v5300_v63 = vunpack.c.h.bf16 %v5298_v62  ;;  %v5302_v20 = vunpack.c.l.bf16 %v5301_v34  ;;  %v5303_v7 = vunpack.c.h.bf16 %v5301_v34 }
 0x110   : > { %v997_v5 = vadd.f32 %v996_v44, %v5299_v32  ;;  %v5304_v0 = vunpack.c.l.bf16 %v3084_v46  ;;  %v5305_v41 = vunpack.c.h.bf16 %v3084_v46  ;;  %v5306_v55 = vunpack.c.l.bf16 %v3087_v47  ;;  %v5310_v44 = vld [vmem:[#allocation26_spill] sm:$0xff]  ;;  %v5313_v46 = vld [vmem:[#allocation44_spill] sm:$0xff] }
 0x111   : > { %v1010_v31 = vadd.f32 %v1009_v10, %v5300_v63  ;;  %v920_v33 = vadd.f32 %v919_v6, %v5302_v20  ;;  %v933_v54 = vadd.f32 %v932_v17, %v5303_v7  ;;  %v5307_v13 = vunpack.c.h.bf16 %v3087_v47  ;;  %v5316_v47 = vld [vmem:[#allocation45_spill] sm:$0xff] }
 0x112   : > { %v946_v23 = vadd.f32 %v945_v49, %v5304_v0  ;;  %v959_v36 = vadd.f32 %v958_v9, %v5305_v41  ;;  %v972_v11 = vadd.f32 %v971_v57, %v5306_v55  ;;  %v5308_v26 = vunpack.c.l.bf16 %v3094_v51 }
 0x113   : > { %v985_v12 = vadd.f32 %v984_v14, %v5307_v13  ;;  %v5309_v37 = vunpack.c.h.bf16 %v3094_v51  ;;  %v5311_v50 = vunpack.c.l.bf16 %v5310_v44  ;;  %v5312_v58 = vunpack.c.h.bf16 %v5310_v44  ;;  %v5319_v51 = vld [vmem:[#allocation46_spill] sm:$0xff]  ;;  %v5322_v14 = vld [vmem:[#allocation29_spill] sm:$0xff] }
 0x114   : > { %v998_v60 = vadd.f32 %v997_v5, %v5308_v26  ;;  %v5314_v6 = vunpack.c.l.bf16 %v5313_v46  ;;  %v5315_v17 = vunpack.c.h.bf16 %v5313_v46  ;;  %v5317_v22 = vunpack.c.l.bf16 %v5316_v47 }
 0x115   : > { %v1011_v24 = vadd.f32 %v1010_v31, %v5309_v37  ;;  %v921_v10 = vadd.f32 %v920_v33, %v5311_v50  ;;  %v934_v61 = vadd.f32 %v933_v54, %v5312_v58  ;;  %v5318_v45 = vunpack.c.h.bf16 %v5316_v47  ;;  %v5325_v31 = vld [vmem:[#allocation47_spill] sm:$0xff]  ;;  %v5328_v54 = vld [vmem:[#allocation48_spill] sm:$0xff] }
 0x116   : > { %v947_v53 = vadd.f32 %v946_v23, %v5314_v6  ;;  %v960_v40 = vadd.f32 %v959_v36, %v5315_v17  ;;  %v973_v49 = vadd.f32 %v972_v11, %v5317_v22  ;;  %v5320_v39 = vunpack.c.l.bf16 %v5319_v51 }
 0x117   : > { %v986_v9 = vadd.f32 %v985_v12, %v5318_v45  ;;  %v5321_v57 = vunpack.c.h.bf16 %v5319_v51  ;;  %v5323_v62 = vunpack.c.l.bf16 %v5322_v14  ;;  %v5324_v5 = vunpack.c.h.bf16 %v5322_v14 }
 0x118   : > { %v999_v56 = vadd.f32 %v998_v60, %v5320_v39  ;;  %v5326_v34 = vunpack.c.l.bf16 %v5325_v31  ;;  %v5327_v33 = vunpack.c.h.bf16 %v5325_v31  ;;  %v5329_v0 = vunpack.c.l.bf16 %v5328_v54 }
 0x119   : > { %v1012_v4 = vadd.f32 %v1011_v24, %v5321_v57  ;;  %v922_v32 = vadd.f32 %v921_v10, %v5323_v62  ;;  %v935_v63 = vadd.f32 %v934_v61, %v5324_v5  ;;  %v5330_v41 = vunpack.c.h.bf16 %v5328_v54 }
 0x11a   : > { %v948_v20 = vadd.f32 %v947_v53, %v5326_v34  ;;  %v961_v7 = vadd.f32 %v960_v40, %v5327_v33  ;;  %v974_v23 = vadd.f32 %v973_v49, %v5329_v0  ;;  %v1000_v55 = vadd.f32 %v999_v56, %v706_v38 }
 0x11b   : > { %v987_v36 = vadd.f32 %v986_v9, %v5330_v41  ;;  %v1013_v11 = vadd.f32 %v1012_v4, %v707_v25  ;;  %v923_v13 = vrot.slane %v922_v32, 4  ;;  %v936_v12 = vrot.slane %v935_v63, 4 }
 0x11c   : > { %v949_v26 = vrot.slane %v948_v20, 4  ;;  %v962_v60 = vrot.slane %v961_v7, 4  ;;  %v975_v37 = vrot.slane %v974_v23, 4  ;;  %v1001_v44 = vrot.slane %v1000_v55, 4 }
 0x11d   : > { %v988_v24 = vrot.slane %v987_v36, 4  ;;  %v1014_v50 = vrot.slane %v1013_v11, 4  ;;  %v924_v10 = vadd.f32 %v923_v13, %v922_v32  ;;  %v937_v58 = vadd.f32 %v936_v12, %v935_v63 }
 0x11e   : > { %v950_v61 = vadd.f32 %v949_v26, %v948_v20  ;;  %v963_v46 = vadd.f32 %v962_v60, %v961_v7  ;;  %v976_v6 = vadd.f32 %v975_v37, %v974_v23  ;;  %v1002_v17 = vadd.f32 %v1001_v44, %v1000_v55 }
 0x11f   : > { %v989_v53 = vadd.f32 %v988_v24, %v987_v36  ;;  %v1015_v40 = vadd.f32 %v1014_v50, %v1013_v11  ;;  %v925_v38 = vrot.slane %v924_v10, 2  ;;  %v938_v47 = vrot.slane %v937_v58, 2 }
 0x120   : > { %v951_v21 = vrot.slane %v950_v61, 2  ;;  %v964_v25 = vrot.slane %v963_v46, 2  ;;  %v977_v22 = vrot.slane %v976_v6, 2  ;;  %v1003_v45 = vrot.slane %v1002_v17, 2 }
 0x121   : > { %v990_v49 = vrot.slane %v989_v53, 2  ;;  %v1016_v9 = vrot.slane %v1015_v40, 2  ;;  %v926_v51 = vadd.f32 %v925_v38, %v924_v10  ;;  %v939_v39 = vadd.f32 %v938_v47, %v937_v58 }
 0x122   : > { %v952_v56 = vadd.f32 %v951_v21, %v950_v61  ;;  %v965_v57 = vadd.f32 %v964_v25, %v963_v46  ;;  %v978_v4 = vadd.f32 %v977_v22, %v976_v6  ;;  %v1004_v62 = vadd.f32 %v1003_v45, %v1002_v17  ;;  %v417_v61 = vld [vmem:[%s2647_s18] sm:$0xff]  ;;  %v418_v21 = vld [vmem:[%s2647_s18 + $0x8] sm:$0xff]  ;;  %v419_v45 = vld [vmem:[%s2647_s18 + $0x10] sm:$0xff] }
 0x123   : > { %v991_v14 = vadd.f32 %v990_v49, %v989_v53  ;;  %v1017_v32 = vadd.f32 %v1016_v9, %v1015_v40  ;;  %v927_v5 = vrot.slane %v926_v51, 1  ;;  %v940_v63 = vrot.slane %v939_v39, 1 }
 0x124   : > { %v953_v31 = vrot.slane %v952_v56, 1  ;;  %v966_v34 = vrot.slane %v965_v57, 1  ;;  %v979_v20 = vrot.slane %v978_v4, 1  ;;  %v1005_v7 = vrot.slane %v1004_v62, 1 }
 0x125   : > { %v992_v33 = vrot.slane %v991_v14, 1  ;;  %v1018_v54 = vrot.slane %v1017_v32, 1  ;;  %v928_v0 = vadd.f32 %v927_v5, %v926_v51  ;;  %v941_v23 = vadd.f32 %v940_v63, %v939_v39 }
 0x126   : > { %v954_v41 = vadd.f32 %v953_v31, %v952_v56  ;;  %v967_v36 = vadd.f32 %v966_v34, %v965_v57  ;;  %v772_v55 = vadd.f32 %v771_v59, %v3266_v15  ;;  %v785_v11 = vadd.f32 %v784_v52, %v3268_v42 }
 0x127   : > { %v980_v13 = vadd.f32 %v979_v20, %v978_v4  ;;  %v993_v12 = vadd.f32 %v992_v33, %v991_v14  ;;  %v1006_v26 = vadd.f32 %v1005_v7, %v1004_v62  ;;  %v1019_v60 = vadd.f32 %v1018_v54, %v1017_v32 }
 0x128   : > { %v1044_v37 = vcombine.low %v3272_v43, %v3274_v29  ;;  %v1047_v24 = vcombine.low %v3282_v8, %v3284_v28  ;;  %v1045_v44 = vcombine.low %v3278_v35, %v3280_v48  ;;  %v1048_v15 = vcombine.low %v3414_v2, %v3416_v16 }
 0x129   : > { %v1050_v59 = vcombine.low %v3422_v27, %v3424_v30  ;;  %v1051_v42 = vcombine.low %v3426_v1, %v3428_v19  ;;  %v1049_v52 = vcombine.low %v3418_v18, %v3420_v3  ;;  %v1052_v50 = vcombine.low %v928_v0, %v941_v23 }
 0x12a   : > { %v1053_v43 = vcombine.low %v954_v41, %v967_v36  ;;  %v1054_v29 = vcombine.low %v980_v13, %v993_v12  ;;  %v1056_v10 = vrot.slane %v1047_v24, 7  ;;  %v1046_v35 = vcombine.low %v772_v55, %v785_v11 }
 0x12b   : > { %v1061_v8 = vrot.slane %v1050_v59, 6  ;;  %v1055_v48 = vcombine.low %v1006_v26, %v1019_v60  ;;  %v1071_v16 = vrot.slane %v1048_v15, 7  ;;  %v1074_v27 = vrot.slane %v1051_v42, 6 }
 0x12c   : > { %v1058_v28 = vsel %vm1057_vm0, %v1056_v10, %v1044_v37  ;;  %v1066_v2 = vrot.slane %v1053_v43, 5  ;;  %v1080_v18 = vrot.slane %v1049_v52, 7  ;;  %v1083_v3 = vrot.slane %v1052_v50, 6 }
 0x12d   : > { %v1060_v30 = vsel %vm1059_vm1, %v1056_v10, %v1058_v28  ;;  %v1072_v19 = vsel %vm1057_vm0, %v1071_v16, %v1045_v44  ;;  %v1077_v58 = vrot.slane %v1054_v29, 5  ;;  %v1086_v17 = vrot.slane %v1055_v48, 5 }
 0x12e   : > { %v1063_v1 = vsel %vm1062_vm2, %v1061_v8, %v1060_v30  ;;  %v1073_v6 = vsel %vm1059_vm1, %v1071_v16, %v1072_v19  ;;  %v1081_v53 = vsel %vm1057_vm0, %v1080_v18, %v1046_v35 }
 0x12f   : > { %v1065_v46 = vsel %vm1064_vm3, %v1061_v8, %v1063_v1  ;;  %v1075_v38 = vsel %vm1062_vm2, %v1074_v27, %v1073_v6  ;;  %v1082_v47 = vsel %vm1059_vm1, %v1080_v18, %v1081_v53 }
 0x130   : > { %v1068_v40 = vsel %vm1067_vm4, %v1066_v2, %v1065_v46  ;;  %v1076_v22 = vsel %vm1064_vm3, %v1074_v27, %v1075_v38  ;;  %v1084_v49 = vsel %vm1062_vm2, %v1083_v3, %v1082_v47 }
 0x131   : > { %v1070_v25 = vsel %vm1069_vm5, %v1066_v2, %v1068_v40  ;;  %v1078_v9 = vsel %vm1067_vm4, %v1077_v58, %v1076_v22  ;;  %v1085_v51 = vsel %vm1064_vm3, %v1083_v3, %v1084_v49 }
 0x132   : > { %v1092_v39 = vadd.f32 %v1070_v25, %v417_v61  ;;  %v1079_v56 = vsel %vm1069_vm5, %v1077_v58, %v1078_v9  ;;  %v1087_v57 = vsel %vm1067_vm4, %v1086_v17, %v1085_v51 }
 0x133   : > { %v1088_v4 = vsel %vm1069_vm5, %v1086_v17, %v1087_v57  ;;  %v1093_v14 = vadd.f32 %v1079_v56, %v418_v21 }
 0x134   : > { %1095 = vst [vmem:[%s2647_s18] sm:$0xff] %v1092_v39  ;;  %v1094_v62 = vadd.f32 %v1088_v4, %v419_v45 }
 0x135   : > { %1096 = vst [vmem:[%s2647_s18 + $0x8] sm:$0xff] %v1093_v14 }
 0x136   : > { %1097 = vst [vmem:[%s2647_s18 + $0x10] sm:$0xff] %v1094_v62 }
 0x137 PF: > { %p2079_p9 = scmp.ge.s32.totalorder %s2657_s23, 64 }
 0x139   : > { %1101 = sbr.rel (%p2079_p9) target bundleno = 507 (0x1fb), region = 66 }
 0x13e   : > { %v1102_v32 = vlaneseq  ;;  %v3604_v31 = vstv %s2657_s23  ;;  %v1120_v54 = vld [vmem:[%s2649_s19] sm:$0xff]  ;;  %v1121_v0 = vld [vmem:[%s2649_s19 + $0x8] sm:$0xff]  ;;  %v1122_v36 = vld [vmem:[%s2649_s19 + $0x10] sm:$0xff] }
 0x13f   : > { %v1123_v55 = vld [vmem:[%s2649_s19 + $0x18] sm:$0xff]  ;;  %v1124_v11 = vld [vmem:[%s2649_s19 + $0x20] sm:$0xff]  ;;  %v1125_v13 = vld [vmem:[%s2649_s19 + $0x28] sm:$0xff] }
 0x140   : > { %v1103_v5 = vshrl.u32 %v1102_v32, 7  ;;  %v1126_v12 = vld [vmem:[%s2649_s19 + $0x30] sm:$0xff]  ;;  %v1127_v26 = vld [vmem:[%s2649_s19 + $0x38] sm:$0xff]  ;;  %v1128_v60 = vld [vmem:[%s2649_s19 + $0x40] sm:$0xff] }
 0x141   : > { %v1129_v37 = vld [vmem:[%s2649_s19 + $0x48] sm:$0xff]  ;;  %v1130_v24 = vld [vmem:[%s2649_s19 + $0x50] sm:$0xff]  ;;  %v1144_v44 = vld [vmem:[%s2649_s19 + $0xc0] sm:$0xff] }
 0x142   : > { %v1104_v63 = vadd.s32 8, %v1103_v5  ;;  %v1105_v34 = vadd.s32 16, %v1103_v5  ;;  %v1106_v20 = vadd.s32 24, %v1103_v5  ;;  %v1107_v33 = vadd.s32 32, %v1103_v5  ;;  %v1131_v15 = vld [vmem:[%s2649_s19 + $0x58] sm:$0xff]  ;;  %v1132_v59 = vld [vmem:[%s2649_s19 + $0x60] sm:$0xff] }
 0x143   : > { %v3606_v7 = vadd.s32 40, %v1103_v5  ;;  %v3610_v23 = vadd.s32 48, %v1103_v5  ;;  %v3612_v41 = vadd.s32 56, %v1103_v5  ;;  %vm1112_vm6 = vcmp.lt.s32.totalorder %v1103_v5, %v3604_v31  ;;  %v1133_v42 = vld [vmem:[%s2649_s19 + $0x68] sm:$0xff]  ;;  %v1134_v43 = vld [vmem:[%s2649_s19 + $0x70] sm:$0xff]  ;;  %v1135_v29 = vld [vmem:[%s2649_s19 + $0x78] sm:$0xff] }
 0x144   : > { %vm1113_vm7 = vcmp.lt.s32.totalorder %v1104_v63, %v3604_v31  ;;  %vm1114_vm8 = vcmp.lt.s32.totalorder %v1105_v34, %v3604_v31  ;;  %vm1115_vm9 = vcmp.lt.s32.totalorder %v1106_v20, %v3604_v31  ;;  %vm1116_vm10 = vcmp.lt.s32.totalorder %v1107_v33, %v3604_v31  ;;  %v1145_v52 = vld [vmem:[%s2649_s19 + $0xc8] sm:$0xff]  ;;  %vm3638_vm12 = vmpackc.low %vm1112_vm6, %vm1112_vm6  ;;  %v1136_v10 = vld [vmem:[%s2649_s19 + $0x80] sm:$0xff] }
 0x145   : > { %vm1117_vm11 = vcmp.lt.s32.totalorder %v3606_v7, %v3604_v31  ;;  %vm1118_vm13 = vcmp.lt.s32.totalorder %v3610_v23, %v3604_v31  ;;  %vm1119_vm14 = vcmp.lt.s32.totalorder %v3612_v41, %v3604_v31  ;;  %v1146_v8 = vld [vmem:[%s2649_s19 + $0xd0] sm:$0xff]  ;;  %vm3653_vm15 = vmpackc.low %vm1113_vm7, %vm1113_vm7  ;;  %v3659_v48 = vsel %vm3638_vm12, %v1120_v54, 0  ;;  %v1137_v2 = vld [vmem:[%s2649_s19 + $0x88] sm:$0xff] }
 0x146   : > { %v3663_v28 = vsel %vm3638_vm12, %v1121_v0, 0  ;;  %v1138_v16 = vld [vmem:[%s2649_s19 + $0x90] sm:$0xff]  ;;  %v1139_v27 = vld [vmem:[%s2649_s19 + $0x98] sm:$0xff]  ;;  %v1148_v18 = vld [vmem:[%s2649_s19 + $0xe0] sm:$0xff]  ;;  %v3679_v1 = vsel %vm3638_vm12, %v1122_v36, 0  ;;  %v3683_v19 = vsel %vm3653_vm15, %v1123_v55, 0 }
 0x147   : > { %v1147_v30 = vld [vmem:[%s2649_s19 + $0xd8] sm:$0xff]  ;;  %vm3673_vm0 = vmpackc.low %vm1114_vm8, %vm1114_vm8  ;;  %v3687_v58 = vsel %vm3653_vm15, %v1124_v11, 0  ;;  %v3691_v61 = vsel %vm3638_vm12, %v1144_v44, 0  ;;  %v1140_v46 = vld [vmem:[%s2649_s19 + $0xa0] sm:$0xff]  ;;  %v3707_v47 = vsel %vm3653_vm15, %v1125_v13, 0  ;;  %v3719_v22 = vsel %vm3638_vm12, %v1145_v52, 0 }
 0x148   : > { %5337 = vst [vmem:[#allocation49_spill] sm:$0xff] %v3691_v61  ;;  %v1141_v6 = vld [vmem:[%s2649_s19 + $0xa8] sm:$0xff]  ;;  %v1142_v53 = vld [vmem:[%s2649_s19 + $0xb0] sm:$0xff]  ;;  %vm3701_vm1 = vmpackc.low %vm1115_vm9, %vm1115_vm9  ;;  %v3711_v21 = vsel %vm3673_vm0, %v1126_v12, 0  ;;  %v3715_v25 = vsel %vm3673_vm0, %v1127_v26, 0  ;;  %v3734_v56 = vsel %vm3673_vm0, %v1128_v60, 0  ;;  %v5455_v13 = vunpack.c.h.bf16 %v3659_v48 }
 0x149   : > { %v1149_v17 = vld [vmem:[%s2649_s19 + $0xe8] sm:$0xff]  ;;  %v1150_v40 = vld [vmem:[%s2649_s19 + $0xf0] sm:$0xff]  ;;  %5340 = vst [vmem:[#allocation50_spill] sm:$0xff] %v3719_v22  ;;  %v1143_v49 = vld [vmem:[%s2649_s19 + $0xb8] sm:$0xff]  ;;  %v3738_v57 = vsel %vm3701_vm1, %v1129_v37, 0  ;;  %v3742_v4 = vsel %vm3701_vm1, %v1130_v24, 0 }
 0x14a   : > { %v1151_v45 = vld [vmem:[%s2649_s19 + $0xf8] sm:$0xff]  ;;  %v1152_v9 = vld [vmem:[%s2649_s19 + $0x100] sm:$0xff]  ;;  %v1153_v51 = vld [vmem:[%s2649_s19 + $0x108] sm:$0xff]  ;;  %v3746_v14 = vsel %vm3638_vm12, %v1146_v8, 0  ;;  %v3762_v20 = vsel %vm3701_vm1, %v1131_v15, 0  ;;  %v3774_v7 = vsel %vm3653_vm15, %v1147_v30, 0 }
 0x14b   : > { %vm3728_vm2 = vmpackc.low %vm1116_vm10, %vm1116_vm10  ;;  %5343 = vst [vmem:[#allocation51_spill] sm:$0xff] %v3746_v14  ;;  %v1154_v62 = vld [vmem:[%s2649_s19 + $0x110] sm:$0xff]  ;;  %v1155_v32 = vld [vmem:[%s2649_s19 + $0x118] sm:$0xff]  ;;  %v3802_v23 = vsel %vm3653_vm15, %v1148_v18, 0  ;;  %v3830_v31 = vsel %vm3653_vm15, %v1149_v17, 0  ;;  %v3850_v30 = vsel %vm3673_vm0, %v1150_v40, 0 }
 0x14c   : > { %v1156_v5 = vld [vmem:[%s2649_s19 + $0x120] sm:$0xff]  ;;  %v1157_v63 = vld [vmem:[%s2649_s19 + $0x128] sm:$0xff]  ;;  %vm3756_vm3 = vmpackc.low %vm1117_vm11, %vm1117_vm11  ;;  %v3766_v33 = vsel %vm3728_vm2, %v1132_v59, 0  ;;  %v3770_v54 = vsel %vm3728_vm2, %v1133_v42, 0  ;;  %5346 = vst [vmem:[#allocation52_spill] sm:$0xff] %v3774_v7  ;;  %v3790_v12 = vsel %vm3728_vm2, %v1134_v43, 0  ;;  %v5460_v59 = vunpack.c.h.bf16 %v3687_v58 }
 0x14d   : > { %v1158_v0 = vld [vmem:[%s2649_s19 + $0x130] sm:$0xff]  ;;  %v1159_v36 = vld [vmem:[%s2649_s19 + $0x138] sm:$0xff]  ;;  %v1160_v55 = vld [vmem:[%s2649_s19 + $0x140] sm:$0xff]  ;;  %v3794_v26 = vsel %vm3756_vm3, %v1135_v29, 0  ;;  %v3798_v60 = vsel %vm3756_vm3, %v1136_v10, 0  ;;  %5351 = vst [vmem:[#allocation55_spill] sm:$0xff] %v3802_v23 }
 0x14e   : > { %v1161_v11 = vld [vmem:[%s2649_s19 + $0x148] sm:$0xff]  ;;  %vm3784_vm4 = vmpackc.low %vm1118_vm13, %vm1118_vm13  ;;  %5349 = vst [vmem:[#allocation53_spill] sm:$0xff] %v3794_v26  ;;  %v1162_v37 = vld [vmem:[%s2649_s19 + $0x150] sm:$0xff]  ;;  %v3818_v42 = vsel %vm3756_vm3, %v1137_v2, 0  ;;  %v3866_v40 = vsel %vm3673_vm0, %v1152_v9, 0  ;;  %v3882_v9 = vsel %vm3701_vm1, %v1155_v32, 0 }
 0x14f   : > { %5350 = vst [vmem:[#allocation54_spill] sm:$0xff] %v3798_v60  ;;  %v1163_v24 = vld [vmem:[%s2649_s19 + $0x158] sm:$0xff]  ;;  %v1164_v44 = vld [vmem:[%s2649_s19 + $0x160] sm:$0xff]  ;;  %v1165_v15 = vld [vmem:[%s2649_s19 + $0x168] sm:$0xff]  ;;  %v3822_v52 = vsel %vm3784_vm4, %v1138_v16, 0  ;;  %v3826_v43 = vsel %vm3784_vm4, %v1139_v27, 0 }
 0x150   : > { %vm3812_vm5 = vmpackc.low %vm1119_vm14, %vm1119_vm14  ;;  %5354 = vst [vmem:[#allocation56_spill] sm:$0xff] %v3818_v42  ;;  %v1166_v41 = vld [vmem:[%s2649_s19 + $0x170] sm:$0xff]  ;;  %v1167_v29 = vld [vmem:[%s2649_s19 + $0x178] sm:$0xff]  ;;  %v3838_v2 = vsel %vm3784_vm4, %v1140_v46, 0  ;;  %v3898_v32 = vsel %vm3728_vm2, %v1158_v0, 0  ;;  %vm1880_vm6 = vcmask 1041409  }
 0x151   : > { %5355 = vst [vmem:[#allocation57_spill] sm:$0xff] %v3822_v52  ;;  %5356 = vst [vmem:[#allocation58_spill] sm:$0xff] %v3826_v43  ;;  %v1168_v10 = vld [vmem:[%s2649_s19 + $0x180] sm:$0xff]  ;;  %v1169_v8 = vld [vmem:[%s2649_s19 + $0x188] sm:$0xff]  ;;  %v3842_v16 = vsel %vm3812_vm5, %v1141_v6, 0  ;;  %v3846_v27 = vsel %vm3812_vm5, %v1142_v53, 0 }
 0x152   : > { %5357 = vst [vmem:[#allocation59_spill] sm:$0xff] %v3830_v31  ;;  %5358 = vst [vmem:[#allocation60_spill] sm:$0xff] %v3838_v2  ;;  %v1170_v18 = vld [vmem:[%s2649_s19 + $0x190] sm:$0xff]  ;;  %v1171_v17 = vld [vmem:[%s2649_s19 + $0x198] sm:$0xff]  ;;  %v3858_v6 = vsel %vm3812_vm5, %v1143_v49, 0  ;;  %v3862_v53 = vsel %vm3673_vm0, %v1151_v45, 0 }
 0x153   : > { %5359 = vst [vmem:[#allocation61_spill] sm:$0xff] %v3842_v16  ;;  %5360 = vst [vmem:[#allocation62_spill] sm:$0xff] %v3846_v27  ;;  %v1172_v31 = vld [vmem:[%s2649_s19 + $0x1a0] sm:$0xff]  ;;  %v1173_v46 = vld [vmem:[%s2649_s19 + $0x1a8] sm:$0xff]  ;;  %v3878_v45 = vsel %vm3701_vm1, %v1154_v62, 0  ;;  %vm1882_vm7 = vcmask 1045509  }
 0x154   : > { %5361 = vst [vmem:[#allocation63_spill] sm:$0xff] %v3850_v30  ;;  %5362 = vst [vmem:[#allocation64_spill] sm:$0xff] %v3858_v6  ;;  %v3870_v30 = vsel %vm3701_vm1, %v1153_v51, 0  ;;  %v1174_v23 = vld [vmem:[%s2649_s19 + $0x1b0] sm:$0xff]  ;;  %v1175_v7 = vld [vmem:[%s2649_s19 + $0x1b8] sm:$0xff]  ;;  %v3886_v51 = vsel %vm3728_vm2, %v1156_v5, 0 }
 0x155   : > { %5363 = vst [vmem:[#allocation65_spill] sm:$0xff] %v3862_v53  ;;  %5364 = vst [vmem:[#allocation66_spill] sm:$0xff] %v3866_v40  ;;  %v1176_v14 = vld [vmem:[%s2649_s19 + $0x1c0] sm:$0xff]  ;;  %v1177_v49 = vld [vmem:[%s2649_s19 + $0x1c8] sm:$0xff]  ;;  %v3902_v5 = vsel %vm3756_vm3, %v1159_v36, 0  ;;  %v3918_v36 = vsel %vm3784_vm4, %v1162_v37, 0 }
 0x156   : > { %5365 = vst [vmem:[#allocation67_spill] sm:$0xff] %v3870_v30  ;;  %5366 = vst [vmem:[#allocation68_spill] sm:$0xff] %v3878_v45  ;;  %v3890_v30 = vsel %vm3728_vm2, %v1157_v63, 0  ;;  %v1178_v40 = vld [vmem:[%s2649_s19 + $0x1d0] sm:$0xff]  ;;  %v1179_v53 = vld [vmem:[%s2649_s19 + $0x1d8] sm:$0xff]  ;;  %v3906_v63 = vsel %vm3756_vm3, %v1160_v55, 0 }
 0x157   : > { %5367 = vst [vmem:[#allocation69_spill] sm:$0xff] %v3882_v9  ;;  %5368 = vst [vmem:[#allocation70_spill] sm:$0xff] %v3886_v51  ;;  %v1180_v22 = vld [vmem:[%s2649_s19 + $0x1e0] sm:$0xff]  ;;  %v1181_v62 = vld [vmem:[%s2649_s19 + $0x1e8] sm:$0xff]  ;;  %v3922_v55 = vsel %vm3784_vm4, %v1163_v24, 0  ;;  %v3938_v24 = vsel %vm3812_vm5, %v1166_v41, 0 }
 0x158   : > { %5369 = vst [vmem:[#allocation71_spill] sm:$0xff] %v3890_v30  ;;  %5370 = vst [vmem:[#allocation72_spill] sm:$0xff] %v3898_v32  ;;  %v3910_v30 = vsel %vm3756_vm3, %v1161_v11, 0  ;;  %v1182_v51 = vld [vmem:[%s2649_s19 + $0x1f0] sm:$0xff]  ;;  %v1183_v9 = vld [vmem:[%s2649_s19 + $0x1f8] sm:$0xff]  ;;  %v3926_v11 = vsel %vm3784_vm4, %v1164_v44, 0 }
 0x159   : > { %5371 = vst [vmem:[#allocation73_spill] sm:$0xff] %v3902_v5  ;;  %5372 = vst [vmem:[#allocation74_spill] sm:$0xff] %v3906_v63  ;;  %v1184_v45 = vld [vmem:[%s2649_s19 + $0x200] sm:$0xff]  ;;  %v1185_v0 = vld [vmem:[%s2649_s19 + $0x208] sm:$0xff]  ;;  %v3942_v44 = vsel %vm3812_vm5, %v1167_v29, 0  ;;  %v3958_v29 = vsel %vm3638_vm12, %v1170_v18, 0 }
 0x15a   : > { %5373 = vst [vmem:[#allocation75_spill] sm:$0xff] %v3910_v30  ;;  %5374 = vst [vmem:[#allocation76_spill] sm:$0xff] %v3918_v36  ;;  %v3930_v30 = vsel %vm3812_vm5, %v1165_v15, 0  ;;  %v1186_v63 = vld [vmem:[%s2649_s19 + $0x210] sm:$0xff]  ;;  %v1187_v5 = vld [vmem:[%s2649_s19 + $0x218] sm:$0xff]  ;;  %v3946_v15 = vsel %vm3638_vm12, %v1168_v10, 0 }
 0x15b   : > { %5375 = vst [vmem:[#allocation77_spill] sm:$0xff] %v3922_v55  ;;  %5376 = vst [vmem:[#allocation78_spill] sm:$0xff] %v3926_v11  ;;  %v1188_v32 = vld [vmem:[%s2649_s19 + $0x220] sm:$0xff]  ;;  %v1189_v37 = vld [vmem:[%s2649_s19 + $0x228] sm:$0xff]  ;;  %v3962_v10 = vsel %vm3653_vm15, %v1171_v17, 0  ;;  %v3978_v17 = vsel %vm3673_vm0, %v1174_v23, 0 }
 0x15c   : > { %5377 = vst [vmem:[#allocation79_spill] sm:$0xff] %v3930_v30  ;;  %5378 = vst [vmem:[#allocation80_spill] sm:$0xff] %v3938_v24  ;;  %v3950_v30 = vsel %vm3638_vm12, %v1169_v8, 0  ;;  %v1190_v11 = vld [vmem:[%s2649_s19 + $0x230] sm:$0xff]  ;;  %v1191_v55 = vld [vmem:[%s2649_s19 + $0x238] sm:$0xff]  ;;  %v3966_v8 = vsel %vm3653_vm15, %v1172_v31, 0 }
 0x15d   : > { %5379 = vst [vmem:[#allocation81_spill] sm:$0xff] %v3942_v44  ;;  %5380 = vst [vmem:[#allocation82_spill] sm:$0xff] %v3946_v15  ;;  %v1192_v36 = vld [vmem:[%s2649_s19 + $0x240] sm:$0xff]  ;;  %v1193_v41 = vld [vmem:[%s2649_s19 + $0x248] sm:$0xff]  ;;  %v3982_v31 = vsel %vm3673_vm0, %v1175_v7, 0  ;;  %v3998_v23 = vsel %vm3701_vm1, %v1178_v40, 0 }
 0x15e   : > { %5381 = vst [vmem:[#allocation83_spill] sm:$0xff] %v3950_v30  ;;  %5382 = vst [vmem:[#allocation84_spill] sm:$0xff] %v3958_v29  ;;  %v3970_v30 = vsel %vm3653_vm15, %v1173_v46, 0  ;;  %v1194_v15 = vld [vmem:[%s2649_s19 + $0x250] sm:$0xff]  ;;  %v1195_v44 = vld [vmem:[%s2649_s19 + $0x258] sm:$0xff]  ;;  %v3986_v46 = vsel %vm3673_vm0, %v1176_v14, 0 }
 0x15f   : > { %5383 = vst [vmem:[#allocation85_spill] sm:$0xff] %v3962_v10  ;;  %5384 = vst [vmem:[#allocation86_spill] sm:$0xff] %v3966_v8  ;;  %v1196_v24 = vld [vmem:[%s2649_s19 + $0x260] sm:$0xff]  ;;  %v1197_v18 = vld [vmem:[%s2649_s19 + $0x268] sm:$0xff]  ;;  %v4002_v7 = vsel %vm3701_vm1, %v1179_v53, 0  ;;  %v4006_v14 = vsel %vm3728_vm2, %v1180_v22, 0 }
 0x160   : > { %5385 = vst [vmem:[#allocation87_spill] sm:$0xff] %v3970_v30  ;;  %5386 = vst [vmem:[#allocation88_spill] sm:$0xff] %v3978_v17  ;;  %v3990_v30 = vsel %vm3701_vm1, %v1177_v49, 0  ;;  %v1198_v8 = vld [vmem:[%s2649_s19 + $0x270] sm:$0xff]  ;;  %v1199_v10 = vld [vmem:[%s2649_s19 + $0x278] sm:$0xff]  ;;  %v4010_v49 = vsel %vm3728_vm2, %v1181_v62, 0 }
 0x161   : > { %5387 = vst [vmem:[#allocation89_spill] sm:$0xff] %v3982_v31  ;;  %5388 = vst [vmem:[#allocation90_spill] sm:$0xff] %v3986_v46  ;;  %v1200_v29 = vld [vmem:[%s2649_s19 + $0x280] sm:$0xff]  ;;  %v1201_v61 = vld [vmem:[%s2649_s19 + $0x288] sm:$0xff]  ;;  %v4018_v40 = vsel %vm3728_vm2, %v1182_v51, 0  ;;  %v4022_v53 = vsel %vm3756_vm3, %v1183_v9, 0 }
 0x162   : > { %5389 = vst [vmem:[#allocation91_spill] sm:$0xff] %v3990_v30  ;;  %5390 = vst [vmem:[#allocation92_spill] sm:$0xff] %v4002_v7  ;;  %v1202_v30 = vld [vmem:[%s2649_s19 + $0x290] sm:$0xff]  ;;  %v1203_v46 = vld [vmem:[%s2649_s19 + $0x298] sm:$0xff]  ;;  %v4026_v22 = vsel %vm3756_vm3, %v1184_v45, 0  ;;  %v4030_v62 = vsel %vm3756_vm3, %v1185_v0, 0 }
 0x163   : > { %5391 = vst [vmem:[#allocation93_spill] sm:$0xff] %v4006_v14  ;;  %5392 = vst [vmem:[#allocation94_spill] sm:$0xff] %v4010_v49  ;;  %v1204_v31 = vld [vmem:[%s2649_s19 + $0x2a0] sm:$0xff]  ;;  %v1205_v17 = vld [vmem:[%s2649_s19 + $0x2a8] sm:$0xff]  ;;  %v4036_v51 = vsel %vm3784_vm4, %v1186_v63, 0  ;;  %v4040_v9 = vsel %vm3784_vm4, %v1187_v5, 0 }
 0x164   : > { %5393 = vst [vmem:[#allocation95_spill] sm:$0xff] %v4018_v40  ;;  %5394 = vst [vmem:[#allocation96_spill] sm:$0xff] %v4022_v53  ;;  %v1206_v49 = vld [vmem:[%s2649_s19 + $0x2b0] sm:$0xff]  ;;  %v1207_v14 = vld [vmem:[%s2649_s19 + $0x2b8] sm:$0xff]  ;;  %v4044_v45 = vsel %vm3784_vm4, %v1188_v32, 0  ;;  %v4048_v0 = vsel %vm3812_vm5, %v1189_v37, 0 }
 0x165   : > { %5395 = vst [vmem:[#allocation97_spill] sm:$0xff] %v4026_v22  ;;  %5396 = vst [vmem:[#allocation98_spill] sm:$0xff] %v4030_v62  ;;  %v1208_v62 = vld [vmem:[%s2649_s19 + $0x2c0] sm:$0xff]  ;;  %v1209_v22 = vld [vmem:[%s2649_s19 + $0x2c8] sm:$0xff]  ;;  %v4054_v63 = vsel %vm3812_vm5, %v1190_v11, 0  ;;  %v4058_v5 = vsel %vm3812_vm5, %v1191_v55, 0 }
 0x166   : > { %5397 = vst [vmem:[#allocation99_spill] sm:$0xff] %v4040_v9  ;;  %5398 = vst [vmem:[#allocation100_spill] sm:$0xff] %v4044_v45  ;;  %v4062_v32 = vsel %vm3638_vm12, %v1192_v36, 0  ;;  %v4066_v37 = vsel %vm3638_vm12, %v1193_v41, 0  ;;  %v1211_v45 = vld [vmem:[%s2649_s19 + $0x2d8] sm:$0xff]  ;;  %v4072_v11 = vsel %vm3638_vm12, %v1194_v15, 0 }
 0x167   : > { %5399 = vst [vmem:[#allocation101_spill] sm:$0xff] %v4048_v0  ;;  %5400 = vst [vmem:[#allocation102_spill] sm:$0xff] %v4054_v63  ;;  %v1210_v0 = vld [vmem:[%s2649_s19 + $0x2d0] sm:$0xff]  ;;  %v4076_v63 = vsel %vm3653_vm15, %v1195_v44, 0  ;;  %v4080_v55 = vsel %vm3653_vm15, %v1196_v24, 0  ;;  %v4084_v36 = vsel %vm3653_vm15, %v1197_v18, 0 }
 0x168   : > { %5401 = vst [vmem:[#allocation103_spill] sm:$0xff] %v4058_v5  ;;  %5402 = vst [vmem:[#allocation104_spill] sm:$0xff] %v4062_v32  ;;  %v1212_v41 = vld [vmem:[%s2649_s19 + $0x2e0] sm:$0xff]  ;;  %v4090_v32 = vsel %vm3673_vm0, %v1198_v8, 0  ;;  %v4094_v50 = vsel %vm3673_vm0, %v1199_v10, 0  ;;  %v4098_v44 = vsel %vm3673_vm0, %v1200_v29, 0 }
 0x169   : > { %5403 = vst [vmem:[#allocation105_spill] sm:$0xff] %v4066_v37  ;;  %v1213_v37 = vld [vmem:[%s2649_s19 + $0x2e8] sm:$0xff]  ;;  %v4102_v24 = vsel %vm3701_vm1, %v1201_v61, 0  ;;  %v1214_v35 = vld [vmem:[%s2649_s19 + $0x2f0] sm:$0xff]  ;;  %v1215_v15 = vld [vmem:[%s2649_s19 + $0x2f8] sm:$0xff]  ;;  %v4108_v18 = vsel %vm3701_vm1, %v1202_v30, 0 }
 0x16a   : > { %v4112_v8 = vsel %vm3701_vm1, %v1203_v46, 0  ;;  %v4116_v10 = vsel %vm3728_vm2, %v1204_v31, 0  ;;  %v4120_v3 = vsel %vm3728_vm2, %v1205_v17, 0  ;;  %v4124_v61 = vsel %vm3728_vm2, %v1206_v49, 0  ;;  %v5410_v49 = vld [vmem:[#allocation49_spill] sm:$0xff]  ;;  %v5413_v16 = vld [vmem:[#allocation52_spill] sm:$0xff] }
 0x16b   : > { %v4128_v30 = vsel %vm3756_vm3, %v1207_v14, 0  ;;  %v4132_v38 = vsel %vm3756_vm3, %v1208_v62, 0  ;;  %v4136_v29 = vsel %vm3756_vm3, %v1209_v22, 0  ;;  %v4140_v17 = vsel %vm3784_vm4, %v1210_v0, 0  ;;  %v5416_v43 = vld [vmem:[#allocation63_spill] sm:$0xff]  ;;  %v5422_v42 = vld [vmem:[#allocation70_spill] sm:$0xff] }
 0x16c   : > { %5404 = vst [vmem:[#allocation106_spill] sm:$0xff] %v4140_v17  ;;  %v4144_v39 = vsel %vm3784_vm4, %v1211_v45, 0  ;;  %v4148_v31 = vsel %vm3784_vm4, %v1212_v41, 0  ;;  %v4152_v46 = vsel %vm3812_vm5, %v1213_v37, 0  ;;  %v4156_v34 = vsel %vm3812_vm5, %v1214_v35, 0  ;;  %v5419_v52 = vld [vmem:[#allocation67_spill] sm:$0xff] }
 0x16d   : > { %5405 = vst [vmem:[#allocation107_spill] sm:$0xff] %v4144_v39  ;;  %5406 = vst [vmem:[#allocation108_spill] sm:$0xff] %v4148_v31  ;;  %v4160_v14 = vsel %vm3812_vm5, %v1215_v15, 0  ;;  %v5438_v27 = vld [vmem:[#allocation86_spill] sm:$0xff]  ;;  %v5440_v26 = vld [vmem:[#allocation88_spill] sm:$0xff]  ;;  %v5453_v15 = vunpack.c.l.bf16 %v3659_v48  ;;  %v5454_v22 = vunpack.c.l.bf16 %v3683_v19  ;;  %v5456_v62 = vunpack.c.h.bf16 %v3683_v19 }
 0x16e   : > { %5407 = vst [vmem:[#allocation109_spill] sm:$0xff] %v4152_v46  ;;  %5408 = vst [vmem:[#allocation110_spill] sm:$0xff] %v4156_v34  ;;  %v5443_v60 = vld [vmem:[#allocation91_spill] sm:$0xff]  ;;  %v5444_v6 = vld [vmem:[#allocation93_spill] sm:$0xff]  ;;  %v5457_v0 = vunpack.c.l.bf16 %v3663_v28  ;;  %v5458_v37 = vunpack.c.l.bf16 %v3687_v58  ;;  %v5459_v41 = vunpack.c.h.bf16 %v3663_v28  ;;  %v5461_v34 = vunpack.c.l.bf16 %v3679_v1 }
 0x16f   : > { %5409 = vst [vmem:[#allocation111_spill] sm:$0xff] %v4160_v14  ;;  %v5445_v14 = vld [vmem:[#allocation94_spill] sm:$0xff]  ;;  %v5448_v40 = vld [vmem:[#allocation100_spill] sm:$0xff]  ;;  %v5449_v53 = vld [vmem:[#allocation101_spill] sm:$0xff]  ;;  %v1531_v5 = vadd.f32 %v5454_v22, %v5453_v15  ;;  %v1544_v45 = vadd.f32 %v5456_v62, %v5455_v13  ;;  %v5462_v46 = vunpack.c.l.bf16 %v3707_v47  ;;  %v5463_v48 = vunpack.c.h.bf16 %v3679_v1 }
 0x170   : > { %v5450_v2 = vld [vmem:[#allocation102_spill] sm:$0xff]  ;;  %v5451_v7 = vld [vmem:[#allocation104_spill] sm:$0xff]  ;;  %v5452_v9 = vld [vmem:[#allocation105_spill] sm:$0xff]  ;;  %v1557_v31 = vadd.f32 %v5458_v37, %v5457_v0  ;;  %v1570_v35 = vadd.f32 %v5460_v59, %v5459_v41  ;;  %v5464_v19 = vunpack.c.h.bf16 %v3707_v47  ;;  %v5465_v62 = vunpack.c.l.bf16 %v5410_v49 }
 0x171   : > { %v1583_v22 = vadd.f32 %v5462_v46, %v5461_v34  ;;  %v5466_v15 = vunpack.c.l.bf16 %v5413_v16  ;;  %v5467_v28 = vunpack.c.h.bf16 %v5410_v49  ;;  %v5468_v58 = vunpack.c.h.bf16 %v5413_v16 }
 0x172   : > { %v1596_v13 = vadd.f32 %v5464_v19, %v5463_v48  ;;  %v5469_v41 = vunpack.c.l.bf16 %v3711_v21  ;;  %v5470_v46 = vunpack.c.h.bf16 %v3711_v21  ;;  %v5471_v1 = vunpack.c.l.bf16 %v3715_v25 }
 0x173   : > { %v1609_v0 = vadd.f32 %v5466_v15, %v5465_v62  ;;  %v1622_v37 = vadd.f32 %v5468_v58, %v5467_v28  ;;  %v5472_v48 = vunpack.c.h.bf16 %v3715_v25  ;;  %v5473_v39 = vunpack.c.l.bf16 %v3734_v56 }
 0x174   : > { %v1532_v59 = vadd.f32 %v1531_v5, %v5469_v41  ;;  %v1545_v34 = vadd.f32 %v1544_v45, %v5470_v46  ;;  %v1558_v47 = vadd.f32 %v1557_v31, %v5471_v1  ;;  %v5474_v49 = vunpack.c.h.bf16 %v3734_v56 }
 0x175   : > { %v1571_v19 = vadd.f32 %v1570_v35, %v5472_v48  ;;  %v1584_v62 = vadd.f32 %v1583_v22, %v5473_v39  ;;  %v5475_v16 = vunpack.c.l.bf16 %v5416_v43  ;;  %v5476_v5 = vunpack.c.h.bf16 %v5416_v43 }
 0x176   : > { %v1597_v15 = vadd.f32 %v1596_v13, %v5474_v49  ;;  %v5477_v21 = vunpack.c.l.bf16 %v3738_v57  ;;  %v5478_v31 = vunpack.c.h.bf16 %v3738_v57  ;;  %v5479_v25 = vunpack.c.l.bf16 %v3742_v4 }
 0x177   : > { %v1610_v28 = vadd.f32 %v1609_v0, %v5475_v16  ;;  %v1623_v58 = vadd.f32 %v1622_v37, %v5476_v5  ;;  %v5480_v39 = vunpack.c.h.bf16 %v3742_v4  ;;  %v5481_v56 = vunpack.c.l.bf16 %v3762_v20 }
 0x178   : > { %v1533_v45 = vadd.f32 %v1532_v59, %v5477_v21  ;;  %v1546_v41 = vadd.f32 %v1545_v34, %v5478_v31  ;;  %v1559_v35 = vadd.f32 %v1558_v47, %v5479_v25  ;;  %v5482_v0 = vunpack.c.h.bf16 %v3762_v20 }
 0x179   : > { %v1572_v22 = vadd.f32 %v1571_v19, %v5480_v39  ;;  %v1585_v13 = vadd.f32 %v1584_v62, %v5481_v56  ;;  %v5483_v43 = vunpack.c.l.bf16 %v5419_v52  ;;  %v5484_v59 = vunpack.c.h.bf16 %v5419_v52 }
 0x17a   : > { %v1598_v46 = vadd.f32 %v1597_v15, %v5482_v0  ;;  %v5485_v57 = vunpack.c.l.bf16 %v3766_v33  ;;  %v5486_v47 = vunpack.c.h.bf16 %v3766_v33  ;;  %v5487_v4 = vunpack.c.l.bf16 %v3770_v54  ;;  %v5493_v33 = vld [vmem:[#allocation53_spill] sm:$0xff] }
 0x17b   : > { %v1611_v37 = vadd.f32 %v1610_v28, %v5483_v43  ;;  %v1624_v1 = vadd.f32 %v1623_v58, %v5484_v59  ;;  %v5488_v62 = vunpack.c.h.bf16 %v3770_v54  ;;  %v5489_v20 = vunpack.c.l.bf16 %v3790_v12  ;;  %v5496_v54 = vld [vmem:[#allocation54_spill] sm:$0xff] }
 0x17c   : > { %v1534_v34 = vadd.f32 %v1533_v45, %v5485_v57  ;;  %v1547_v48 = vadd.f32 %v1546_v41, %v5486_v47  ;;  %v1560_v19 = vadd.f32 %v1559_v35, %v5487_v4  ;;  %v5490_v16 = vunpack.c.h.bf16 %v3790_v12  ;;  %v5499_v12 = vld [vmem:[#allocation56_spill] sm:$0xff] }
 0x17d   : > { %v1573_v49 = vadd.f32 %v1572_v22, %v5488_v62  ;;  %v1586_v15 = vadd.f32 %v1585_v13, %v5489_v20  ;;  %v5491_v52 = vunpack.c.l.bf16 %v5422_v42  ;;  %v5492_v58 = vunpack.c.h.bf16 %v5422_v42  ;;  %v5502_v42 = vld [vmem:[#allocation73_spill] sm:$0xff]  ;;  %v5508_v62 = vld [vmem:[#allocation58_spill] sm:$0xff] }
 0x17e   : > { %v1599_v28 = vadd.f32 %v1598_v46, %v5490_v16  ;;  %v5494_v45 = vunpack.c.l.bf16 %v5493_v33  ;;  %v5495_v41 = vunpack.c.h.bf16 %v5493_v33  ;;  %v5497_v35 = vunpack.c.l.bf16 %v5496_v54 }
 0x17f   : > { %v1612_v5 = vadd.f32 %v1611_v37, %v5491_v52  ;;  %v1625_v21 = vadd.f32 %v1624_v1, %v5492_v58  ;;  %v5498_v22 = vunpack.c.h.bf16 %v5496_v54  ;;  %v5500_v13 = vunpack.c.l.bf16 %v5499_v12  ;;  %v5511_v52 = vld [vmem:[#allocation60_spill] sm:$0xff] }
 0x180   : > { %v1535_v31 = vadd.f32 %v1534_v34, %v5494_v45  ;;  %v1548_v25 = vadd.f32 %v1547_v48, %v5495_v41  ;;  %v1561_v39 = vadd.f32 %v1560_v19, %v5497_v35  ;;  %v5501_v46 = vunpack.c.h.bf16 %v5499_v12  ;;  %v5505_v34 = vld [vmem:[#allocation57_spill] sm:$0xff]  ;;  %v5514_v45 = vld [vmem:[#allocation76_spill] sm:$0xff] }
 0x181   : > { %v1574_v56 = vadd.f32 %v1573_v49, %v5498_v22  ;;  %v1587_v0 = vadd.f32 %v1586_v15, %v5500_v13  ;;  %v5503_v37 = vunpack.c.l.bf16 %v5502_v42  ;;  %v5504_v1 = vunpack.c.h.bf16 %v5502_v42  ;;  %v5517_v35 = vld [vmem:[#allocation61_spill] sm:$0xff]  ;;  %v5520_v13 = vld [vmem:[#allocation62_spill] sm:$0xff] }
 0x182   : > { %v1600_v43 = vadd.f32 %v1599_v28, %v5501_v46  ;;  %v5506_v47 = vunpack.c.l.bf16 %v5505_v34  ;;  %v5507_v4 = vunpack.c.h.bf16 %v5505_v34  ;;  %v5509_v49 = vunpack.c.l.bf16 %v5508_v62 }
 0x183   : > { %v1613_v59 = vadd.f32 %v1612_v5, %v5503_v37  ;;  %v1626_v57 = vadd.f32 %v1625_v21, %v5504_v1  ;;  %v5510_v15 = vunpack.c.h.bf16 %v5508_v62  ;;  %v5512_v28 = vunpack.c.l.bf16 %v5511_v52  ;;  %v5523_v37 = vld [vmem:[#allocation64_spill] sm:$0xff] }
 0x184   : > { %v1536_v48 = vadd.f32 %v1535_v31, %v5506_v47  ;;  %v1549_v19 = vadd.f32 %v1548_v25, %v5507_v4  ;;  %v1562_v20 = vadd.f32 %v1561_v39, %v5509_v49  ;;  %v5513_v5 = vunpack.c.h.bf16 %v5511_v52  ;;  %v5526_v47 = vld [vmem:[#allocation79_spill] sm:$0xff] }
 0x185   : > { %v1575_v16 = vadd.f32 %v1574_v56, %v5510_v15  ;;  %v1588_v58 = vadd.f32 %v1587_v0, %v5512_v28  ;;  %v5515_v21 = vunpack.c.l.bf16 %v5514_v45  ;;  %v5516_v31 = vunpack.c.h.bf16 %v5514_v45 }
 0x186   : > { %v1601_v33 = vadd.f32 %v1600_v43, %v5513_v5  ;;  %v5518_v25 = vunpack.c.l.bf16 %v5517_v35  ;;  %v5519_v39 = vunpack.c.h.bf16 %v5517_v35  ;;  %v5521_v56 = vunpack.c.l.bf16 %v5520_v13 }
 0x187   : > { %v1614_v41 = vadd.f32 %v1613_v59, %v5515_v21  ;;  %v1627_v54 = vadd.f32 %v1626_v57, %v5516_v31  ;;  %v5522_v0 = vunpack.c.h.bf16 %v5520_v13  ;;  %v5524_v43 = vunpack.c.l.bf16 %v5523_v37 }
 0x188   : > { %v1537_v22 = vadd.f32 %v1536_v48, %v5518_v25  ;;  %v1550_v12 = vadd.f32 %v1549_v19, %v5519_v39  ;;  %v1563_v46 = vadd.f32 %v1562_v20, %v5521_v56  ;;  %v5525_v59 = vunpack.c.h.bf16 %v5523_v37 }
 0x189   : > { %v1576_v42 = vadd.f32 %v1575_v16, %v5522_v0  ;;  %v1589_v1 = vadd.f32 %v1588_v58, %v5524_v43  ;;  %v5527_v57 = vunpack.c.l.bf16 %v5526_v47  ;;  %v5528_v48 = vunpack.c.h.bf16 %v5526_v47 }
 0x18a   : > { %v1602_v34 = vadd.f32 %v1601_v33, %v5525_v59  ;;  %v1538_v49 = vrot.slane %v1537_v22, 4  ;;  %v1551_v19 = vrot.slane %v1550_v12, 4  ;;  %v1564_v15 = vrot.slane %v1563_v46, 4 }
 0x18b   : > { %v1615_v4 = vadd.f32 %v1614_v41, %v5527_v57  ;;  %v1628_v62 = vadd.f32 %v1627_v54, %v5528_v48  ;;  %v1577_v52 = vrot.slane %v1576_v42, 4  ;;  %v1590_v20 = vrot.slane %v1589_v1, 4 }
 0x18c   : > { %v1603_v28 = vrot.slane %v1602_v34, 4  ;;  %v1539_v45 = vadd.f32 %v1538_v49, %v1537_v22  ;;  %v1552_v21 = vadd.f32 %v1551_v19, %v1550_v12  ;;  %v1565_v58 = vadd.f32 %v1564_v15, %v1563_v46  ;;  %v5529_v49 = vld [vmem:[#allocation111_spill] sm:$0xff] }
 0x18d   : > { %v1616_v5 = vrot.slane %v1615_v4, 4  ;;  %v1629_v16 = vrot.slane %v1628_v62, 4  ;;  %v1578_v31 = vadd.f32 %v1577_v52, %v1576_v42  ;;  %v1591_v35 = vadd.f32 %v1590_v20, %v1589_v1 }
 0x18e   : > { %v1604_v33 = vadd.f32 %v1603_v28, %v1602_v34  ;;  %v1540_v41 = vrot.slane %v1539_v45, 2  ;;  %v1553_v13 = vrot.slane %v1552_v21, 2  ;;  %v1566_v56 = vrot.slane %v1565_v58, 2 }
 0x18f   : > { %v1617_v25 = vadd.f32 %v1616_v5, %v1615_v4  ;;  %v1630_v39 = vadd.f32 %v1629_v16, %v1628_v62  ;;  %v1579_v54 = vrot.slane %v1578_v31, 2  ;;  %v1592_v0 = vrot.slane %v1591_v35, 2 }
 0x190   : > { %v1605_v37 = vrot.slane %v1604_v33, 2  ;;  %v1541_v47 = vadd.f32 %v1540_v41, %v1539_v45  ;;  %v1554_v57 = vadd.f32 %v1553_v13, %v1552_v21  ;;  %v1567_v48 = vadd.f32 %v1566_v56, %v1565_v58 }
 0x191   : > { %v1618_v43 = vrot.slane %v1617_v25, 2  ;;  %v1631_v59 = vrot.slane %v1630_v39, 2  ;;  %v1580_v17 = vadd.f32 %v1579_v54, %v1578_v31  ;;  %v4480_v22 = vadd.f32 %v1592_v0, %v1591_v35 }
 0x192   : > { %v4482_v12 = vadd.f32 %v1605_v37, %v1604_v33  ;;  %v1542_v1 = vrot.slane %v1541_v47, 1  ;;  %v1555_v34 = vrot.slane %v1554_v57, 1  ;;  %v1568_v4 = vrot.slane %v1567_v48, 1  ;;  %v5530_v33 = vld [vmem:[#allocation50_spill] sm:$0xff]  ;;  %v5536_v37 = vld [vmem:[#allocation51_spill] sm:$0xff] }
 0x193   : > { %v1619_v46 = vadd.f32 %v1618_v43, %v1617_v25  ;;  %v1632_v42 = vadd.f32 %v1631_v59, %v1630_v39  ;;  %v1581_v62 = vrot.slane %v1580_v17, 1  ;;  %v5531_v25 = vunpack.c.l.bf16 %v5530_v33  ;;  %v5532_v39 = vld [vmem:[#allocation55_spill] sm:$0xff] }
 0x194   : > { %v4486_v28 = vadd.f32 %v1542_v1, %v1541_v47  ;;  %v4488_v5 = vadd.f32 %v1555_v34, %v1554_v57  ;;  %v4492_v21 = vadd.f32 %v1568_v4, %v1567_v48  ;;  %v5533_v41 = vunpack.c.l.bf16 %v5532_v39  ;;  %v5538_v59 = vld [vmem:[#allocation59_spill] sm:$0xff]  ;;  %v5544_v34 = vld [vmem:[#allocation85_spill] sm:$0xff] }
 0x195   : > { %v1620_v52 = vrot.slane %v1619_v46, 1  ;;  %v1633_v20 = vrot.slane %v1632_v42, 1  ;;  %v4494_v58 = vadd.f32 %v1581_v62, %v1580_v17  ;;  %v5534_v56 = vunpack.c.h.bf16 %v5530_v33 }
 0x196   : > { %v1635_v13 = vadd.f32 %v5533_v41, %v5531_v25  ;;  %v5535_v54 = vunpack.c.h.bf16 %v5532_v39  ;;  %v5537_v43 = vunpack.c.l.bf16 %v5536_v37  ;;  %v5539_v47 = vunpack.c.l.bf16 %v5538_v59  ;;  %v5548_v25 = vld [vmem:[#allocation83_spill] sm:$0xff] }
 0x197   : > { %v4496_v31 = vadd.f32 %v1620_v52, %v1619_v46  ;;  %v4498_v35 = vadd.f32 %v1633_v20, %v1632_v42  ;;  %v5540_v57 = vunpack.c.h.bf16 %v5536_v37  ;;  %v5541_v48 = vunpack.c.h.bf16 %v5538_v59  ;;  %v5542_v42 = vld [vmem:[#allocation82_spill] sm:$0xff]  ;;  %v5553_v59 = vld [vmem:[#allocation65_spill] sm:$0xff] }
 0x198   : > { %v1648_v0 = vadd.f32 %v5535_v54, %v5534_v56  ;;  %v1661_v17 = vadd.f32 %v5539_v47, %v5537_v43  ;;  %v5543_v1 = vunpack.c.l.bf16 %v5542_v42  ;;  %v5545_v4 = vunpack.c.l.bf16 %v5544_v34 }
 0x199   : > { %v1674_v46 = vadd.f32 %v5541_v48, %v5540_v57  ;;  %v5546_v52 = vunpack.c.h.bf16 %v5542_v42  ;;  %v5547_v20 = vunpack.c.h.bf16 %v5544_v34  ;;  %v5549_v39 = vunpack.c.l.bf16 %v5548_v25  ;;  %v5556_v42 = vld [vmem:[#allocation66_spill] sm:$0xff] }
 0x19a   : > { %v1687_v62 = vadd.f32 %v5545_v4, %v5543_v1  ;;  %v5550_v41 = vunpack.c.l.bf16 %v5438_v27  ;;  %v5551_v54 = vunpack.c.h.bf16 %v5548_v25  ;;  %v5552_v37 = vunpack.c.h.bf16 %v5438_v27  ;;  %v5561_v27 = vld [vmem:[#allocation89_spill] sm:$0xff] }
 0x19b   : > { %v1700_v33 = vadd.f32 %v5547_v20, %v5546_v52  ;;  %v5554_v47 = vunpack.c.l.bf16 %v5553_v59  ;;  %v5555_v48 = vunpack.c.h.bf16 %v5553_v59  ;;  %v5557_v4 = vunpack.c.l.bf16 %v5556_v42  ;;  %v5564_v59 = vld [vmem:[#allocation68_spill] sm:$0xff] }
 0x19c   : > { %v1713_v56 = vadd.f32 %v5550_v41, %v5549_v39  ;;  %v1726_v43 = vadd.f32 %v5552_v37, %v5551_v54  ;;  %v5558_v52 = vunpack.c.h.bf16 %v5556_v42  ;;  %v5559_v45 = vunpack.c.l.bf16 %v5440_v26  ;;  %v5567_v42 = vld [vmem:[#allocation69_spill] sm:$0xff] }
 0x19d   : > { %v1636_v57 = vadd.f32 %v1635_v13, %v5554_v47  ;;  %v1649_v1 = vadd.f32 %v1648_v0, %v5555_v48  ;;  %v1662_v34 = vadd.f32 %v1661_v17, %v5557_v4  ;;  %v5560_v25 = vunpack.c.h.bf16 %v5440_v26 }
 0x19e   : > { %v1675_v20 = vadd.f32 %v1674_v46, %v5558_v52  ;;  %v1688_v39 = vadd.f32 %v1687_v62, %v5559_v45  ;;  %v5562_v54 = vunpack.c.l.bf16 %v5561_v27  ;;  %v5563_v13 = vunpack.c.h.bf16 %v5561_v27 }
 0x19f   : > { %v1701_v41 = vadd.f32 %v1700_v33, %v5560_v25  ;;  %v5565_v0 = vunpack.c.l.bf16 %v5564_v59  ;;  %v5566_v17 = vunpack.c.h.bf16 %v5564_v59  ;;  %v5568_v46 = vunpack.c.l.bf16 %v5567_v42 }
 0x1a0   : > { %v1714_v37 = vadd.f32 %v1713_v56, %v5562_v54  ;;  %v1727_v47 = vadd.f32 %v1726_v43, %v5563_v13  ;;  %v5569_v45 = vunpack.c.h.bf16 %v5567_v42  ;;  %v5570_v26 = vunpack.c.l.bf16 %v5443_v60  ;;  %v5574_v13 = vld [vmem:[#allocation71_spill] sm:$0xff] }
 0x1a1   : > { %v1637_v48 = vadd.f32 %v1636_v57, %v5565_v0  ;;  %v1650_v4 = vadd.f32 %v1649_v1, %v5566_v17  ;;  %v1663_v52 = vadd.f32 %v1662_v34, %v5568_v46  ;;  %v5571_v56 = vunpack.c.h.bf16 %v5443_v60  ;;  %v5577_v17 = vld [vmem:[#allocation72_spill] sm:$0xff] }
 0x1a2   : > { %v1676_v62 = vadd.f32 %v1675_v20, %v5569_v45  ;;  %v1689_v33 = vadd.f32 %v1688_v39, %v5570_v26  ;;  %v5572_v43 = vunpack.c.l.bf16 %v3998_v23  ;;  %v5573_v57 = vunpack.c.h.bf16 %v3998_v23 }
 0x1a3   : > { %v1702_v25 = vadd.f32 %v1701_v41, %v5571_v56  ;;  %v5575_v1 = vunpack.c.l.bf16 %v5574_v13  ;;  %v5576_v34 = vunpack.c.h.bf16 %v5574_v13  ;;  %v5578_v20 = vunpack.c.l.bf16 %v5577_v17  ;;  %v5584_v56 = vld [vmem:[#allocation74_spill] sm:$0xff]  ;;  %v5587_v13 = vld [vmem:[#allocation75_spill] sm:$0xff] }
 0x1a4   : > { %v1715_v27 = vadd.f32 %v1714_v37, %v5572_v43  ;;  %v1728_v54 = vadd.f32 %v1727_v47, %v5573_v57  ;;  %v5579_v39 = vunpack.c.h.bf16 %v5577_v17  ;;  %v5580_v60 = vunpack.c.l.bf16 %v5444_v6 }
 0x1a5   : > { %v1638_v59 = vadd.f32 %v1637_v48, %v5575_v1  ;;  %v1651_v0 = vadd.f32 %v1650_v4, %v5576_v34  ;;  %v1664_v42 = vadd.f32 %v1663_v52, %v5578_v20  ;;  %v5581_v37 = vunpack.c.h.bf16 %v5444_v6  ;;  %v5590_v6 = vld [vmem:[#allocation96_spill] sm:$0xff] }
 0x1a6   : > { %v1677_v46 = vadd.f32 %v1676_v62, %v5579_v39  ;;  %v1690_v41 = vadd.f32 %v1689_v33, %v5580_v60  ;;  %v5582_v23 = vunpack.c.l.bf16 %v5445_v14  ;;  %v5583_v48 = vunpack.c.h.bf16 %v5445_v14  ;;  %v5593_v14 = vld [vmem:[#allocation97_spill] sm:$0xff] }
 0x1a7   : > { %v1703_v45 = vadd.f32 %v1702_v25, %v5581_v37  ;;  %v5585_v4 = vunpack.c.l.bf16 %v5584_v56  ;;  %v5586_v52 = vunpack.c.h.bf16 %v5584_v56  ;;  %v5588_v62 = vunpack.c.l.bf16 %v5587_v13  ;;  %v5596_v37 = vld [vmem:[#allocation77_spill] sm:$0xff]  ;;  %v5599_v56 = vld [vmem:[#allocation78_spill] sm:$0xff] }
 0x1a8   : > { %v1716_v47 = vadd.f32 %v1715_v27, %v5582_v23  ;;  %v1729_v26 = vadd.f32 %v1728_v54, %v5583_v48  ;;  %v5589_v33 = vunpack.c.h.bf16 %v5587_v13  ;;  %v5591_v25 = vunpack.c.l.bf16 %v5590_v6 }
 0x1a9   : > { %v1639_v43 = vadd.f32 %v1638_v59, %v5585_v4  ;;  %v1652_v57 = vadd.f32 %v1651_v0, %v5586_v52  ;;  %v1665_v1 = vadd.f32 %v1664_v42, %v5588_v62  ;;  %v5592_v27 = vunpack.c.h.bf16 %v5590_v6 }
 0x1aa   : > { %v1678_v34 = vadd.f32 %v1677_v46, %v5589_v33  ;;  %v1691_v17 = vadd.f32 %v1690_v41, %v5591_v25  ;;  %v5594_v54 = vunpack.c.l.bf16 %v5593_v14  ;;  %v5595_v59 = vunpack.c.h.bf16 %v5593_v14  ;;  %v5604_v33 = vld [vmem:[#allocation99_spill] sm:$0xff] }
 0x1ab   : > { %v1704_v20 = vadd.f32 %v1703_v45, %v5592_v27  ;;  %v5597_v0 = vunpack.c.l.bf16 %v5596_v37  ;;  %v5598_v42 = vunpack.c.h.bf16 %v5596_v37  ;;  %v5600_v46 = vunpack.c.l.bf16 %v5599_v56  ;;  %v5607_v27 = vld [vmem:[#allocation80_spill] sm:$0xff] }
 0x1ac   : > { %v1717_v39 = vadd.f32 %v1716_v47, %v5594_v54  ;;  %v1730_v60 = vadd.f32 %v1729_v26, %v5595_v59  ;;  %v5601_v41 = vunpack.c.h.bf16 %v5599_v56  ;;  %v5602_v45 = vunpack.c.l.bf16 %v4036_v51  ;;  %v5610_v59 = vld [vmem:[#allocation81_spill] sm:$0xff] }
 0x1ad   : > { %v1640_v23 = vadd.f32 %v1639_v43, %v5597_v0  ;;  %v1653_v48 = vadd.f32 %v1652_v57, %v5598_v42  ;;  %v1666_v4 = vadd.f32 %v1665_v1, %v5600_v46  ;;  %v5603_v47 = vunpack.c.h.bf16 %v4036_v51 }
 0x1ae   : > { %v1679_v52 = vadd.f32 %v1678_v34, %v5601_v41  ;;  %v1692_v13 = vadd.f32 %v1691_v17, %v5602_v45  ;;  %v5605_v26 = vunpack.c.l.bf16 %v5604_v33  ;;  %v5606_v43 = vunpack.c.h.bf16 %v5604_v33 }
 0x1af   : > { %v1705_v62 = vadd.f32 %v1704_v20, %v5603_v47  ;;  %v5608_v57 = vunpack.c.l.bf16 %v5607_v27  ;;  %v5609_v1 = vunpack.c.h.bf16 %v5607_v27  ;;  %v5611_v34 = vunpack.c.l.bf16 %v5610_v59 }
 0x1b0   : > { %v1718_v6 = vadd.f32 %v1717_v39, %v5605_v26  ;;  %v1731_v25 = vadd.f32 %v1730_v60, %v5606_v43  ;;  %v5612_v17 = vunpack.c.h.bf16 %v5610_v59  ;;  %v5613_v51 = vunpack.c.l.bf16 %v5449_v53 }
 0x1b1   : > { %v1641_v14 = vadd.f32 %v1640_v23, %v5608_v57  ;;  %v1654_v54 = vadd.f32 %v1653_v48, %v5609_v1  ;;  %v1667_v37 = vadd.f32 %v1666_v4, %v5611_v34  ;;  %v5614_v39 = vunpack.c.h.bf16 %v5449_v53 }
 0x1b2   : > { %v1680_v0 = vadd.f32 %v1679_v52, %v5612_v17  ;;  %v1693_v20 = vadd.f32 %v1692_v13, %v5613_v51  ;;  %v5615_v60 = vunpack.c.l.bf16 %v5450_v2  ;;  %v5616_v23 = vunpack.c.h.bf16 %v5450_v2 }
 0x1b3   : > { %v1706_v42 = vadd.f32 %v1705_v62, %v5614_v39  ;;  %v1642_v41 = vrot.slane %v1641_v14, 4  ;;  %v1655_v48 = vrot.slane %v1654_v54, 4  ;;  %v1668_v45 = vrot.slane %v1667_v37, 4 }
 0x1b4   : > { %v1719_v56 = vadd.f32 %v1718_v6, %v5615_v60  ;;  %v1732_v46 = vadd.f32 %v1731_v25, %v5616_v23  ;;  %v1681_v47 = vrot.slane %v1680_v0, 4  ;;  %v1694_v4 = vrot.slane %v1693_v20, 4 }
 0x1b5   : > { %v1707_v33 = vrot.slane %v1706_v42, 4  ;;  %v1643_v43 = vadd.f32 %v1642_v41, %v1641_v14  ;;  %v1656_v27 = vadd.f32 %v1655_v48, %v1654_v54  ;;  %v1669_v13 = vadd.f32 %v1668_v45, %v1667_v37 }
 0x1b6   : > { %v1720_v26 = vrot.slane %v1719_v56, 4  ;;  %v1733_v52 = vrot.slane %v1732_v46, 4  ;;  %v1682_v57 = vadd.f32 %v1681_v47, %v1680_v0  ;;  %v1695_v53 = vadd.f32 %v1694_v4, %v1693_v20 }
 0x1b7   : > { %v1708_v62 = vadd.f32 %v1707_v33, %v1706_v42  ;;  %v1644_v6 = vrot.slane %v1643_v43, 2  ;;  %v1657_v34 = vrot.slane %v1656_v27, 2  ;;  %v1670_v2 = vrot.slane %v1669_v13, 2 }
 0x1b8   : > { %v1721_v1 = vadd.f32 %v1720_v26, %v1719_v56  ;;  %v1734_v59 = vadd.f32 %v1733_v52, %v1732_v46  ;;  %v1683_v25 = vrot.slane %v1682_v57, 2  ;;  %v1696_v17 = vrot.slane %v1695_v53, 2 }
 0x1b9   : > { %v1709_v51 = vrot.slane %v1708_v62, 2  ;;  %v1645_v23 = vadd.f32 %v1644_v6, %v1643_v43  ;;  %v1658_v16 = vadd.f32 %v1657_v34, %v1656_v27  ;;  %v1671_v15 = vadd.f32 %v1670_v2, %v1669_v13 }
 0x1ba   : > { %v1722_v39 = vrot.slane %v1721_v1, 2  ;;  %v1735_v60 = vrot.slane %v1734_v59, 2  ;;  %v1684_v19 = vadd.f32 %v1683_v25, %v1682_v57  ;;  %v1697_v14 = vadd.f32 %v1696_v17, %v1695_v53  ;;  %v5617_v53 = vld [vmem:[#allocation84_spill] sm:$0xff] }
 0x1bb   : > { %v1710_v54 = vadd.f32 %v1709_v51, %v1708_v62  ;;  %v1646_v20 = vrot.slane %v1645_v23, 1  ;;  %v1659_v42 = vrot.slane %v1658_v16, 1  ;;  %v1672_v56 = vrot.slane %v1671_v15, 1 }
 0x1bc   : > { %v1723_v37 = vadd.f32 %v1722_v39, %v1721_v1  ;;  %v1736_v0 = vadd.f32 %v1735_v60, %v1734_v59  ;;  %v1685_v46 = vrot.slane %v1684_v19, 1  ;;  %v1698_v41 = vrot.slane %v1697_v14, 1  ;;  %v5619_v1 = vld [vmem:[#allocation87_spill] sm:$0xff] }
 0x1bd   : > { %v1711_v48 = vrot.slane %v1710_v54, 1  ;;  %v4628_v4 = vadd.f32 %v1646_v20, %v1645_v23  ;;  %v4630_v33 = vadd.f32 %v1659_v42, %v1658_v16  ;;  %v4632_v26 = vadd.f32 %v1672_v56, %v1671_v15 }
 0x1be   : > { %v1724_v45 = vrot.slane %v1723_v37, 1  ;;  %v1737_v47 = vrot.slane %v1736_v0, 1  ;;  %v4634_v52 = vadd.f32 %v1685_v46, %v1684_v19  ;;  %v4636_v43 = vadd.f32 %v1698_v41, %v1697_v14  ;;  %v5635_v41 = vld [vmem:[#allocation90_spill] sm:$0xff] }
 0x1bf   : > { %v4638_v27 = vadd.f32 %v1711_v48, %v1710_v54  ;;  %v5618_v62 = vunpack.c.l.bf16 %v5617_v53  ;;  %v5620_v59 = vunpack.c.l.bf16 %v5619_v1  ;;  %v5621_v16 = vunpack.c.h.bf16 %v5617_v53 }
 0x1c0   : > { %v4640_v13 = vadd.f32 %v1724_v45, %v1723_v37  ;;  %v4642_v57 = vadd.f32 %v1737_v47, %v1736_v0  ;;  %v5622_v15 = vunpack.c.h.bf16 %v5619_v1  ;;  %v5623_v19 = vunpack.c.l.bf16 %v5451_v7 }
 0x1c1   : > { %v1739_v6 = vadd.f32 %v5620_v59, %v5618_v62  ;;  %v5624_v2 = vunpack.c.l.bf16 %v4076_v63  ;;  %v5625_v17 = vunpack.c.h.bf16 %v5451_v7  ;;  %v5626_v51 = vunpack.c.h.bf16 %v4076_v63 }
 0x1c2   : > { %v1752_v34 = vadd.f32 %v5622_v15, %v5621_v16  ;;  %v5627_v60 = vunpack.c.l.bf16 %v5452_v9  ;;  %v5628_v23 = vunpack.c.l.bf16 %v4080_v55  ;;  %v5629_v54 = vunpack.c.h.bf16 %v5452_v9 }
 0x1c3   : > { %v1765_v25 = vadd.f32 %v5624_v2, %v5623_v19  ;;  %v1778_v39 = vadd.f32 %v5626_v51, %v5625_v17  ;;  %v5630_v37 = vunpack.c.h.bf16 %v4080_v55  ;;  %v5631_v20 = vunpack.c.l.bf16 %v4072_v11  ;;  %v5644_v17 = vld [vmem:[#allocation92_spill] sm:$0xff] }
 0x1c4   : > { %v1791_v14 = vadd.f32 %v5628_v23, %v5627_v60  ;;  %v5632_v42 = vunpack.c.l.bf16 %v4084_v36  ;;  %v5633_v7 = vunpack.c.h.bf16 %v4072_v11  ;;  %v5634_v63 = vunpack.c.h.bf16 %v4084_v36 }
 0x1c5   : > { %v1804_v0 = vadd.f32 %v5630_v37, %v5629_v54  ;;  %v5636_v48 = vunpack.c.l.bf16 %v5635_v41  ;;  %v5637_v47 = vunpack.c.h.bf16 %v5635_v41  ;;  %v5638_v9 = vunpack.c.l.bf16 %v4090_v32 }
 0x1c6   : > { %v1817_v56 = vadd.f32 %v5632_v42, %v5631_v20  ;;  %v1830_v46 = vadd.f32 %v5634_v63, %v5633_v7  ;;  %v5639_v62 = vunpack.c.h.bf16 %v4090_v32  ;;  %v5640_v59 = vunpack.c.l.bf16 %v4094_v50  ;;  %v5653_v7 = vld [vmem:[#allocation95_spill] sm:$0xff] }
 0x1c7   : > { %v1740_v45 = vadd.f32 %v1739_v6, %v5636_v48  ;;  %v1753_v53 = vadd.f32 %v1752_v34, %v5637_v47  ;;  %v1766_v55 = vadd.f32 %v1765_v25, %v5638_v9  ;;  %v5641_v11 = vunpack.c.h.bf16 %v4094_v50 }
 0x1c8   : > { %v1779_v1 = vadd.f32 %v1778_v39, %v5639_v62  ;;  %v1792_v16 = vadd.f32 %v1791_v14, %v5640_v59  ;;  %v5642_v36 = vunpack.c.l.bf16 %v4098_v44  ;;  %v5643_v6 = vunpack.c.h.bf16 %v4098_v44 }
 0x1c9   : > { %v1805_v15 = vadd.f32 %v1804_v0, %v5641_v11  ;;  %v5645_v34 = vunpack.c.l.bf16 %v5644_v17  ;;  %v5646_v25 = vunpack.c.h.bf16 %v5644_v17  ;;  %v5647_v32 = vunpack.c.l.bf16 %v4102_v24  ;;  %v5662_v11 = vld [vmem:[#allocation98_spill] sm:$0xff] }
 0x1ca   : > { %v1818_v19 = vadd.f32 %v1817_v56, %v5642_v36  ;;  %v1831_v2 = vadd.f32 %v1830_v46, %v5643_v6  ;;  %v5648_v23 = vunpack.c.h.bf16 %v4102_v24  ;;  %v5649_v50 = vunpack.c.l.bf16 %v4108_v18 }
 0x1cb   : > { %v1741_v51 = vadd.f32 %v1740_v45, %v5645_v34  ;;  %v1754_v60 = vadd.f32 %v1753_v53, %v5646_v25  ;;  %v1767_v39 = vadd.f32 %v1766_v55, %v5647_v32  ;;  %v5650_v37 = vunpack.c.h.bf16 %v4108_v18 }
 0x1cc   : > { %v1780_v14 = vadd.f32 %v1779_v1, %v5648_v23  ;;  %v1793_v54 = vadd.f32 %v1792_v16, %v5649_v50  ;;  %v5651_v44 = vunpack.c.l.bf16 %v4112_v8  ;;  %v5652_v42 = vunpack.c.h.bf16 %v4112_v8 }
 0x1cd   : > { %v1806_v0 = vadd.f32 %v1805_v15, %v5650_v37  ;;  %v5654_v63 = vunpack.c.l.bf16 %v5653_v7  ;;  %v5655_v41 = vunpack.c.h.bf16 %v5653_v7  ;;  %v5656_v24 = vunpack.c.l.bf16 %v4116_v10 }
 0x1ce   : > { %v1819_v20 = vadd.f32 %v1818_v19, %v5651_v44  ;;  %v1832_v56 = vadd.f32 %v1831_v2, %v5652_v42  ;;  %v5657_v47 = vunpack.c.h.bf16 %v4116_v10  ;;  %v5658_v18 = vunpack.c.l.bf16 %v4120_v3 }
 0x1cf   : > { %v1742_v46 = vadd.f32 %v1741_v51, %v5654_v63  ;;  %v1755_v48 = vadd.f32 %v1754_v60, %v5655_v41  ;;  %v1768_v45 = vadd.f32 %v1767_v39, %v5656_v24  ;;  %v5659_v55 = vunpack.c.h.bf16 %v4120_v3 }
 0x1d0   : > { %v1781_v53 = vadd.f32 %v1780_v14, %v5657_v47  ;;  %v1794_v9 = vadd.f32 %v1793_v54, %v5658_v18  ;;  %v5660_v8 = vunpack.c.l.bf16 %v4124_v61  ;;  %v5661_v59 = vunpack.c.h.bf16 %v4124_v61 }
 0x1d1   : > { %v1807_v62 = vadd.f32 %v1806_v0, %v5659_v55  ;;  %v5663_v15 = vunpack.c.l.bf16 %v5662_v11  ;;  %v5664_v19 = vunpack.c.h.bf16 %v5662_v11  ;;  %v5665_v10 = vunpack.c.l.bf16 %v4128_v30  ;;  %v5685_v55 = vld [vmem:[#allocation109_spill] sm:$0xff] }
 0x1d2   : > { %v1820_v1 = vadd.f32 %v1819_v20, %v5660_v8  ;;  %v1833_v16 = vadd.f32 %v1832_v56, %v5661_v59  ;;  %v5666_v17 = vunpack.c.h.bf16 %v4128_v30  ;;  %v5667_v3 = vunpack.c.l.bf16 %v4132_v38  ;;  %v5673_v30 = vld [vmem:[#allocation106_spill] sm:$0xff] }
 0x1d3   : > { %v1743_v36 = vadd.f32 %v1742_v46, %v5663_v15  ;;  %v1756_v6 = vadd.f32 %v1755_v48, %v5664_v19  ;;  %v1769_v2 = vadd.f32 %v1768_v45, %v5665_v10  ;;  %v5668_v25 = vunpack.c.h.bf16 %v4132_v38  ;;  %v5676_v38 = vld [vmem:[#allocation107_spill] sm:$0xff] }
 0x1d4   : > { %v1782_v34 = vadd.f32 %v1781_v53, %v5666_v17  ;;  %v1795_v51 = vadd.f32 %v1794_v9, %v5667_v3  ;;  %v5669_v61 = vunpack.c.l.bf16 %v4136_v29  ;;  %v5670_v39 = vunpack.c.h.bf16 %v4136_v29  ;;  %v5679_v29 = vld [vmem:[#allocation108_spill] sm:$0xff] }
 0x1d5   : > { %v1808_v60 = vadd.f32 %v1807_v62, %v5668_v25  ;;  %v5671_v14 = vunpack.c.l.bf16 %v5448_v40  ;;  %v5672_v54 = vunpack.c.h.bf16 %v5448_v40  ;;  %v5674_v0 = vunpack.c.l.bf16 %v5673_v30  ;;  %v5682_v40 = vld [vmem:[#allocation103_spill] sm:$0xff] }
 0x1d6   : > { %v1821_v32 = vadd.f32 %v1820_v1, %v5669_v61  ;;  %v1834_v23 = vadd.f32 %v1833_v16, %v5670_v39  ;;  %v5675_v20 = vunpack.c.h.bf16 %v5673_v30  ;;  %v5677_v56 = vunpack.c.l.bf16 %v5676_v38  ;;  %v5688_v16 = vld [vmem:[#allocation110_spill] sm:$0xff] }
 0x1d7   : > { %v1744_v50 = vadd.f32 %v1743_v36, %v5671_v14  ;;  %v1757_v37 = vadd.f32 %v1756_v6, %v5672_v54  ;;  %v1770_v44 = vadd.f32 %v1769_v2, %v5674_v0  ;;  %v5678_v63 = vunpack.c.h.bf16 %v5676_v38 }
 0x1d8   : > { %v1783_v42 = vadd.f32 %v1782_v34, %v5675_v20  ;;  %v1796_v7 = vadd.f32 %v1795_v51, %v5677_v56  ;;  %v5680_v41 = vunpack.c.l.bf16 %v5679_v29  ;;  %v5681_v24 = vunpack.c.h.bf16 %v5679_v29 }
 0x1d9   : > { %v1809_v46 = vadd.f32 %v1808_v60, %v5678_v63  ;;  %v5683_v47 = vunpack.c.l.bf16 %v5682_v40  ;;  %v5684_v18 = vunpack.c.h.bf16 %v5682_v40  ;;  %v5686_v62 = vunpack.c.l.bf16 %v5685_v55 }
 0x1da   : > { %v1822_v48 = vadd.f32 %v1821_v32, %v5680_v41  ;;  %v1835_v45 = vadd.f32 %v1834_v23, %v5681_v24  ;;  %v5687_v1 = vunpack.c.h.bf16 %v5685_v55  ;;  %v5689_v11 = vunpack.c.l.bf16 %v5688_v16 }
 0x1db   : > { %v1745_v53 = vadd.f32 %v1744_v50, %v5683_v47  ;;  %v1758_v9 = vadd.f32 %v1757_v37, %v5684_v18  ;;  %v1771_v8 = vadd.f32 %v1770_v44, %v5686_v62  ;;  %v5690_v36 = vunpack.c.h.bf16 %v5688_v16 }
 0x1dc   : > { %v1784_v59 = vadd.f32 %v1783_v42, %v5687_v1  ;;  %v1797_v15 = vadd.f32 %v1796_v7, %v5689_v11  ;;  %v5691_v6 = vunpack.c.l.bf16 %v5529_v49  ;;  %v5692_v2 = vunpack.c.h.bf16 %v5529_v49 }
 0x1dd   : > { %v1810_v19 = vadd.f32 %v1809_v46, %v5690_v36  ;;  %v1746_v34 = vrot.slane %v1745_v53, 4  ;;  %v1759_v3 = vrot.slane %v1758_v9, 4  ;;  %v1772_v51 = vrot.slane %v1771_v8, 4 }
 0x1de   : > { %v1823_v10 = vadd.f32 %v1822_v48, %v5691_v6  ;;  %v1836_v17 = vadd.f32 %v1835_v45, %v5692_v2  ;;  %v1785_v25 = vrot.slane %v1784_v59, 4  ;;  %v1798_v60 = vrot.slane %v1797_v15, 4 }
 0x1df   : > { %v1811_v61 = vrot.slane %v1810_v19, 4  ;;  %v1747_v23 = vadd.f32 %v1746_v34, %v1745_v53  ;;  %v1760_v14 = vadd.f32 %v1759_v3, %v1758_v9  ;;  %v1773_v50 = vadd.f32 %v1772_v51, %v1771_v8 }
 0x1e0   : > { %v1824_v32 = vrot.slane %v1823_v10, 4  ;;  %v1837_v39 = vrot.slane %v1836_v17, 4  ;;  %v1786_v54 = vadd.f32 %v1785_v25, %v1784_v59  ;;  %v1799_v37 = vadd.f32 %v1798_v60, %v1797_v15 }
 0x1e1   : > { %v1812_v30 = vadd.f32 %v1811_v61, %v1810_v19  ;;  %v1748_v20 = vrot.slane %v1747_v23, 2  ;;  %v1761_v42 = vrot.slane %v1760_v14, 2  ;;  %v1774_v49 = vrot.slane %v1773_v50, 2 }
 0x1e2   : > { %v1825_v0 = vadd.f32 %v1824_v32, %v1823_v10  ;;  %v1838_v44 = vadd.f32 %v1837_v39, %v1836_v17  ;;  %v1787_v38 = vrot.slane %v1786_v54, 2  ;;  %v1800_v56 = vrot.slane %v1799_v37, 2 }
 0x1e3   : > { %v1813_v7 = vrot.slane %v1812_v30, 2  ;;  %v1749_v29 = vadd.f32 %v1748_v20, %v1747_v23  ;;  %v1762_v41 = vadd.f32 %v1761_v42, %v1760_v14  ;;  %v1775_v48 = vadd.f32 %v1774_v49, %v1773_v50 }
 0x1e4   : > { %v1826_v63 = vrot.slane %v1825_v0, 2  ;;  %v1839_v46 = vrot.slane %v1838_v44, 2  ;;  %v1788_v24 = vadd.f32 %v1787_v38, %v1786_v54  ;;  %v1801_v45 = vadd.f32 %v1800_v56, %v1799_v37  ;;  %v1336_v37 = vld [vmem:[%s2647_s18] sm:$0xff]  ;;  %v1337_v56 = vld [vmem:[%s2647_s18 + $0x8] sm:$0xff] }
 0x1e5   : > { %v1814_v40 = vadd.f32 %v1813_v7, %v1812_v30  ;;  %v1750_v18 = vrot.slane %v1749_v29, 1  ;;  %v1763_v9 = vrot.slane %v1762_v41, 1  ;;  %v1776_v55 = vrot.slane %v1775_v48, 1 }
 0x1e6   : > { %v1827_v47 = vadd.f32 %v1826_v63, %v1825_v0  ;;  %v1840_v53 = vadd.f32 %v1839_v46, %v1838_v44  ;;  %v1789_v62 = vrot.slane %v1788_v24, 1  ;;  %v1802_v8 = vrot.slane %v1801_v45, 1 }
 0x1e7   : > { %v1815_v1 = vrot.slane %v1814_v40, 1  ;;  %v1751_v11 = vadd.f32 %v1750_v18, %v1749_v29  ;;  %v1764_v15 = vadd.f32 %v1763_v9, %v1762_v41  ;;  %v1777_v36 = vadd.f32 %v1776_v55, %v1775_v48  ;;  %v1338_v29 = vld [vmem:[%s2647_s18 + $0x10] sm:$0xff] }
 0x1e8   : > { %v1828_v59 = vrot.slane %v1827_v47, 1  ;;  %v1841_v16 = vrot.slane %v1840_v53, 1  ;;  %v1790_v19 = vadd.f32 %v1789_v62, %v1788_v24  ;;  %v5693_v6 = vrot.slane %v4480_v22, 1 }
 0x1e9   : > { %v5694_v2 = vrot.slane %v4482_v12, 1  ;;  %v1803_v34 = vadd.f32 %v1802_v8, %v1801_v45  ;;  %v1816_v3 = vadd.f32 %v1815_v1, %v1814_v40  ;;  %v1867_v60 = vcombine.low %v4486_v28, %v4488_v5 }
 0x1ea   : > { %v1595_v10 = vadd.f32 %v5693_v6, %v4480_v22  ;;  %v1829_v51 = vadd.f32 %v1828_v59, %v1827_v47  ;;  %v1842_v25 = vadd.f32 %v1841_v16, %v1840_v53  ;;  %v1870_v61 = vcombine.low %v4496_v31, %v4498_v35 }
 0x1eb   : > { %v1608_v17 = vadd.f32 %v5694_v2, %v4482_v12  ;;  %v1868_v32 = vcombine.low %v4492_v21, %v4494_v58  ;;  %v1871_v22 = vcombine.low %v4628_v4, %v4630_v33  ;;  %v1873_v39 = vcombine.low %v4636_v43, %v4638_v27 }
 0x1ec   : > { %v1874_v12 = vcombine.low %v4640_v13, %v4642_v57  ;;  %v1872_v23 = vcombine.low %v4632_v26, %v4634_v52  ;;  %v1875_v14 = vcombine.low %v1751_v11, %v1764_v15  ;;  %v1876_v28 = vcombine.low %v1777_v36, %v1790_v19 }
 0x1ed   : > { %v1877_v5 = vcombine.low %v1803_v34, %v1816_v3  ;;  %v1879_v50 = vrot.slane %v1870_v61, 7  ;;  %v1884_v31 = vrot.slane %v1873_v39, 6  ;;  %v1869_v21 = vcombine.low %v1595_v10, %v1608_v17 }
 0x1ee   : > { %v1878_v58 = vcombine.low %v1829_v51, %v1842_v25  ;;  %vm1885_vm8 = vcmask 1042434   ;;  %vm1887_vm9 = vcmask 1046534   ;;  %v1889_v4 = vrot.slane %v1876_v28, 5 }
 0x1ef   : > { %v1881_v35 = vsel %vm1880_vm6, %v1879_v50, %v1867_v60  ;;  %v1894_v33 = vrot.slane %v1871_v22, 7  ;;  %v1897_v43 = vrot.slane %v1874_v12, 6  ;;  %vm1890_vm10 = vcmask 1043459  }
 0x1f0   : > { %v1883_v27 = vsel %vm1882_vm7, %v1879_v50, %v1881_v35  ;;  %v1903_v26 = vrot.slane %v1872_v23, 7  ;;  %v1906_v52 = vrot.slane %v1875_v14, 6  ;;  %vm1892_vm11 = vcmask 1047559  }
 0x1f1   : > { %v1886_v13 = vsel %vm1885_vm8, %v1884_v31, %v1883_v27  ;;  %v1895_v57 = vsel %vm1880_vm6, %v1894_v33, %v1868_v32  ;;  %v1900_v54 = vrot.slane %v1877_v5, 5  ;;  %v1909_v20 = vrot.slane %v1878_v58, 5 }
 0x1f2   : > { %v1888_v30 = vsel %vm1887_vm9, %v1884_v31, %v1886_v13  ;;  %v1896_v0 = vsel %vm1882_vm7, %v1894_v33, %v1895_v57  ;;  %v1904_v44 = vsel %vm1880_vm6, %v1903_v26, %v1869_v21 }
 0x1f3   : > { %v1891_v42 = vsel %vm1890_vm10, %v1889_v4, %v1888_v30  ;;  %v1898_v49 = vsel %vm1885_vm8, %v1897_v43, %v1896_v0  ;;  %v1905_v38 = vsel %vm1882_vm7, %v1903_v26, %v1904_v44 }
 0x1f4   : > { %v1893_v7 = vsel %vm1892_vm11, %v1889_v4, %v1891_v42  ;;  %v1899_v63 = vsel %vm1887_vm9, %v1897_v43, %v1898_v49  ;;  %v1907_v46 = vsel %vm1885_vm8, %v1906_v52, %v1905_v38 }
 0x1f5   : > { %v1901_v41 = vsel %vm1890_vm10, %v1900_v54, %v1899_v63  ;;  %v1908_v48 = vsel %vm1887_vm9, %v1906_v52, %v1907_v46  ;;  %v1915_v24 = vadd.f32 %v1893_v7, %v1336_v37 }
 0x1f6   : > { %v1902_v45 = vsel %vm1892_vm11, %v1900_v54, %v1901_v41  ;;  %v1910_v40 = vsel %vm1890_vm10, %v1909_v20, %v1908_v48 }
 0x1f7   : > { %v1911_v47 = vsel %vm1892_vm11, %v1909_v20, %v1910_v40  ;;  %v1916_v53 = vadd.f32 %v1902_v45, %v1337_v56  ;;  %1918 = vst [vmem:[%s2647_s18] sm:$0xff] %v1915_v24 }
 0x1f8   : > { %v1917_v18 = vadd.f32 %v1911_v47, %v1338_v29 }
 0x1f9   : > { %1919 = vst [vmem:[%s2647_s18 + $0x8] sm:$0xff] %v1916_v53 }
 0x1fa   : > { %1920 = vst [vmem:[%s2647_s18 + $0x10] sm:$0xff] %v1917_v18 }
 0x1fb PF: > { %s11_s12 = sadd.s32 1, %s2298_s12   ;;  %s5695_s6 = smov %s2278_s7 }
 0x1fc   : > { %p8_p10 = scmp.ge.s32.totalorder %s11_s12, 6   ;;  %s5696_s7 = smov %s2394_s21 }
 0x1fd   : > { %s5697_s8 = smov %s2290_s10  ;;  %s5698_s9 = smov %s2294_s11 }
 0x1fe   : > { %s5699_s10 = smov %s5702_s13  ;;  %s5700_s11 = smov %s5708_s14 }
 0x1ff   :  { %10 = sbr.rel (!%p8_p10) target bundleno = 4 (0x4), region = 125 }

// kernel: vader_forward.3
= control target key start
LH: loop header
LB: loop body
LE: loop exit
PB: predicated region body
PF: predicated region fallthrough
CT: control target
= control target key end

     0   :  { %vm38_vm0 = vcmask 1043456   ;;  %s1571_s1 = inlined_call_operand.vmem [shape: bf16[768,256], index: 1, kind: input, shape index: {}]   ;;  %s1572_s0 = inlined_call_operand.vmem [shape: f32[2,4,768], index: 0, kind: input, shape index: {}]   ;;  %s1573_s2 = inlined_call_operand.vmem [shape: f32[1,256], index: 2, kind: input, shape index: {}]   ;;  %s1574_s3 = inlined_call_operand.vmem [shape: f32[4,256], index: 3, kind: output, shape index: {}]  }
   0x1   :  { %v1012_v0 = vld [vmem:[%s1571_s1 + $0x74] ss:$8 sps:$4 sm:$0xff]   ;;  %v1014_v1 = vld [vmem:[%s1571_s1 + $0x70] ss:$8 sps:$4 sm:$0xff]   ;;  %v1018_v4 = vld [vmem:[%s1571_s1 + $0x64] ss:$8 sps:$4 sm:$0xff]  }
   0x2   :  { %784 = vmatprep.subr.bf16.mxu0 %v1012_v0  ;;  %v1015_v2 = vld [vmem:[%s1571_s1 + $0x174] ss:$8 sps:$4 sm:$0xff]   ;;  %v1017_v3 = vld [vmem:[%s1571_s1 + $0x170] ss:$8 sps:$4 sm:$0xff]   ;;  %v1020_v5 = vld [vmem:[%s1571_s1 + $0x60] ss:$8 sps:$4 sm:$0xff]  }
   0x3   :  { %785 = vmatpush1.bf16.msra.mxu0 %v1014_v1  ;;  %825 = vmatprep.subr.bf16.mxu1 %v1015_v2  ;;  %v1021_v6 = vld [vmem:[%s1571_s1 + $0x164] ss:$8 sps:$4 sm:$0xff]   ;;  %v1023_v7 = vld [vmem:[%s1571_s1 + $0x160] ss:$8 sps:$4 sm:$0xff]   ;;  %v1024_v8 = vld [vmem:[%s1571_s1 + $0x54] ss:$8 sps:$4 sm:$0xff]  }
   0x4   :  { %826 = vmatpush1.bf16.msra.mxu1 %v1017_v3  ;;  %786 = vmatprep.subr.bf16.mxu0 %v1018_v4  ;;  %v1026_v9 = vld [vmem:[%s1571_s1 + $0x50] ss:$8 sps:$4 sm:$0xff]   ;;  %v1027_v10 = vld [vmem:[%s1571_s1 + $0x154] ss:$8 sps:$4 sm:$0xff]   ;;  %v1030_v11 = vld [vmem:[%s1571_s1 + $0x44] ss:$8 sps:$4 sm:$0xff]  }
   0x5   :  { %827 = vmatprep.subr.bf16.mxu1 %v1021_v6  ;;  %v1029_v12 = vld [vmem:[%s1571_s1 + $0x150] ss:$8 sps:$4 sm:$0xff]   ;;  %v1033_v13 = vld [vmem:[%s1571_s1 + $0x144] ss:$8 sps:$4 sm:$0xff]   ;;  %v1032_v14 = vld [vmem:[%s1571_s1 + $0x40] ss:$8 sps:$4 sm:$0xff]  }
   0x6   :  { %v1036_v15 = vld [vmem:[%s1571_s1 + $0x34] ss:$8 sps:$4 sm:$0xff]   ;;  %v1035_v16 = vld [vmem:[%s1571_s1 + $0x140] ss:$8 sps:$4 sm:$0xff]   ;;  %v1038_v18 = vld [vmem:[%s1571_s1 + $0x30] ss:$8 sps:$4 sm:$0xff]  }
   0x7   :  { %787 = vmatpush1.bf16.msra.mxu0 %v1020_v5  ;;  %v1039_v17 = vld [vmem:[%s1571_s1 + $0x134] ss:$8 sps:$4 sm:$0xff]   ;;  %v1042_v19 = vld [vmem:[%s1571_s1 + $0x24] ss:$8 sps:$4 sm:$0xff]   ;;  %v1041_v20 = vld [vmem:[%s1571_s1 + $0x130] ss:$8 sps:$4 sm:$0xff]  }
   0x8   :  { %788 = vmatprep.subr.bf16.mxu0 %v1024_v8  ;;  %828 = vmatpush1.bf16.msra.mxu1 %v1023_v7  ;;  %v1045_v21 = vld [vmem:[%s1571_s1 + $0x124] ss:$8 sps:$4 sm:$0xff]   ;;  %v1044_v22 = vld [vmem:[%s1571_s1 + $0x20] ss:$8 sps:$4 sm:$0xff]   ;;  %v1048_v23 = vld [vmem:[%s1571_s1 + $0x14] ss:$8 sps:$4 sm:$0xff]  }
   0x9   :  { %829 = vmatprep.subr.bf16.mxu1 %v1027_v10  ;;  %v1047_v24 = vld [vmem:[%s1571_s1 + $0x120] ss:$8 sps:$4 sm:$0xff]   ;;  %v1051_v25 = vld [vmem:[%s1571_s1 + $0x114] ss:$8 sps:$4 sm:$0xff]   ;;  %v1050_v26 = vld [vmem:[%s1571_s1 + $0x10] ss:$8 sps:$4 sm:$0xff]  }
   0xa   :  { %v1054_v27 = vld [vmem:[%s1571_s1 + $0x4] ss:$8 sps:$4 sm:$0xff]   ;;  %v1053_v28 = vld [vmem:[%s1571_s1 + $0x110] ss:$8 sps:$4 sm:$0xff]   ;;  %v1056_v30 = vld [vmem:[%s1571_s1] ss:$8 sps:$4 sm:$0xff]  }
   0xb   :  { %789 = vmatpush1.bf16.msra.mxu0 %v1026_v9  ;;  %v1057_v29 = vld [vmem:[%s1571_s1 + $0x104] ss:$8 sps:$4 sm:$0xff]   ;;  %v1060_v31 = vld [vmem:[%s1571_s1 + $0xf4] ss:$8 sps:$4 sm:$0xff]   ;;  %v1059_v32 = vld [vmem:[%s1571_s1 + $0x100] ss:$8 sps:$4 sm:$0xff]  }
   0xc   :  { %790 = vmatprep.subr.bf16.mxu0 %v1030_v11  ;;  %830 = vmatpush1.bf16.msra.mxu1 %v1029_v12  ;;  %v1063_v33 = vld [vmem:[%s1571_s1 + $0x1f4] ss:$8 sps:$4 sm:$0xff]   ;;  %v1062_v34 = vld [vmem:[%s1571_s1 + $0xf0] ss:$8 sps:$4 sm:$0xff]   ;;  %v1066_v35 = vld [vmem:[%s1571_s1 + $0xe4] ss:$8 sps:$4 sm:$0xff]  }
   0xd   :  { %831 = vmatprep.subr.bf16.mxu1 %v1033_v13  ;;  %v1065_v36 = vld [vmem:[%s1571_s1 + $0x1f0] ss:$8 sps:$4 sm:$0xff]   ;;  %v1069_v37 = vld [vmem:[%s1571_s1 + $0x1e4] ss:$8 sps:$4 sm:$0xff]   ;;  %v1068_v38 = vld [vmem:[%s1571_s1 + $0xe0] ss:$8 sps:$4 sm:$0xff]  }
   0xe   :  { %v1072_v39 = vld [vmem:[%s1571_s1 + $0xd4] ss:$8 sps:$4 sm:$0xff]   ;;  %v1071_v40 = vld [vmem:[%s1571_s1 + $0x1e0] ss:$8 sps:$4 sm:$0xff]   ;;  %v1074_v42 = vld [vmem:[%s1571_s1 + $0xd0] ss:$8 sps:$4 sm:$0xff]  }
   0xf   :  { %791 = vmatpush1.bf16.msra.mxu0 %v1032_v14  ;;  %v1075_v41 = vld [vmem:[%s1571_s1 + $0x1d4] ss:$8 sps:$4 sm:$0xff]   ;;  %v1078_v43 = vld [vmem:[%s1571_s1 + $0xc4] ss:$8 sps:$4 sm:$0xff]   ;;  %v1077_v44 = vld [vmem:[%s1571_s1 + $0x1d0] ss:$8 sps:$4 sm:$0xff]  }
  0x10   :  { %792 = vmatprep.subr.bf16.mxu0 %v1036_v15  ;;  %832 = vmatpush1.bf16.msra.mxu1 %v1035_v16  ;;  %v1081_v45 = vld [vmem:[%s1571_s1 + $0x1c4] ss:$8 sps:$4 sm:$0xff]   ;;  %v17_v47 = vld [vmem:[%s1572_s0 + $0x18] sm:$0xff]  ;;  %v1080_v48 = vld [vmem:[%s1571_s1 + $0xc0] ss:$8 sps:$4 sm:$0xff]  }
  0x11   :  { %833 = vmatprep.subr.bf16.mxu1 %v1039_v17  ;;  %v14_v46 = vld [vmem:[%s1572_s0] sm:$0xff]  ;;  %v29_v50 = vcombine.high %v17_v47, %v17_v47  ;;  %v40_v52 = vsel %vm38_vm0, %v17_v47, 0.0  ;;  %v1084_v54 = vld [vmem:[%s1571_s1 + $0xb4] ss:$8 sps:$4 sm:$0xff]   ;;  %v15_v56 = vld [vmem:[%s1572_s0 + $0x8] sm:$0xff] }
  0x12   :  { %v26_v49 = vcombine.high %v14_v46, %v14_v46  ;;  %v39_v51 = vsel %vm38_vm0, %v14_v46, 0.0  ;;  %v1083_v53 = vld [vmem:[%s1571_s1 + $0x1c0] ss:$8 sps:$4 sm:$0xff]   ;;  %v27_v60 = vcombine.high %v15_v56, %v15_v56  ;;  %v45_v61 = vsel %vm38_vm0, %v15_v56, 0.0  ;;  %v1087_v62 = vld [vmem:[%s1571_s1 + $0x1b4] ss:$8 sps:$4 sm:$0xff]  }
  0x13   :  { %793 = vmatpush1.bf16.msra.mxu0 %v1038_v18  ;;  %v41_v55 = vadd.f32 %v40_v52, %v39_v51  ;;  %v43_v58 = vsel %vm38_vm0, %v29_v50, 0.0  ;;  %v18_v59 = vld [vmem:[%s1572_s0 + $0x20] sm:$0xff]  ;;  %v1086_v3 = vld [vmem:[%s1571_s1 + $0xb0] ss:$8 sps:$4 sm:$0xff]  }
  0x14   :  { %794 = vmatprep.subr.bf16.mxu0 %v1042_v19  ;;  %834 = vmatpush1.bf16.msra.mxu1 %v1041_v20  ;;  %v42_v57 = vsel %vm38_vm0, %v26_v49, 0.0  ;;  %v30_v1 = vcombine.high %v18_v59, %v18_v59  ;;  %v46_v2 = vsel %vm38_vm0, %v18_v59, 0.0  ;;  %v1089_v4 = vld [vmem:[%s1571_s1 + $0x1b0] ss:$8 sps:$4 sm:$0xff]   ;;  %v48_v5 = vsel %vm38_vm0, %v27_v60, 0.0 }
  0x15   :  { %835 = vmatprep.subr.bf16.mxu1 %v1045_v21  ;;  %v44_v63 = vadd.f32 %v43_v58, %v42_v57  ;;  %v1361_v0 = vmul.f32 0.007352941, %v41_v55  ;;  %v47_v6 = vadd.f32 %v46_v2, %v45_v61  ;;  %v1090_v7 = vld [vmem:[%s1571_s1 + $0xa4] ss:$8 sps:$4 sm:$0xff]   ;;  %v1092_v16 = vld [vmem:[%s1571_s1 + $0xa0] ss:$8 sps:$4 sm:$0xff]  }
  0x16   :  { %v49_v10 = vsel %vm38_vm0, %v30_v1, 0.0  ;;  %v1093_v14 = vld [vmem:[%s1571_s1 + $0x1a4] ss:$8 sps:$4 sm:$0xff]   ;;  %v1096_v21 = vld [vmem:[%s1571_s1 + $0x94] ss:$8 sps:$4 sm:$0xff]  }
  0x17   :  { %795 = vmatpush1.bf16.msra.mxu0 %v1044_v22  ;;  %v1374_v8 = vmul.f32 0.007352941, %v44_v63  ;;  %v63_v9 = vsel %vm38_vm0, %v1361_v0, 0.0  ;;  %v50_v12 = vadd.f32 %v49_v10, %v48_v5  ;;  %v1379_v13 = vmul.f32 0.007352941, %v47_v6  ;;  %v16_v63 = vld [vmem:[%s1572_s0 + $0x10] sm:$0xff] }
  0x18   :  { %796 = vmatprep.subr.bf16.mxu0 %v1048_v23  ;;  %836 = vmatpush1.bf16.msra.mxu1 %v1047_v24  ;;  %v64_v11 = vrot.slane %v63_v9, 4  ;;  %v1095_v23 = vld [vmem:[%s1571_s1 + $0x1a0] ss:$8 sps:$4 sm:$0xff]  }
  0x19   :  { %837 = vmatprep.subr.bf16.mxu1 %v1051_v25  ;;  %v70_v15 = vsel %vm38_vm0, %v1374_v8, 0.0  ;;  %v60_v19 = vmul.f32 0.007352941, %v50_v12  ;;  %v77_v20 = vsel %vm38_vm0, %v1379_v13, 0.0  ;;  %v1109_v49 = vld [vmem:[%s1571_s1 + $0x180] ss:$8 sps:$4 sm:$0xff]  }
  0x1a   :  { %v71_v17 = vrot.slane %v70_v15, 4  ;;  %v65_v18 = vadd.f32 %v64_v11, %v63_v9  ;;  %v78_v22 = vrot.slane %v77_v20, 4 }
  0x1b   :  { %797 = vmatpush1.bf16.msra.mxu0 %v1050_v26  ;;  %v84_v26 = vsel %vm38_vm0, %v60_v19, 0.0 }
  0x1c   :  { %798 = vmatprep.subr.bf16.mxu0 %v1054_v27  ;;  %838 = vmatpush1.bf16.msra.mxu1 %v1053_v28  ;;  %v72_v24 = vadd.f32 %v71_v17, %v70_v15  ;;  %v66_v25 = vrot.slane %v65_v18, 2  ;;  %v1099_v27 = vld [vmem:[%s1571_s1 + $0x194] ss:$8 sps:$4 sm:$0xff]   ;;  %v85_v28 = vrot.slane %v84_v26, 4 }
  0x1d   :  { %839 = vmatprep.subr.bf16.mxu1 %v1057_v29  ;;  %v79_v29 = vadd.f32 %v78_v22, %v77_v20 }
  0x1f   :  { %799 = vmatpush1.bf16.msra.mxu0 %v1056_v30  ;;  %v1098_v30 = vld [vmem:[%s1571_s1 + $0x90] ss:$8 sps:$4 sm:$0xff]  }
  0x20   :  { %800 = vmatprep.subr.bf16.mxu0 %v1060_v31  ;;  %840 = vmatpush1.bf16.msra.mxu1 %v1059_v32  ;;  %v73_v31 = vrot.slane %v72_v24, 2  ;;  %v67_v32 = vadd.f32 %v66_v25, %v65_v18 }
  0x21   :  { %841 = vmatprep.subr.bf16.mxu1 %v1063_v33  ;;  %v1102_v33 = vld [vmem:[%s1571_s1 + $0x84] ss:$8 sps:$4 sm:$0xff]  }
  0x23   :  { %801 = vmatpush2.bf16.msra.mxu0 %v1062_v34  ;;  %v86_v34 = vadd.f32 %v85_v28, %v84_v26 }
  0x24   :  { %802 = vmatprep.subr.bf16.mxu0 %v1066_v35  ;;  %842 = vmatpush2.bf16.msra.mxu1 %v1065_v36  ;;  %v80_v35 = vrot.slane %v79_v29, 2  ;;  %v1101_v36 = vld [vmem:[%s1571_s1 + $0x190] ss:$8 sps:$4 sm:$0xff]  }
  0x25   :  { %843 = vmatprep.subr.bf16.mxu1 %v1069_v37  ;;  %v74_v37 = vadd.f32 %v73_v31, %v72_v24 }
  0x27   :  { %803 = vmatpush2.bf16.msra.mxu0 %v1068_v38  ;;  %v68_v38 = vrot.slane %v67_v32, 1 }
  0x28   :  { %804 = vmatprep.subr.bf16.mxu0 %v1072_v39  ;;  %844 = vmatpush2.bf16.msra.mxu1 %v1071_v40  ;;  %v1105_v39 = vld [vmem:[%s1571_s1 + $0x184] ss:$8 sps:$4 sm:$0xff]   ;;  %v87_v40 = vrot.slane %v86_v34, 2 }
  0x29   :  { %845 = vmatprep.subr.bf16.mxu1 %v1075_v41  ;;  %v81_v41 = vadd.f32 %v80_v35, %v79_v29 }
  0x2a   :  { %v88_v46 = vadd.f32 %v87_v40, %v86_v34 }
  0x2b   :  { %805 = vmatpush2.bf16.msra.mxu0 %v1074_v42  ;;  %v1104_v42 = vld [vmem:[%s1571_s1 + $0x80] ss:$8 sps:$4 sm:$0xff]   ;;  %v82_v47 = vrot.slane %v81_v41, 1 }
  0x2c   :  { %806 = vmatprep.subr.bf16.mxu0 %v1078_v43  ;;  %846 = vmatpush2.bf16.msra.mxu1 %v1077_v44  ;;  %v75_v43 = vrot.slane %v74_v37, 1  ;;  %v69_v44 = vadd.f32 %v68_v38, %v67_v32  ;;  %v89_v51 = vrot.slane %v88_v46, 1 }
  0x2d   :  { %847 = vmatprep.subr.bf16.mxu1 %v1081_v45  ;;  %v1112_v45 = vld [vmem:[%s1571_s1 + $0x274] ss:$8 sps:$4 sm:$0xff]   ;;  %v83_v52 = vadd.f32 %v82_v47, %v81_v41 }
  0x2e   :  { %v106_v50 = vmul.f32 0.25, %v69_v44  ;;  %v90_v55 = vadd.f32 %v89_v51, %v88_v46 }
  0x2f   :  { %807 = vmatpush2.bf16.msra.mxu0 %v1080_v48  ;;  %v76_v48 = vadd.f32 %v75_v43, %v74_v37  ;;  %v108_v56 = vmul.f32 0.25, %v83_v52 }
  0x30   :  { %808 = vmatprep.subr.bf16.mxu0 %v1084_v54  ;;  %848 = vmatpush2.bf16.msra.mxu1 %v1083_v53  ;;  %v1423_v54 = vsub.f32 %v1361_v0, %v106_v50  ;;  %v109_v59 = vmul.f32 0.25, %v90_v55  ;;  %v19_v0 = vld [vmem:[%s1572_s0 + $0x28] sm:$0xff] }
  0x31   :  { %849 = vmatprep.subr.bf16.mxu1 %v1087_v62  ;;  %v107_v53 = vmul.f32 0.25, %v76_v48  ;;  %v1431_v60 = vsub.f32 %v1379_v13, %v108_v56  ;;  %v31_v6 = vcombine.high %v19_v0, %v19_v0 }
  0x32   :  { %v118_v58 = vmul.f32 %v1423_v54, %v1423_v54  ;;  %v1442_v2 = vsub.f32 %v60_v19, %v109_v59 }
  0x33   :  { %809 = vmatpush2.bf16.msra.mxu0 %v1086_v3  ;;  %v1426_v57 = vsub.f32 %v1374_v8, %v107_v53  ;;  %v120_v3 = vmul.f32 %v1431_v60, %v1431_v60  ;;  %v52_v8 = vsel %vm38_vm0, %v19_v0, 0.0  ;;  %v55_v15 = vsel %vm38_vm0, %v31_v6, 0.0 }
  0x34   :  { %810 = vmatprep.subr.bf16.mxu0 %v1090_v7  ;;  %850 = vmatpush2.bf16.msra.mxu1 %v1089_v4  ;;  %v124_v62 = vsel %vm38_vm0, %v118_v58, 0.0  ;;  %v28_v4 = vcombine.high %v16_v63, %v16_v63  ;;  %v51_v7 = vsel %vm38_vm0, %v16_v63, 0.0  ;;  %v121_v11 = vmul.f32 %v1442_v2, %v1442_v2 }
  0x35   :  { %851 = vmatprep.subr.bf16.mxu1 %v1093_v14  ;;  %v119_v61 = vmul.f32 %v1426_v57, %v1426_v57  ;;  %v125_v1 = vrot.slane %v124_v62, 4  ;;  %v138_v12 = vsel %vm38_vm0, %v120_v3, 0.0 }
  0x36   :  { %v139_v13 = vrot.slane %v138_v12, 4  ;;  %v54_v14 = vsel %vm38_vm0, %v28_v4, 0.0  ;;  %v145_v19 = vsel %vm38_vm0, %v121_v11, 0.0 }
  0x37   :  { %811 = vmatpush2.bf16.msra.mxu0 %v1092_v16  ;;  %v131_v5 = vsel %vm38_vm0, %v119_v61, 0.0  ;;  %v126_v10 = vadd.f32 %v125_v1, %v124_v62  ;;  %v53_v16 = vadd.f32 %v52_v8, %v51_v7  ;;  %v56_v20 = vadd.f32 %v55_v15, %v54_v14 }
  0x38   :  { %812 = vmatprep.subr.bf16.mxu0 %v1096_v21  ;;  %852 = vmatpush2.bf16.msra.mxu1 %v1095_v23  ;;  %v132_v9 = vrot.slane %v131_v5, 4  ;;  %v146_v21 = vrot.slane %v145_v19, 4  ;;  %v140_v22 = vadd.f32 %v139_v13, %v138_v12 }
  0x39   :  { %853 = vmatprep.subr.bf16.mxu1 %v1099_v27  ;;  %v127_v18 = vrot.slane %v126_v10, 2  ;;  %v1455_v23 = vmul.f32 0.007352941, %v53_v16  ;;  %v62_v26 = vmul.f32 0.007352941, %v56_v20 }
  0x3a   :  { %v133_v17 = vadd.f32 %v132_v9, %v131_v5  ;;  %v147_v27 = vadd.f32 %v146_v21, %v145_v19  ;;  %v141_v28 = vrot.slane %v140_v22, 2  ;;  %v1110_v20 = vld [vmem:[%s1571_s1 + $0x270] ss:$8 sps:$4 sm:$0xff]  }
  0x3b   :  { %813 = vmatpush2.bf16.msra.mxu0 %v1098_v30  ;;  %v128_v25 = vadd.f32 %v127_v18, %v126_v10  ;;  %v91_v29 = vsel %vm38_vm0, %v1455_v23, 0.0  ;;  %v98_v32 = vsel %vm38_vm0, %v62_v26, 0.0 }
  0x3c   :  { %814 = vmatprep.subr.bf16.mxu0 %v1102_v33  ;;  %854 = vmatpush2.bf16.msra.mxu1 %v1101_v36  ;;  %v134_v24 = vrot.slane %v133_v17, 2  ;;  %v92_v33 = vrot.slane %v91_v29, 4  ;;  %v148_v34 = vrot.slane %v147_v27, 2  ;;  %v142_v35 = vadd.f32 %v141_v28, %v140_v22 }
  0x3d   :  { %855 = vmatprep.subr.bf16.mxu1 %v1105_v39  ;;  %v129_v31 = vrot.slane %v128_v25, 1  ;;  %v99_v36 = vrot.slane %v98_v32, 4 }
  0x3e   :  { %v135_v30 = vadd.f32 %v134_v24, %v133_v17  ;;  %v93_v39 = vadd.f32 %v92_v33, %v91_v29  ;;  %v149_v40 = vadd.f32 %v148_v34, %v147_v27  ;;  %v143_v41 = vrot.slane %v142_v35, 1  ;;  %v1118_v29 = vld [vmem:[%s1571_s1 + $0x250] ss:$8 sps:$4 sm:$0xff]   ;;  %v1121_v34 = vld [vmem:[%s1571_s1 + $0x240] ss:$8 sps:$4 sm:$0xff]  }
  0x3f   :  { %815 = vmatpush2.bf16.msra.mxu0 %v1104_v42  ;;  %v130_v38 = vadd.f32 %v129_v31, %v128_v25  ;;  %v100_v42 = vadd.f32 %v99_v36, %v98_v32  ;;  %v1123_v32 = vld [vmem:[%s1571_s1 + $0x244] ss:$8 sps:$4 sm:$0xff]  }
  0x40   :  { %866 = vmatprep.subr.bf16.mxu0 %v1112_v45  ;;  %856 = vmatpush2.bf16.msra.mxu1 %v1109_v49  ;;  %v136_v37 = vrot.slane %v135_v30, 1  ;;  %v150_v45 = vrot.slane %v149_v40, 1  ;;  %v144_v46 = vadd.f32 %v143_v41, %v142_v35  ;;  %v94_v50 = vrot.slane %v93_v39, 2  ;;  %v1126_v35 = vld [vmem:[%s1571_s1 + $0x234] ss:$8 sps:$4 sm:$0xff]  }
  0x41   :  { %v166_v44 = vmul.f32 0.25, %v130_v38  ;;  %v101_v47 = vrot.slane %v100_v42, 2  ;;  %v1129_v38 = vld [vmem:[%s1571_s1 + $0x224] ss:$8 sps:$4 sm:$0xff]   ;;  %v1132_v41 = vld [vmem:[%s1571_s1 + $0x214] ss:$8 sps:$4 sm:$0xff]  }
  0x42   :  { %v137_v43 = vadd.f32 %v136_v37, %v135_v30  ;;  %v151_v51 = vadd.f32 %v150_v45, %v149_v40  ;;  %v168_v52 = vmul.f32 0.25, %v144_v46  ;;  %v95_v61 = vadd.f32 %v94_v50, %v93_v39  ;;  %v1124_v37 = vld [vmem:[%s1571_s1 + $0x230] ss:$8 sps:$4 sm:$0xff]   ;;  %v1127_v40 = vld [vmem:[%s1571_s1 + $0x220] ss:$8 sps:$4 sm:$0xff]  }
  0x43   :  { %v172_v49 = vadd.f32 1e-05, %v166_v44  ;;  %v102_v53 = vadd.f32 %v101_v47, %v100_v42  ;;  %v1130_v44 = vld [vmem:[%s1571_s1 + $0x210] ss:$8 sps:$4 sm:$0xff]   ;;  %v1135_v46 = vld [vmem:[%s1571_s1 + $0x204] ss:$8 sps:$4 sm:$0xff]  }
  0x44   :  { %v167_v48 = vmul.f32 0.25, %v137_v43  ;;  %v169_v56 = vmul.f32 0.25, %v151_v51  ;;  %v174_v58 = vadd.f32 1e-05, %v168_v52  ;;  %v96_v1 = vrot.slane %v95_v61, 1 }
  0x45   :  { %1162 = vrsqrt.f32 %v172_v49  ;;  %v103_v59 = vrot.slane %v102_v53, 1  ;;  %v1133_v49 = vld [vmem:[%s1571_s1 + $0x200] ss:$8 sps:$4 sm:$0xff]   ;;  %v1138_v50 = vld [vmem:[%s1571_s1 + $0x2f4] ss:$8 sps:$4 sm:$0xff]  }
  0x46   :  { %v173_v55 = vadd.f32 1e-05, %v167_v48  ;;  %v175_v62 = vadd.f32 1e-05, %v169_v56  ;;  %v97_v5 = vadd.f32 %v96_v1, %v95_v61  ;;  %v1136_v52 = vld [vmem:[%s1571_s1 + $0x2f0] ss:$8 sps:$4 sm:$0xff]  }
  0x47   :  { %v104_v63 = vadd.f32 %v103_v59, %v102_v53  ;;  %v1141_v53 = vld [vmem:[%s1571_s1 + $0x2e4] ss:$8 sps:$4 sm:$0xff]   ;;  %v1139_v56 = vld [vmem:[%s1571_s1 + $0x2e0] ss:$8 sps:$4 sm:$0xff]   ;;  %v1142_v61 = vld [vmem:[%s1571_s1 + $0x2d0] ss:$8 sps:$4 sm:$0xff]  }
  0x48   :  { %1164 = vrsqrt.f32 %v173_v55  ;;  %v110_v11 = vmul.f32 0.25, %v97_v5  ;;  %v1148_v1 = vld [vmem:[%s1571_s1 + $0x2b0] ss:$8 sps:$4 sm:$0xff]   ;;  %v1156_v5 = vld [vmem:[%s1571_s1 + $0x294] ss:$8 sps:$4 sm:$0xff]  }
  0x49   :  { %1166 = vrsqrt.f32 %v174_v58  ;;  %v111_v0 = vmul.f32 0.25, %v104_v63  ;;  %v1144_v58 = vld [vmem:[%s1571_s1 + $0x2d4] ss:$8 sps:$4 sm:$0xff]   ;;  %v1145_v63 = vld [vmem:[%s1571_s1 + $0x2c0] ss:$8 sps:$4 sm:$0xff]  }
  0x4a   :  { %1168 = vrsqrt.f32 %v175_v62  ;;  %v1468_v22 = vsub.f32 %v1455_v23, %v110_v11  ;;  %v1147_v62 = vld [vmem:[%s1571_s1 + $0x2c4] ss:$8 sps:$4 sm:$0xff]  }
  0x4b   :  { %v117_v3 = vsub.f32 %v62_v26, %v111_v0  ;;  %v1115_v26 = vld [vmem:[%s1571_s1 + $0x260] ss:$8 sps:$4 sm:$0xff]   ;;  %v1150_v0 = vld [vmem:[%s1571_s1 + $0x2b4] ss:$8 sps:$4 sm:$0xff]  }
  0x4c   :  { %v122_v23 = vmul.f32 %v1468_v22, %v1468_v22 }
  0x4d   :  { %v123_v4 = vmul.f32 %v117_v3, %v117_v3 }
  0x4e   :  { %v152_v31 = vsel %vm38_vm0, %v122_v23, 0.0 }
  0x4f   :  { %v159_v6 = vsel %vm38_vm0, %v123_v4, 0.0  ;;  %v153_v33 = vrot.slane %v152_v31, 4  ;;  %v1151_v4 = vld [vmem:[%s1571_s1 + $0x2a0] ss:$8 sps:$4 sm:$0xff]  }
  0x50   :  { %v160_v7 = vrot.slane %v159_v6, 4 }
  0x51   :  { %v154_v36 = vadd.f32 %v153_v33, %v152_v31 }
  0x52   :  { %v1163_v8 = vpop.eup %1162  ;;  %v161_v10 = vadd.f32 %v160_v7, %v159_v6  ;;  %v1154_v7 = vld [vmem:[%s1571_s1 + $0x290] ss:$8 sps:$4 sm:$0xff]  }
  0x53   :  { %v184_v9 = vmul.f32 %v1163_v8, %v1423_v54  ;;  %v155_v39 = vrot.slane %v154_v36, 2  ;;  %v1159_v8 = vld [vmem:[%s1571_s1 + $0x284] ss:$8 sps:$4 sm:$0xff]  }
  0x54   :  { %v162_v15 = vrot.slane %v161_v10, 2 }
  0x55   :  { %v1165_v12 = vpop.eup %1164  ;;  %v190_v16 = vpack.c.bf16 %v184_v9, %v184_v9  ;;  %v156_v43 = vadd.f32 %v155_v39, %v154_v36 }
  0x56   :  { %v1167_v13 = vpop.eup %1166  ;;  %v185_v14 = vmul.f32 %v1165_v12, %v1426_v57  ;;  %v163_v21 = vadd.f32 %v162_v15, %v161_v10  ;;  %v1117_v57 = vld [vmem:[%s1571_s1 + $0x264] ss:$8 sps:$4 sm:$0xff]   ;;  %v1157_v10 = vld [vmem:[%s1571_s1 + $0x280] ss:$8 sps:$4 sm:$0xff]  }
  0x57   :  { %v186_v17 = vmul.f32 %v1167_v13, %v1431_v60  ;;  %v1169_v18 = vpop.eup %1168  ;;  %v157_v48 = vrot.slane %v156_v43, 1 }
  0x58   :  { %v191_v19 = vpack.c.bf16 %v185_v14, %v185_v14  ;;  %v187_v54 = vmul.f32 %v1169_v18, %v1442_v2  ;;  %v164_v25 = vrot.slane %v163_v21, 1  ;;  %v1120_v2 = vld [vmem:[%s1571_s1 + $0x254] ss:$8 sps:$4 sm:$0xff]  }
  0x59   :  { %v192_v24 = vpack.c.bf16 %v186_v17, %v186_v17  ;;  %v158_v51 = vadd.f32 %v157_v48, %v156_v43 }
  0x5a   :  { %816 = vmatprep.mubr.bf16.mxu0 %v191_v19  ;;  %v193_v60 = vpack.c.bf16 %v187_v54, %v187_v54  ;;  %v165_v27 = vadd.f32 %v164_v25, %v163_v21 }
  0x5b   :  { %817 = vmatmul.mubr.bf16.vlgmr.msra.gmra.mxu0 %v190_v16  ;;  %v170_v55 = vmul.f32 0.25, %v158_v51 }
  0x5c   :  { %867 = vmatpush1.bf16.msra.mxu0 %v1110_v20  ;;  %857 = vmatprep.mubr.bf16.mxu1 %v193_v60  ;;  %v171_v28 = vmul.f32 0.25, %v165_v27  ;;  %v294_v20 = vlaneseq }
  0x5d   :  { %868 = vmatprep.subr.bf16.mxu0 %v1117_v57  ;;  %858 = vmatmul.mubr.bf16.vlgmr.msra.gmra.mxu1 %v192_v24  ;;  %v176_v59 = vadd.f32 1e-05, %v170_v55  ;;  %v292_v57 = vld [vmem:[%s1573_s2] sm:$0x3] }
  0x5e   :  { %v177_v30 = vadd.f32 1e-05, %v171_v28  ;;  %v295_v21 = vshrl.u32 %v294_v20, 7 }
  0x60   :  { %869 = vmatpush1.bf16.msra.mxu0 %v1115_v26  ;;  %1170 = vrsqrt.f32 %v177_v30  ;;  %v300_v54 = vsub.s32 1, %v295_v21 }
  0x61   :  { %870 = vmatprep.subr.bf16.mxu0 %v1120_v2  ;;  %1172 = vrsqrt.f32 %v176_v59 }
  0x62   :  { %v301_v25 = vrot.slane %v292_v57, %v300_v54 }
  0x64   :  { %871 = vmatpush1.bf16.msra.mxu0 %v1118_v29 }
  0x65   :  { %872 = vmatprep.subr.bf16.mxu0 %v1123_v32 }
  0x68   :  { %873 = vmatpush1.bf16.msra.mxu0 %v1121_v34 }
  0x69   :  { %874 = vmatprep.subr.bf16.mxu0 %v1126_v35 }
  0x6c   :  { %875 = vmatpush1.bf16.msra.mxu0 %v1124_v37 }
  0x6d   :  { %876 = vmatprep.subr.bf16.mxu0 %v1129_v38  ;;  %v1171_v42 = vpop.eup %1170 }
  0x6e   :  { %v189_v45 = vmul.f32 %v1171_v42, %v117_v3  ;;  %v1153_v3 = vld [vmem:[%s1571_s1 + $0x2a4] ss:$8 sps:$4 sm:$0xff]   ;;  %v1173_v6 = vpop.eup %1172 }
  0x6f   :  { %v188_v9 = vmul.f32 %v1173_v6, %v1468_v22  ;;  %v296_v22 = vsub.s32 0, %v295_v21 }
  0x70   :  { %877 = vmatpush1.bf16.msra.mxu0 %v1127_v40  ;;  %v195_v47 = vpack.c.bf16 %v189_v45, %v189_v45 }
  0x71   :  { %878 = vmatprep.subr.bf16.mxu0 %v1132_v41  ;;  %v194_v11 = vpack.c.bf16 %v188_v9, %v188_v9  ;;  %v297_v24 = vrot.slane %v292_v57, %v296_v22 }
  0x72   :  { %898 = vmatprep.mubr.bf16.mxu0 %v195_v47 }
  0x74   :  { %879 = vmatpush1.bf16.msra.mxu0 %v1130_v44 }
  0x75   :  { %880 = vmatprep.subr.bf16.mxu0 %v1135_v46 }
  0x78   :  { %881 = vmatpush1.bf16.msra.mxu0 %v1133_v49 }
  0x79   :  { %882 = vmatprep.subr.bf16.mxu0 %v1138_v50 }
  0x7c   :  { %883 = vmatpush2.bf16.msra.mxu0 %v1136_v52 }
  0x7d   :  { %884 = vmatprep.subr.bf16.mxu0 %v1141_v53 }
  0x80   :  { %885 = vmatpush2.bf16.msra.mxu0 %v1139_v56 }
  0x81   :  { %886 = vmatprep.subr.bf16.mxu0 %v1144_v58 }
  0x84   :  { %887 = vmatpush2.bf16.msra.mxu0 %v1142_v61 }
  0x85   :  { %888 = vmatprep.subr.bf16.mxu0 %v1147_v62 }
  0x88   :  { %889 = vmatpush2.bf16.msra.mxu0 %v1145_v63 }
  0x89   :  { %890 = vmatprep.subr.bf16.mxu0 %v1150_v0 }
  0x8c   :  { %891 = vmatpush2.bf16.msra.mxu0 %v1148_v1 }
  0x8d   :  { %892 = vmatprep.subr.bf16.mxu0 %v1153_v3 }
  0x90   :  { %893 = vmatpush2.bf16.msra.mxu0 %v1151_v4 }
  0x91   :  { %894 = vmatprep.subr.bf16.mxu0 %v1156_v5 }
  0x94   :  { %895 = vmatpush2.bf16.msra.mxu0 %v1154_v7 }
  0x95   :  { %896 = vmatprep.subr.bf16.mxu0 %v1159_v8 }
  0x98   :  { %897 = vmatpush2.bf16.msra.mxu0 %v1157_v10 }
  0x9b   :  { %899 = vmatmul.mubr.bf16.vlgmr.msra.gmra.mxu0 %v194_v11 }
 0x11b   :  { %v818_v12 = vpop.f32.mrf.mxu0 }
 0x11c   :  { %v819_v60 = vadd.f32 %v818_v12, %v297_v24 }
 0x11d   :  { %v820_v13 = vpop.f32.mrf.mxu0  ;;  %v859_v14 = vpop.f32.mrf.mxu1 }
 0x11e   :  { %v821_v26 = vadd.f32 %v820_v13, %v301_v25  ;;  %v860_v23 = vadd.f32 %v859_v14, %v819_v60 }
 0x11f   :  { %v822_v15 = vpop.f32.mrf.mxu0  ;;  %v861_v16 = vpop.f32.mrf.mxu1 }
 0x120   :  { %v862_v2 = vadd.f32 %v861_v16, %v821_v26 }
 0x121   :  { %v823_v17 = vpop.f32.mrf.mxu0  ;;  %v863_v18 = vpop.f32.mrf.mxu1 }
 0x123   :  { %v864_v19 = vpop.f32.mrf.mxu1 }
 0x15b   :  { %v900_v27 = vpop.f32.mrf.mxu0 }
 0x15c   :  { %v901_v29 = vadd.f32 %v900_v27, %v860_v23 }
 0x15d   :  { %v902_v28 = vpop.f32.mrf.mxu0 }
 0x15e   :  { %v903_v30 = vadd.f32 %v902_v28, %v862_v2 }
 0x15f   :  { %v904_v31 = vpop.f32.mrf.mxu0 }
 0x160   :  { %v909_v32 = vcombine.low %v901_v29, %v903_v30 }
 0x161   :  { %v905_v33 = vpop.f32.mrf.mxu0 }
 0x162   :  { %911 = vst [vmem:[%s1574_s3] sm:$0xff] %v909_v32 }

</bundles_post_ra>
